<compile_context>
chip_gen: v7x
topology: tpu7x:2x2x1
jax: 0.10.0
libtpu: 0.0.40
codegen_flags: <defaults>
</compile_context>

<pallas_src>
import jax
import jax.numpy as jnp
import numpy as np
from jax.experimental import pallas as pl
from jax.experimental.pallas import tpu as pltpu

LANES = 128


def _interleave_kernel(x_ref, o_ref):
    """Planar -> interleaved tile.

    x_ref: (1, C, Q, 128)  = x[n, c, pixel_chunk q, pixel-in-chunk m]
    o_ref: (1, Q*C, 128)   = lane-dense view of the row-major (HW, C) output.

    Writes o[C*q + g, C*k + c] = x[c, q, (128//C)*g + k], which flattened is
    exactly out[n, p, c] = x[n, c, p] for every pixel p of this tile.
    """
    _, C, Q, _ = x_ref.shape
    # 1) pixel-in-chunk index (lanes) -> sublanes: one clean transpose/channel.
    cols = [jnp.transpose(x_ref[0, c]) for c in range(C)]              # C x (128, Q)
    # 2) interleave channels along sublanes: row index = C*m + c.
    big = jnp.stack(cols, axis=1).reshape(LANES * C, Q)                # (128*C, Q)
    # 3) per 128-row group g, transpose back so pixels are lane-major again.
    groups = [jnp.transpose(big[LANES * g:LANES * (g + 1), :]) for g in range(C)]
    # 4) interleave groups along sublanes: output row = C*q + g.
    out2d = jnp.stack(groups, axis=1).reshape(Q * C, LANES)            # (Q*C, 128)
    o_ref[0] = out2d.astype(o_ref.dtype)


def _simple_kernel(x_ref, o_ref):
    # Generic-shape fallback: (C, HW) -> (HW, C) transpose, masked-store layout.
    o_ref[0] = jnp.transpose(x_ref[0]).astype(o_ref.dtype)


def _choose_tile_pixels(hw, c, itemsize):
    # Whole image per grid step when modest (typical patch grids); otherwise
    # the largest multiple-of-1024 divisor of HW, capped at 8192 pixels/step.
    if hw * c * itemsize <= (4 << 20):
        return hw
    for cand in (8192, 4096, 2048, 1024):
        if hw % cand == 0:
            return cand
    return hw


@jax.jit
def patch_embed(x):
    """Pallas equivalent of PatchEmbed.forward: x.flatten(2).transpose(1, 2)."""
    N, C, H, W = x.shape
    HW = H * W
    itemsize = jnp.dtype(x.dtype).itemsize
    cost = pl.CostEstimate(
        flops=0, transcendentals=0, bytes_accessed=2 * N * C * HW * itemsize)

    fast = (HW % LANES == 0) and (LANES % C == 0)
    if fast:
        TP = _choose_tile_pixels(HW, C, itemsize)        # pixels per grid step
        Q = TP // LANES
        x4 = x.reshape(N, C, HW // LANES, LANES)         # free row-major view
        out2d = pl.pallas_call(
            _interleave_kernel,
            out_shape=jax.ShapeDtypeStruct((N, HW * C // LANES, LANES), x.dtype),
            grid_spec=pltpu.PrefetchScalarGridSpec(
                num_scalar_prefetch=0,
                grid=(N, HW // TP),
                in_specs=[pl.BlockSpec((1, C, Q, LANES), lambda n, j: (n, 0, j, 0))],
                out_specs=pl.BlockSpec((1, Q * C, LANES), lambda n, j: (n, j, 0)),
            ),
            compiler_params=pltpu.CompilerParams(
                dimension_semantics=("parallel", "parallel")),
            cost_estimate=cost,
        )(x4)
        return out2d.reshape(N, HW, C)                   # free row-major view

    # TODO(synk): shapes with HW % 128 != 0 or C not dividing 128 fall back to
    # the masked-store layout (correct, but not lane-dense).
    x3 = x.reshape(N, C, HW)
    return pl.pallas_call(
        _simple_kernel,
        out_shape=jax.ShapeDtypeStruct((N, HW, C), x.dtype),
        grid_spec=pltpu.PrefetchScalarGridSpec(
            num_scalar_prefetch=0,
            grid=(N,),
            in_specs=[pl.BlockSpec((1, C, HW), lambda n: (n, 0, 0))],
            out_specs=pl.BlockSpec((1, HW, C), lambda n: (n, 0, 0)),
        ),
        compiler_params=pltpu.CompilerParams(dimension_semantics=("parallel",)),
        cost_estimate=cost,
    )(x3)


if __name__ == "__main__":
    N, C, H, W = 2, 4, 16, 16
    key = jax.random.PRNGKey(0)
    x = jax.random.normal(key, (N, C, H, W), dtype=jnp.float32)

    out = jax.block_until_ready(patch_embed(x))

    # Pure-JAX reference of the PyTorch forward: x.flatten(2).transpose(1, 2).
    ref = jnp.transpose(x.reshape(N, C, H * W), (0, 2, 1))

    assert out.shape == (N, H * W, C), out.shape
    np.testing.assert_array_equal(np.asarray(out), np.asarray(ref))
    print("KERNEL_OK")
</pallas_src>

<mosaic_0001>
module attributes {stable_mosaic.version = 11 : i64} {
  func.func @_interleave_kernel(%arg0: i32, %arg1: i32, %arg2: memref<1x4x2x128xf32, #tpu.memory_space<vmem>>, %arg3: memref<1x8x128xf32, #tpu.memory_space<vmem>>) attributes {dimension_semantics = [#tpu.dimension_semantics<parallel>, #tpu.dimension_semantics<parallel>], iteration_bounds = array<i64: 2, 1>, scalar_prefetch = 0 : i64, scratch_operands = 0 : i64, tpu.core_type = #tpu.core_type<tc>, window_params = [{transform_indices = @transform_0, window_bounds = array<i64: 1, 4, 2, 128>}, {transform_indices = @transform_1, window_bounds = array<i64: 1, 8, 128>}]} {
    %c0 = arith.constant 0 : index
    %c0_0 = arith.constant 0 : index
    %c0_1 = arith.constant 0 : index
    %c0_2 = arith.constant 0 : index
    %0 = vector.load %arg2[%c0, %c0_0, %c0_1, %c0_2] : memref<1x4x2x128xf32, #tpu.memory_space<vmem>>, vector<1x1x2x128xf32>
    %1 = vector.shape_cast %0 : vector<1x1x2x128xf32> to vector<2x128xf32>
    %2 = tpu.transpose %1, [1, 0] : vector<2x128xf32> -> vector<128x2xf32>
    %c0_3 = arith.constant 0 : index
    %c1 = arith.constant 1 : index
    %c0_4 = arith.constant 0 : index
    %c0_5 = arith.constant 0 : index
    %3 = vector.load %arg2[%c0_3, %c1, %c0_4, %c0_5] : memref<1x4x2x128xf32, #tpu.memory_space<vmem>>, vector<1x1x2x128xf32>
    %4 = vector.shape_cast %3 : vector<1x1x2x128xf32> to vector<2x128xf32>
    %5 = tpu.transpose %4, [1, 0] : vector<2x128xf32> -> vector<128x2xf32>
    %c0_6 = arith.constant 0 : index
    %c2 = arith.constant 2 : index
    %c0_7 = arith.constant 0 : index
    %c0_8 = arith.constant 0 : index
    %6 = vector.load %arg2[%c0_6, %c2, %c0_7, %c0_8] : memref<1x4x2x128xf32, #tpu.memory_space<vmem>>, vector<1x1x2x128xf32>
    %7 = vector.shape_cast %6 : vector<1x1x2x128xf32> to vector<2x128xf32>
    %8 = tpu.transpose %7, [1, 0] : vector<2x128xf32> -> vector<128x2xf32>
    %c0_9 = arith.constant 0 : index
    %c3 = arith.constant 3 : index
    %c0_10 = arith.constant 0 : index
    %c0_11 = arith.constant 0 : index
    %9 = vector.load %arg2[%c0_9, %c3, %c0_10, %c0_11] : memref<1x4x2x128xf32, #tpu.memory_space<vmem>>, vector<1x1x2x128xf32>
    %10 = vector.shape_cast %9 : vector<1x1x2x128xf32> to vector<2x128xf32>
    %11 = tpu.transpose %10, [1, 0] : vector<2x128xf32> -> vector<128x2xf32>
    %12 = vector.shape_cast %2 : vector<128x2xf32> to vector<128x1x2xf32>
    %13 = vector.shape_cast %5 : vector<128x2xf32> to vector<128x1x2xf32>
    %14 = vector.shape_cast %8 : vector<128x2xf32> to vector<128x1x2xf32>
    %15 = vector.shape_cast %11 : vector<128x2xf32> to vector<128x1x2xf32>
    %16 = tpu.concatenate %12, %13, %14, %15 in 1 : vector<128x1x2xf32>, vector<128x1x2xf32>, vector<128x1x2xf32>, vector<128x1x2xf32> -> vector<128x4x2xf32>
    %17 = vector.shape_cast %16 : vector<128x4x2xf32> to vector<512x2xf32>
    %18 = vector.extract_strided_slice %17 {offsets = [0, 0], sizes = [128, 2], strides = [1, 1]} : vector<512x2xf32> to vector<128x2xf32>
    %19 = tpu.transpose %18, [1, 0] : vector<128x2xf32> -> vector<2x128xf32>
    %20 = vector.extract_strided_slice %17 {offsets = [128, 0], sizes = [128, 2], strides = [1, 1]} : vector<512x2xf32> to vector<128x2xf32>
    %21 = tpu.transpose %20, [1, 0] : vector<128x2xf32> -> vector<2x128xf32>
    %22 = vector.extract_strided_slice %17 {offsets = [256, 0], sizes = [128, 2], strides = [1, 1]} : vector<512x2xf32> to vector<128x2xf32>
    %23 = tpu.transpose %22, [1, 0] : vector<128x2xf32> -> vector<2x128xf32>
    %24 = vector.extract_strided_slice %17 {offsets = [384, 0], sizes = [128, 2], strides = [1, 1]} : vector<512x2xf32> to vector<128x2xf32>
    %25 = tpu.transpose %24, [1, 0] : vector<128x2xf32> -> vector<2x128xf32>
    %26 = vector.shape_cast %19 : vector<2x128xf32> to vector<2x1x128xf32>
    %27 = vector.shape_cast %21 : vector<2x128xf32> to vector<2x1x128xf32>
    %28 = vector.shape_cast %23 : vector<2x128xf32> to vector<2x1x128xf32>
    %29 = vector.shape_cast %25 : vector<2x128xf32> to vector<2x1x128xf32>
    %30 = tpu.concatenate %26, %27, %28, %29 in 1 : vector<2x1x128xf32>, vector<2x1x128xf32>, vector<2x1x128xf32>, vector<2x1x128xf32> -> vector<2x4x128xf32>
    %31 = vector.shape_cast %30 : vector<2x4x128xf32> to vector<8x128xf32>
    %c0_12 = arith.constant 0 : index
    %c0_13 = arith.constant 0 : index
    %c0_14 = arith.constant 0 : index
    %32 = vector.load %arg3[%c0_12, %c0_13, %c0_14] : memref<1x8x128xf32, #tpu.memory_space<vmem>>, vector<1x8x128xf32>
    %33 = vector.shape_cast %32 : vector<1x8x128xf32> to vector<8x128xf32>
    %34 = vector.shape_cast %31 : vector<8x128xf32> to vector<1x8x128xf32>
    tpu.vector_store %arg3[%c0_12, %c0_13, %c0_14], %34 {strides = array<i32>} : memref<1x8x128xf32, #tpu.memory_space<vmem>>, vector<1x8x128xf32>,
    return
  }
  func.func @transform_0(%arg0: i32, %arg1: i32) -> (i32, i32, i32, i32) {
    %c0_i32 = arith.constant 0 : i32
    %c0_i32_0 = arith.constant 0 : i32
    %c0_i32_1 = arith.constant 0 : i32
    return %arg0, %c0_i32, %arg1, %c0_i32_0 : i32, i32, i32, i32
  }
  func.func @transform_1(%arg0: i32, %arg1: i32) -> (i32, i32, i32) {
    %c0_i32 = arith.constant 0 : i32
    %c0_i32_0 = arith.constant 0 : i32
    return %arg0, %arg1, %c0_i32 : i32, i32, i32
  }
}

</mosaic_0001>

<bundles_post_ra>
// kernel: patch_embed.1
= control target key start
LH: loop header
LB: loop body
LE: loop exit
PB: predicated region body
PF: predicated region fallthrough
CT: control target
= control target key end

     0   :  { %s6587_s6 = smov 0   ;;  %s6589_s7 = smov 0   ;;  %s10371_s0 = inlined_call_operand.vmem [shape: f32[2,4,2,128], index: 0, kind: input, shape index: {}]   ;;  %s10372_s1 = inlined_call_operand.vmem [shape: f32[2,8,128], index: 1, kind: output, shape index: {}]  }
   0x1   :  { %s6591_s8 = smov 0  }
   0x2 LB: > { %s23_s9 = sadd.s32 1, %s6570_s7  ;;  %p6516_p0 = scmp.ge.s32.totalorder %s6574_s8, 1  ;;  %s6574_s8 = sphi %s6591_s8, %s11_s8   ;;  %s6570_s7 = sphi %s6589_s7, %s11528_s7   ;;  %s6566_s6 = sphi %s6587_s6, %s11527_s6  }
   0x3   : > { %p25_p1 = scmp.ge.s32.totalorder %s23_s9, 2  ;;  %p106_p2 = scmp.lt.s32.totalorder %s6574_s8, 3 }
   0x5   : > { %s11530_s9 = smov (%p25_p1, %s23_s9), 0  ;;  %p107_p3 = pnand %p6516_p0, %p106_p2 }
   0x7   : > { %110 = sbr.rel (%p107_p3) target bundleno = 690 (0x2b2), region = 24 }
   0xe   : > { %p131_p4 = scmp.lt.s32.totalorder %s6566_s6, 1  ;;  %v6576_v4 = vmov 1966171168   ;;  %v301_v6 = vlaneseq  ;;  %vm5529_vm0 = vcmask 1040384   ;;  %vm5658_vm1 = vcmask 1041408  }
   0xf   : > { %v299_v5 = vunpack.c.l.s4 %v6576_v4  ;;  %vm5787_vm2 = vcmask 1042432  }
  0x10   : > { %s11532_s6 = smov (!%p131_p4, %s6566_s6), 1  ;;  %v302_v8 = vshrl.u32 %v301_v6, 7 }
  0x11   : > { %s6525_s10 = sshll.u32 %s11532_s6, 3  ;;  %v300_v7 = vunpack.c.0.s8 %v299_v5 }
  0x12   : > { %s138_s13 = scalar_lea.vmem %s10371_s0, %s6525_s10  ;;  %v6617_v16 = vsub.s32 0, %v302_v8  ;;  %s145_s16 = scalar_lea.vmem %s10372_s1, %s6525_s10 }
  0x13   : > { %v146_v0 = vld [vmem:[%s138_s13] sm:$0x3]  ;;  %v6521_v1 = vld [vmem:[%s138_s13 + $0x4] sm:$0x3]  ;;  %v6520_v2 = vld [vmem:[%s138_s13 + $0x2] sm:$0x3]  ;;  %v6613_v9 = vsub.s32 %v300_v7, %v302_v8 }
  0x14   : > { %147 = vxpose.xlu0.b32.start.end [1/1] (short) %v146_v0, 128  ;;  %215 = vxpose.xlu1.b32.start.end [1/1] (short) %v6521_v1, 128  ;;  %v6522_v3 = vld [vmem:[%s138_s13 + $0x6] sm:$0x3] }
  0x15   : > { %10663 = vst [vmem:[#allocation2_spill] sm:$0xff] %v6613_v9 }
  0x51   : > { %181 = vxpose.xlu0.b32.start.end [1/1] (short) %v6520_v2, 128  ;;  %249 = vxpose.xlu1.b32.start.end [1/1] (short) %v6522_v3, 128 }
  0x94   : > { %v163_v10 = vpop.trf.xlu0  ;;  %v231_v11 = vpop.trf.xlu1 }
  0x95   : > { %v297_v12 = vcombine.high %v163_v10, %v163_v10  ;;  %v304_v13 = vrot.slane %v163_v10, %v6613_v9  ;;  %v2025_v14 = vcombine.high %v231_v11, %v231_v11  ;;  %v2032_v15 = vrot.slane %v231_v11, %v6613_v9 }
  0x97   : > { %v311_v17 = vrot.slane %v297_v12, %v6613_v9  ;;  %v312_v18 = vcombine.high %v304_v13, %v304_v13  ;;  %v6621_v19 = vrot.slane %v304_v13, %v6613_v9  ;;  %v2039_v20 = vrot.slane %v2025_v14, %v6613_v9 }
  0x98   : > { %v2040_v21 = vcombine.high %v2032_v15, %v2032_v15  ;;  %v6625_v22 = vrot.slane %v2032_v15, %v6613_v9  ;;  %v164_v23 = vpop.trf.xlu0  ;;  %v232_v24 = vpop.trf.xlu1 }
  0x99   : > { %v313_v25 = vcombine.high %v311_v17, %v311_v17  ;;  %v6628_v26 = vrot.slane %v311_v17, %v6613_v9  ;;  %v6631_v27 = vrot.slane %v312_v18, %v6613_v9  ;;  %v2041_v29 = vcombine.high %v2039_v20, %v2039_v20 }
  0x9a   : > { %v6636_v30 = vrot.slane %v2039_v20, %v6613_v9  ;;  %v6639_v31 = vrot.slane %v2040_v21, %v6613_v9  ;;  %v2070_v32 = vcombine.high %v6625_v22, %v6625_v22  ;;  %v346_v44 = vcombine.high %v164_v23, %v164_v23 }
  0x9b   : > { %v6644_v33 = vrot.slane %v313_v25, %v6613_v9  ;;  %v6653_v37 = vrot.slane %v2041_v29, %v6613_v9  ;;  %v353_v51 = vrot.slane %v164_v23, %v6613_v9  ;;  %v2074_v53 = vcombine.high %v232_v24, %v232_v24 }
  0x9c   : > { %v2071_v38 = vcombine.high %v6636_v30, %v6636_v30  ;;  %v2072_v39 = vcombine.high %v6639_v31, %v6639_v31  ;;  %v6664_v42 = vrot.slane %v2070_v32, %v6617_v16  ;;  %v165_v45 = vpop.trf.xlu0  ;;  %v233_v46 = vpop.trf.xlu1  ;;  %v360_v52 = vrot.slane %v346_v44, %v6613_v9 }
  0x9d   : > { %v2081_v54 = vrot.slane %v232_v24, %v6613_v9  ;;  %v395_v55 = vcombine.high %v165_v45, %v165_v45  ;;  %v402_v56 = vrot.slane %v165_v45, %v6613_v9  ;;  %v2123_v57 = vcombine.high %v233_v46, %v233_v46 }
  0x9e   : > { %v6671_v48 = vrot.slane %v2072_v39, %v6617_v16  ;;  %v6676_v50 = vrot.slane %v2071_v38, %v6617_v16  ;;  %v2130_v58 = vrot.slane %v233_v46, %v6613_v9  ;;  %v361_v59 = vcombine.high %v353_v51, %v353_v51 }
  0x9f   : > { %v362_v60 = vcombine.high %v360_v52, %v360_v52  ;;  %v6684_v61 = vrot.slane %v353_v51, %v6613_v9  ;;  %v6687_v62 = vrot.slane %v360_v52, %v6613_v9  ;;  %v2088_v63 = vrot.slane %v2074_v53, %v6613_v9 }
  0xa0   : > { %v2089_v0 = vcombine.high %v2081_v54, %v2081_v54  ;;  %v6691_v1 = vrot.slane %v2081_v54, %v6613_v9  ;;  %v409_v2 = vrot.slane %v395_v55, %v6613_v9  ;;  %v6695_v3 = vrot.slane %v361_v59, %v6613_v9  ;;  %v166_v32 = vpop.trf.xlu0 }
  0xa1   : > { %10664 = vst [vmem:[#allocation3_spill] sm:$0xff] %v6687_v62  ;;  %v6698_v4 = vrot.slane %v362_v60, %v6613_v9  ;;  %v2090_v7 = vcombine.high %v2088_v63, %v2088_v63  ;;  %v6705_v8 = vrot.slane %v2088_v63, %v6613_v9  ;;  %v410_v15 = vcombine.high %v402_v56, %v402_v56  ;;  %v234_v60 = vpop.trf.xlu1 }
  0xa2   : > { %v6708_v10 = vrot.slane %v2089_v0, %v6613_v9  ;;  %v2119_v11 = vcombine.high %v6691_v1, %v6691_v1  ;;  %v411_v25 = vcombine.high %v409_v2, %v409_v2  ;;  %v6733_v29 = vrot.slane %v402_v56, %v6613_v9 }
  0xa3   : > { %10665 = vst [vmem:[#allocation4_spill] sm:$0xff] %v6698_v4  ;;  %10666 = vst [vmem:[#allocation5_spill] sm:$0xff] %v6705_v8  ;;  %v6719_v17 = vrot.slane %v2090_v7, %v6613_v9  ;;  %v2120_v18 = vcombine.high %v6705_v8, %v6705_v8  ;;  %v6746_v46 = vrot.slane %v409_v2, %v6613_v9 }
  0xa4   : > { %v2121_v20 = vcombine.high %v6708_v10, %v6708_v10  ;;  %v6728_v23 = vrot.slane %v2119_v11, %v6617_v16  ;;  %10668 = vst [vmem:[#allocation7_spill] sm:$0xff] %v6733_v29  ;;  %v6749_v51 = vrot.slane %v410_v15, %v6613_v9  ;;  %v6752_v52 = vrot.slane %v411_v25, %v6613_v9 }
  0xa5   : > { %10667 = vst [vmem:[#allocation6_spill] sm:$0xff] %v6719_v17  ;;  %v6743_v45 = vrot.slane %v2120_v18, %v6617_v16  ;;  %10670 = vst [vmem:[#allocation9_spill] sm:$0xff] %v6746_v46  ;;  %v2137_v54 = vrot.slane %v2123_v57, %v6613_v9  ;;  %v2138_v55 = vcombine.high %v2130_v58, %v2130_v58  ;;  %v235_v6 = vpop.trf.xlu1 }
  0xa6   : > { %v6738_v39 = vrot.slane %v2121_v20, %v6617_v16  ;;  %10671 = vst [vmem:[#allocation10_spill] sm:$0xff] %v6749_v51  ;;  %10672 = vst [vmem:[#allocation11_spill] sm:$0xff] %v6752_v52  ;;  %v6758_v56 = vrot.slane %v2130_v58, %v6613_v9  ;;  %v444_v59 = vcombine.high %v166_v32, %v166_v32 }
  0xa7   : > { %10669 = vst [vmem:[#allocation8_spill] sm:$0xff] %v6743_v45  ;;  %v451_v7 = vrot.slane %v166_v32, %v6613_v9  ;;  %v2139_v11 = vcombine.high %v2137_v54, %v2137_v54  ;;  %v6768_v57 = vrot.slane %v2137_v54, %v6613_v9  ;;  %v6771_v58 = vrot.slane %v2138_v55, %v6613_v9 }
  0xa8   : > { %10673 = vst [vmem:[#allocation12_spill] sm:$0xff] %v6758_v56  ;;  %v2168_v15 = vcombine.high %v6758_v56, %v6758_v56  ;;  %v458_v20 = vrot.slane %v444_v59, %v6613_v9  ;;  %v2172_v18 = vcombine.high %v234_v60, %v234_v60  ;;  %v2179_v44 = vrot.slane %v234_v60, %v6613_v9 }
  0xa9   : > { %10674 = vst [vmem:[#allocation13_spill] sm:$0xff] %v6768_v57  ;;  %10675 = vst [vmem:[#allocation14_spill] sm:$0xff] %v6771_v58  ;;  %v459_v25 = vcombine.high %v451_v7, %v451_v7  ;;  %v6779_v2 = vrot.slane %v451_v7, %v6613_v9  ;;  %v6782_v32 = vrot.slane %v2139_v11, %v6613_v9  ;;  %v167_v11 = vpop.trf.xlu0 }
  0xaa   : > { %v2169_v54 = vcombine.high %v6768_v57, %v6768_v57  ;;  %v2170_v55 = vcombine.high %v6771_v58, %v6771_v58  ;;  %v6791_v0 = vrot.slane %v2168_v15, %v6617_v16  ;;  %v460_v7 = vcombine.high %v458_v20, %v458_v20 }
  0xab   : > { %10676 = vst [vmem:[#allocation15_spill] sm:$0xff] %v6779_v2  ;;  %10677 = vst [vmem:[#allocation16_spill] sm:$0xff] %v6782_v32  ;;  %v6796_v53 = vrot.slane %v458_v20, %v6613_v9  ;;  %v6809_v59 = vrot.slane %v459_v25, %v6613_v9  ;;  %v493_v63 = vcombine.high %v167_v11, %v167_v11 }
  0xac   : > { %10678 = vst [vmem:[#allocation17_spill] sm:$0xff] %v6791_v0  ;;  %v6801_v13 = vrot.slane %v2170_v55, %v6617_v16  ;;  %v6806_v15 = vrot.slane %v2169_v54, %v6617_v16  ;;  %v6812_v20 = vrot.slane %v460_v7, %v6613_v9  ;;  %v500_v54 = vrot.slane %v167_v11, %v6613_v9 }
  0xad   : > { %10679 = vst [vmem:[#allocation18_spill] sm:$0xff] %v6796_v53  ;;  %10682 = vst [vmem:[#allocation21_spill] sm:$0xff] %v6809_v59  ;;  %v2221_v7 = vcombine.high %v235_v6, %v235_v6  ;;  %v2228_v12 = vrot.slane %v235_v6, %v6613_v9  ;;  %v2186_v38 = vrot.slane %v2172_v18, %v6613_v9  ;;  %v168_v49 = vpop.trf.xlu0 }
  0xae   : > { %10680 = vst [vmem:[#allocation19_spill] sm:$0xff] %v6801_v13  ;;  %10681 = vst [vmem:[#allocation20_spill] sm:$0xff] %v6806_v15  ;;  %v2187_v5 = vcombine.high %v2179_v44, %v2179_v44  ;;  %v6827_v55 = vrot.slane %v2179_v44, %v6613_v9  ;;  %v507_v60 = vrot.slane %v493_v63, %v6613_v9 }
  0xaf   : > { %10683 = vst [vmem:[#allocation22_spill] sm:$0xff] %v6812_v20  ;;  %v508_v21 = vcombine.high %v500_v54, %v500_v54  ;;  %v6831_v11 = vrot.slane %v500_v54, %v6613_v9  ;;  %v2235_v24 = vrot.slane %v2221_v7, %v6613_v9  ;;  %v2236_v14 = vcombine.high %v2228_v12, %v2228_v12 }
  0xb0   : > { %10684 = vst [vmem:[#allocation23_spill] sm:$0xff] %v6827_v55  ;;  %v2188_v41 = vcombine.high %v2186_v38, %v2186_v38  ;;  %v6835_v25 = vrot.slane %v2186_v38, %v6613_v9  ;;  %v6838_v6 = vrot.slane %v2187_v5, %v6613_v9  ;;  %v2217_v44 = vcombine.high %v6827_v55, %v6827_v55 }
  0xb1   : > { %v509_v18 = vcombine.high %v507_v60, %v507_v60  ;;  %v6845_v54 = vrot.slane %v507_v60, %v6613_v9  ;;  %v6848_v7 = vrot.slane %v508_v21, %v6613_v9  ;;  %v236_v60 = vpop.trf.xlu1  ;;  %v2237_v43 = vcombine.high %v2235_v24, %v2235_v24 }
  0xb2   : > { %10685 = vst [vmem:[#allocation24_spill] sm:$0xff] %v6835_v25  ;;  %10686 = vst [vmem:[#allocation25_spill] sm:$0xff] %v6838_v6  ;;  %v6851_v34 = vrot.slane %v2188_v41, %v6613_v9  ;;  %v2218_v5 = vcombine.high %v6835_v25, %v6835_v25  ;;  %v2219_v38 = vcombine.high %v6838_v6, %v6838_v6  ;;  %v169_v25 = vpop.trf.xlu0 }
  0xb3   : > { %10687 = vst [vmem:[#allocation26_spill] sm:$0xff] %v6845_v54  ;;  %v6860_v63 = vrot.slane %v2217_v44, %v6617_v16  ;;  %v6865_v21 = vrot.slane %v509_v18, %v6613_v9  ;;  %v6889_v40 = vrot.slane %v2235_v24, %v6613_v9  ;;  %v542_v44 = vcombine.high %v168_v49, %v168_v49 }
  0xb4   : > { %10688 = vst [vmem:[#allocation27_spill] sm:$0xff] %v6851_v34  ;;  %v6872_v35 = vrot.slane %v2219_v38, %v6617_v16  ;;  %v6877_v47 = vrot.slane %v2218_v5, %v6617_v16  ;;  %v6886_v38 = vrot.slane %v2228_v12, %v6613_v9  ;;  %v6892_v5 = vrot.slane %v2236_v14, %v6613_v9 }
  0xb5   : > { %10689 = vst [vmem:[#allocation28_spill] sm:$0xff] %v6860_v63  ;;  %10690 = vst [vmem:[#allocation29_spill] sm:$0xff] %v6865_v21  ;;  %v6895_v36 = vrot.slane %v2237_v43, %v6613_v9  ;;  %v549_v18 = vrot.slane %v168_v49, %v6613_v9  ;;  %v2270_v41 = vcombine.high %v236_v60, %v236_v60 }
  0xb6   : > { %10691 = vst [vmem:[#allocation30_spill] sm:$0xff] %v6872_v35  ;;  %10692 = vst [vmem:[#allocation31_spill] sm:$0xff] %v6877_v47  ;;  %v2277_v47 = vrot.slane %v236_v60, %v6613_v9  ;;  %v2266_v28 = vcombine.high %v6886_v38, %v6886_v38  ;;  %v2267_v12 = vcombine.high %v6889_v40, %v6889_v40  ;;  %v237_v35 = vpop.trf.xlu1 }
  0xb7   : > { %10693 = vst [vmem:[#allocation32_spill] sm:$0xff] %v6889_v40  ;;  %10694 = vst [vmem:[#allocation33_spill] sm:$0xff] %v6895_v36  ;;  %v2268_v24 = vcombine.high %v6892_v5, %v6892_v5  ;;  %v556_v43 = vrot.slane %v542_v44, %v6613_v9  ;;  %v557_v49 = vcombine.high %v549_v18, %v549_v18 }
  0xb8   : > { %v6916_v20 = vrot.slane %v2266_v28, %v6617_v16  ;;  %v6922_v14 = vrot.slane %v2267_v12, %v6617_v16  ;;  %v6926_v63 = vrot.slane %v549_v18, %v6613_v9  ;;  %v2284_v60 = vrot.slane %v2270_v41, %v6613_v9 }
  0xb9   : > { %v6919_v53 = vrot.slane %v2268_v24, %v6617_v16  ;;  %v2285_v34 = vcombine.high %v2277_v47, %v2277_v47  ;;  %v558_v6 = vcombine.high %v556_v43, %v556_v43  ;;  %v6930_v28 = vrot.slane %v556_v43, %v6613_v9 }
  0xba   : > { %10695 = vst [vmem:[#allocation34_spill] sm:$0xff] %v6922_v14  ;;  %10696 = vst [vmem:[#allocation35_spill] sm:$0xff] %v6926_v63  ;;  %v6933_v24 = vrot.slane %v2277_v47, %v6613_v9  ;;  %v591_v55 = vcombine.high %v169_v25, %v169_v25  ;;  %v6936_v12 = vrot.slane %v557_v49, %v6613_v9 }
  0xbb   : > { %10697 = vst [vmem:[#allocation36_spill] sm:$0xff] %v6930_v28  ;;  %v2286_v59 = vcombine.high %v2284_v60, %v2284_v60  ;;  %v6941_v18 = vrot.slane %v2284_v60, %v6613_v9  ;;  %v6944_v41 = vrot.slane %v558_v6, %v6613_v9  ;;  %v6949_v47 = vrot.slane %v2285_v34, %v6613_v9  ;;  %v238_v28 = vpop.trf.xlu1 }
  0xbc   : > { %10698 = vst [vmem:[#allocation37_spill] sm:$0xff] %v6933_v24  ;;  %10699 = vst [vmem:[#allocation38_spill] sm:$0xff] %v6936_v12  ;;  %v2315_v49 = vcombine.high %v6933_v24, %v6933_v24  ;;  %v605_v15 = vrot.slane %v591_v55, %v6613_v9  ;;  %v2319_v52 = vcombine.high %v237_v35, %v237_v35 }
  0xbd   : > { %10700 = vst [vmem:[#allocation39_spill] sm:$0xff] %v6941_v18  ;;  %10701 = vst [vmem:[#allocation40_spill] sm:$0xff] %v6944_v41  ;;  %v6956_v44 = vrot.slane %v2286_v59, %v6613_v9  ;;  %v2316_v60 = vcombine.high %v6941_v18, %v6941_v18  ;;  %v2317_v34 = vcombine.high %v6949_v47, %v6949_v47  ;;  %v170_v59 = vpop.trf.xlu0 }
  0xbe   : > { %10702 = vst [vmem:[#allocation41_spill] sm:$0xff] %v6949_v47  ;;  %v6969_v2 = vrot.slane %v2315_v49, %v6617_v16  ;;  %v598_v49 = vrot.slane %v169_v25, %v6613_v9  ;;  %v2326_v46 = vrot.slane %v237_v35, %v6613_v9  ;;  %v640_v32 = vcombine.high %v170_v59, %v170_v59 }
  0xbf   : > { %10703 = vst [vmem:[#allocation42_spill] sm:$0xff] %v6956_v44  ;;  %v6978_v41 = vrot.slane %v2316_v60, %v6617_v16  ;;  %v6981_v57 = vrot.slane %v2317_v34, %v6617_v16  ;;  %v2368_v6 = vcombine.high %v238_v28, %v238_v28  ;;  %v607_v13 = vcombine.high %v605_v15, %v605_v15 }
  0xc0   : > { %10704 = vst [vmem:[#allocation43_spill] sm:$0xff] %v6969_v2  ;;  %v647_v2 = vrot.slane %v170_v59, %v6613_v9  ;;  %v606_v18 = vcombine.high %v598_v49, %v598_v49  ;;  %v6988_v43 = vrot.slane %v598_v49, %v6613_v9  ;;  %v6991_v60 = vrot.slane %v605_v15, %v6613_v9 }
  0xc1   : > { %10705 = vst [vmem:[#allocation44_spill] sm:$0xff] %v6978_v41  ;;  %10706 = vst [vmem:[#allocation45_spill] sm:$0xff] %v6981_v57  ;;  %v2333_v34 = vrot.slane %v2319_v52, %v6613_v9  ;;  %v2334_v25 = vcombine.high %v2326_v46, %v2326_v46  ;;  %v6995_v55 = vrot.slane %v2326_v46, %v6613_v9 }
  0xc2   : > { %10707 = vst [vmem:[#allocation46_spill] sm:$0xff] %v6988_v43  ;;  %10708 = vst [vmem:[#allocation47_spill] sm:$0xff] %v6991_v60  ;;  %v654_v35 = vrot.slane %v640_v32, %v6613_v9  ;;  %v6999_v41 = vrot.slane %v606_v18, %v6613_v9  ;;  %v7002_v59 = vrot.slane %v607_v13, %v6613_v9 }
  0xc3   : > { %10709 = vst [vmem:[#allocation48_spill] sm:$0xff] %v6995_v55  ;;  %v2335_v44 = vcombine.high %v2333_v34, %v2333_v34  ;;  %v7009_v52 = vrot.slane %v2333_v34, %v6613_v9  ;;  %v7012_v46 = vrot.slane %v2334_v25, %v6613_v9  ;;  %v2364_v32 = vcombine.high %v6995_v55, %v6995_v55 }
  0xc4   : > { %10710 = vst [vmem:[#allocation49_spill] sm:$0xff] %v6999_v41  ;;  %10711 = vst [vmem:[#allocation50_spill] sm:$0xff] %v7002_v59  ;;  %v655_v15 = vcombine.high %v647_v2, %v647_v2  ;;  %v656_v49 = vcombine.high %v654_v35, %v654_v35  ;;  %v7037_v59 = vrot.slane %v647_v2, %v6613_v9 }
  0xc5   : > { %10712 = vst [vmem:[#allocation51_spill] sm:$0xff] %v7009_v52  ;;  %10713 = vst [vmem:[#allocation52_spill] sm:$0xff] %v7012_v46  ;;  %v7023_v60 = vrot.slane %v2335_v44, %v6613_v9  ;;  %v2365_v34 = vcombine.high %v7009_v52, %v7009_v52  ;;  %v2366_v25 = vcombine.high %v7012_v46, %v7012_v46  ;;  %v171_v44 = vpop.trf.xlu0 }
  0xc6   : > { %v7032_v13 = vrot.slane %v2364_v32, %v6617_v16  ;;  %10716 = vst [vmem:[#allocation55_spill] sm:$0xff] %v7037_v59  ;;  %v7050_v18 = vrot.slane %v654_v35, %v6613_v9  ;;  %v7053_v2 = vrot.slane %v655_v15, %v6613_v9  ;;  %v7056_v52 = vrot.slane %v656_v49, %v6613_v9 }
  0xc7   : > { %10714 = vst [vmem:[#allocation53_spill] sm:$0xff] %v7023_v60  ;;  %v7042_v41 = vrot.slane %v2366_v25, %v6617_v16  ;;  %v7047_v32 = vrot.slane %v2365_v34, %v6617_v16  ;;  %v2375_v55 = vrot.slane %v238_v28, %v6613_v9  ;;  %v2382_v43 = vrot.slane %v2368_v6, %v6613_v9 }
  0xc8   : > { %10715 = vst [vmem:[#allocation54_spill] sm:$0xff] %v7032_v13  ;;  %v239_v13 = vpop.trf.xlu1  ;;  %10719 = vst [vmem:[#allocation58_spill] sm:$0xff] %v7050_v18  ;;  %v689_v60 = vcombine.high %v171_v44, %v171_v44  ;;  %v696_v34 = vrot.slane %v171_v44, %v6613_v9 }
  0xc9   : > { %10717 = vst [vmem:[#allocation56_spill] sm:$0xff] %v7042_v41  ;;  %10718 = vst [vmem:[#allocation57_spill] sm:$0xff] %v7047_v32  ;;  %v2417_v32 = vcombine.high %v239_v13, %v239_v13  ;;  %v2383_v41 = vcombine.high %v2375_v55, %v2375_v55  ;;  %v2384_v46 = vcombine.high %v2382_v43, %v2382_v43 }
  0xca   : > { %10720 = vst [vmem:[#allocation59_spill] sm:$0xff] %v7053_v2  ;;  %10721 = vst [vmem:[#allocation60_spill] sm:$0xff] %v7056_v52  ;;  %v7070_v25 = vrot.slane %v2375_v55, %v6613_v9  ;;  %v7073_v28 = vrot.slane %v2382_v43, %v6613_v9  ;;  %v703_v6 = vrot.slane %v689_v60, %v6613_v9  ;;  %v172_v60 = vpop.trf.xlu0 }
  0xcb   : > { %v704_v44 = vcombine.high %v696_v34, %v696_v34  ;;  %v7077_v35 = vrot.slane %v696_v34, %v6613_v9  ;;  %v2424_v15 = vrot.slane %v239_v13, %v6613_v9  ;;  %v7081_v18 = vrot.slane %v2383_v41, %v6613_v9 }
  0xcc   : > { %10722 = vst [vmem:[#allocation61_spill] sm:$0xff] %v7070_v25  ;;  %10723 = vst [vmem:[#allocation62_spill] sm:$0xff] %v7073_v28  ;;  %v7084_v49 = vrot.slane %v2384_v46, %v6613_v9  ;;  %v2413_v55 = vcombine.high %v7070_v25, %v7070_v25  ;;  %v2414_v43 = vcombine.high %v7073_v28, %v7073_v28 }
  0xcd   : > { %10724 = vst [vmem:[#allocation63_spill] sm:$0xff] %v7077_v35  ;;  %10725 = vst [vmem:[#allocation64_spill] sm:$0xff] %v7081_v18  ;;  %v705_v52 = vcombine.high %v703_v6, %v703_v6  ;;  %v7095_v13 = vrot.slane %v703_v6, %v6613_v9  ;;  %v2415_v41 = vcombine.high %v7081_v18, %v7081_v18 }
  0xce   : > { %10726 = vst [vmem:[#allocation65_spill] sm:$0xff] %v7084_v49  ;;  %v7104_v59 = vrot.slane %v2413_v55, %v6617_v16  ;;  %v7109_v28 = vrot.slane %v2414_v43, %v6617_v16  ;;  %v7112_v6 = vrot.slane %v704_v44, %v6613_v9  ;;  %v2431_v34 = vrot.slane %v2417_v32, %v6613_v9  ;;  %v240_v49 = vpop.trf.xlu1 }
  0xcf   : > { %10727 = vst [vmem:[#allocation66_spill] sm:$0xff] %v7095_v13  ;;  %v7115_v25 = vrot.slane %v705_v52, %v6613_v9  ;;  %v7118_v46 = vrot.slane %v2415_v41, %v6617_v16  ;;  %v2432_v52 = vcombine.high %v2424_v15, %v2424_v15  ;;  %v738_v55 = vcombine.high %v172_v60, %v172_v60 }
  0xd0   : > { %10728 = vst [vmem:[#allocation67_spill] sm:$0xff] %v7104_v59  ;;  %10729 = vst [vmem:[#allocation68_spill] sm:$0xff] %v7109_v28  ;;  %v7130_v28 = vrot.slane %v2424_v15, %v6613_v9  ;;  %v2433_v41 = vcombine.high %v2431_v34, %v2431_v34  ;;  %v745_v2 = vrot.slane %v172_v60, %v6613_v9 }
  0xd1   : > { %10730 = vst [vmem:[#allocation69_spill] sm:$0xff] %v7112_v6  ;;  %10731 = vst [vmem:[#allocation70_spill] sm:$0xff] %v7115_v25  ;;  %v7137_v32 = vrot.slane %v2432_v52, %v6613_v9  ;;  %v2466_v25 = vcombine.high %v240_v49, %v240_v49  ;;  %v752_v60 = vrot.slane %v738_v55, %v6613_v9  ;;  %v173_v52 = vpop.trf.xlu0 }
  0xd2   : > { %10732 = vst [vmem:[#allocation71_spill] sm:$0xff] %v7118_v46  ;;  %10733 = vst [vmem:[#allocation72_spill] sm:$0xff] %v7130_v28  ;;  %v7133_v46 = vrot.slane %v2431_v34, %v6613_v9  ;;  %v2462_v43 = vcombine.high %v7130_v28, %v7130_v28  ;;  %v7144_v15 = vrot.slane %v2433_v41, %v6613_v9 }
  0xd3   : > { %10735 = vst [vmem:[#allocation74_spill] sm:$0xff] %v7137_v32  ;;  %v2464_v59 = vcombine.high %v7137_v32, %v7137_v32  ;;  %v753_v41 = vcombine.high %v745_v2, %v745_v2  ;;  %v754_v55 = vcombine.high %v752_v60, %v752_v60  ;;  %v7169_v18 = vrot.slane %v745_v2, %v6613_v9 }
  0xd4   : > { %10734 = vst [vmem:[#allocation73_spill] sm:$0xff] %v7133_v46  ;;  %10736 = vst [vmem:[#allocation75_spill] sm:$0xff] %v7144_v15  ;;  %v2463_v34 = vcombine.high %v7133_v46, %v7133_v46  ;;  %v7156_v44 = vrot.slane %v2462_v43, %v6617_v16  ;;  %v7172_v43 = vrot.slane %v752_v60, %v6613_v9  ;;  %v241_v15 = vpop.trf.xlu1 }
  0xd5   : > { %v7166_v46 = vrot.slane %v2464_v59, %v6617_v16  ;;  %10740 = vst [vmem:[#allocation79_spill] sm:$0xff] %v7169_v18  ;;  %v7175_v6 = vrot.slane %v753_v41, %v6613_v9  ;;  %v7178_v28 = vrot.slane %v754_v55, %v6613_v9  ;;  %v2473_v35 = vrot.slane %v240_v49, %v6613_v9 }
  0xd6   : > { %10737 = vst [vmem:[#allocation76_spill] sm:$0xff] %v7156_v44  ;;  %v7163_v13 = vrot.slane %v2463_v34, %v6617_v16  ;;  %10741 = vst [vmem:[#allocation80_spill] sm:$0xff] %v7172_v43  ;;  %v2480_v34 = vrot.slane %v2466_v25, %v6613_v9  ;;  %v794_v41 = vrot.slane %v173_v52, %v6613_v9  ;;  %v174_v44 = vpop.trf.xlu0 }
  0xd7   : > { %10739 = vst [vmem:[#allocation78_spill] sm:$0xff] %v7166_v46  ;;  %10742 = vst [vmem:[#allocation81_spill] sm:$0xff] %v7175_v6  ;;  %v2481_v46 = vcombine.high %v2473_v35, %v2473_v35  ;;  %v7192_v25 = vrot.slane %v2473_v35, %v6613_v9 }
  0xd8   : > { %10738 = vst [vmem:[#allocation77_spill] sm:$0xff] %v7163_v13  ;;  %10743 = vst [vmem:[#allocation82_spill] sm:$0xff] %v7178_v28  ;;  %v787_v13 = vcombine.high %v173_v52, %v173_v52  ;;  %v2482_v49 = vcombine.high %v2480_v34, %v2480_v34  ;;  %v7195_v59 = vrot.slane %v2480_v34, %v6613_v9  ;;  %v242_v32 = vpop.trf.xlu1 }
  0xd9   : > { %10744 = vst [vmem:[#allocation83_spill] sm:$0xff] %v7192_v25  ;;  %v802_v43 = vcombine.high %v794_v41, %v794_v41  ;;  %v7199_v60 = vrot.slane %v794_v41, %v6613_v9  ;;  %v7202_v52 = vrot.slane %v2481_v46, %v6613_v9  ;;  %v2511_v35 = vcombine.high %v7192_v25, %v7192_v25 }
  0xda   : > { %10745 = vst [vmem:[#allocation84_spill] sm:$0xff] %v7195_v59  ;;  %v801_v2 = vrot.slane %v787_v13, %v6613_v9  ;;  %v7205_v55 = vrot.slane %v2482_v49, %v6613_v9  ;;  %v2512_v34 = vcombine.high %v7195_v59, %v7195_v59  ;;  %v2515_v25 = vcombine.high %v241_v15, %v241_v15 }
  0xdb   : > { %10746 = vst [vmem:[#allocation85_spill] sm:$0xff] %v7199_v60  ;;  %10747 = vst [vmem:[#allocation86_spill] sm:$0xff] %v7202_v52  ;;  %v2513_v46 = vcombine.high %v7202_v52, %v7202_v52  ;;  %v7225_v28 = vrot.slane %v2511_v35, %v6617_v16  ;;  %v2571_v35 = vrot.slane %v242_v32, %v6613_v9 }
  0xdc   : > { %10748 = vst [vmem:[#allocation87_spill] sm:$0xff] %v7205_v55  ;;  %v803_v41 = vcombine.high %v801_v2, %v801_v2  ;;  %v7216_v6 = vrot.slane %v801_v2, %v6613_v9  ;;  %v7230_v13 = vrot.slane %v2512_v34, %v6617_v16  ;;  %v7233_v2 = vrot.slane %v802_v43, %v6613_v9  ;;  %v175_v55 = vpop.trf.xlu0  ;;  %v243_v0 = vpop.trf.xlu1 }
  0xdd   : > { %10750 = vst [vmem:[#allocation89_spill] sm:$0xff] %v7225_v28  ;;  %v7239_v49 = vrot.slane %v2513_v46, %v6617_v16  ;;  %v2529_v46 = vrot.slane %v2515_v25, %v6613_v9  ;;  %v2564_v28 = vcombine.high %v242_v32, %v242_v32  ;;  %v885_v34 = vcombine.high %v175_v55, %v175_v55 }
  0xde   : > { %10749 = vst [vmem:[#allocation88_spill] sm:$0xff] %v7216_v6  ;;  %10751 = vst [vmem:[#allocation90_spill] sm:$0xff] %v7230_v13  ;;  %v7236_v59 = vrot.slane %v803_v41, %v6613_v9  ;;  %v2522_v41 = vrot.slane %v241_v15, %v6613_v9  ;;  %v836_v13 = vcombine.high %v174_v44, %v174_v44 }
  0xdf   : > { %10752 = vst [vmem:[#allocation91_spill] sm:$0xff] %v7233_v2  ;;  %10754 = vst [vmem:[#allocation93_spill] sm:$0xff] %v7239_v49  ;;  %v843_v49 = vrot.slane %v174_v44, %v6613_v9  ;;  %v2531_v2 = vcombine.high %v2529_v46, %v2529_v46  ;;  %v7258_v43 = vrot.slane %v2529_v46, %v6613_v9 }
  0xe0   : > { %10753 = vst [vmem:[#allocation92_spill] sm:$0xff] %v7236_v59  ;;  %v2530_v60 = vcombine.high %v2522_v41, %v2522_v41  ;;  %v7254_v18 = vrot.slane %v2522_v41, %v6613_v9  ;;  %v850_v6 = vrot.slane %v836_v13, %v6613_v9 }
  0xe1   : > { %10756 = vst [vmem:[#allocation95_spill] sm:$0xff] %v7258_v43  ;;  %v851_v15 = vcombine.high %v843_v49, %v843_v49  ;;  %v7261_v59 = vrot.slane %v843_v49, %v6613_v9  ;;  %v7271_v13 = vrot.slane %v2531_v2, %v6613_v9  ;;  %v2561_v46 = vcombine.high %v7258_v43, %v7258_v43 }
  0xe2   : > { %10755 = vst [vmem:[#allocation94_spill] sm:$0xff] %v7254_v18  ;;  %v7264_v44 = vrot.slane %v2530_v60, %v6613_v9  ;;  %v2560_v32 = vcombine.high %v7254_v18, %v7254_v18  ;;  %v852_v41 = vcombine.high %v850_v6, %v850_v6  ;;  %v7278_v52 = vrot.slane %v850_v6, %v6613_v9 }
  0xe3   : > { %10757 = vst [vmem:[#allocation96_spill] sm:$0xff] %v7261_v59  ;;  %10759 = vst [vmem:[#allocation98_spill] sm:$0xff] %v7271_v13  ;;  %v7288_v2 = vrot.slane %v851_v15, %v6613_v9  ;;  %v7295_v6 = vrot.slane %v2561_v46, %v6617_v16  ;;  %v2578_v49 = vrot.slane %v2564_v28, %v6613_v9 }
  0xe4   : > { %10758 = vst [vmem:[#allocation97_spill] sm:$0xff] %v7264_v44  ;;  %10760 = vst [vmem:[#allocation99_spill] sm:$0xff] %v7278_v52  ;;  %v2562_v60 = vcombine.high %v7264_v44, %v7264_v44  ;;  %v7285_v25 = vrot.slane %v2560_v32, %v6617_v16  ;;  %v7298_v43 = vrot.slane %v852_v41, %v6613_v9 }
  0xe5   : > { %10762 = vst [vmem:[#allocation101_spill] sm:$0xff] %v7288_v2  ;;  %10763 = vst [vmem:[#allocation102_spill] sm:$0xff] %v7295_v6  ;;  %v2579_v41 = vcombine.high %v2571_v35, %v2571_v35  ;;  %v7313_v6 = vrot.slane %v2571_v35, %v6613_v9  ;;  %v899_v13 = vrot.slane %v885_v34, %v6613_v9  ;;  %v244_v35 = vpop.trf.xlu1 }
  0xe6   : > { %10761 = vst [vmem:[#allocation100_spill] sm:$0xff] %v7285_v25  ;;  %10764 = vst [vmem:[#allocation103_spill] sm:$0xff] %v7298_v43  ;;  %v7301_v57 = vrot.slane %v2562_v60, %v6617_v16  ;;  %v892_v60 = vrot.slane %v175_v55, %v6613_v9  ;;  %v2613_v15 = vcombine.high %v243_v0, %v243_v0 }
  0xe7   : > { %10766 = vst [vmem:[#allocation105_spill] sm:$0xff] %v7313_v6  ;;  %v2620_v59 = vrot.slane %v243_v0, %v6613_v9  ;;  %v2580_v32 = vcombine.high %v2578_v49, %v2578_v49  ;;  %v7319_v52 = vrot.slane %v2578_v49, %v6613_v9  ;;  %v7322_v18 = vrot.slane %v2579_v41, %v6613_v9 }
  0xe8   : > { %10765 = vst [vmem:[#allocation104_spill] sm:$0xff] %v7301_v57  ;;  %v2609_v28 = vcombine.high %v7313_v6, %v7313_v6  ;;  %v900_v46 = vcombine.high %v892_v60, %v892_v60  ;;  %v901_v55 = vcombine.high %v899_v13, %v899_v13  ;;  %v7329_v34 = vrot.slane %v892_v60, %v6613_v9  ;;  %v176_v6 = vpop.trf.xlu0 }
  0xe9   : > { %10767 = vst [vmem:[#allocation106_spill] sm:$0xff] %v7319_v52  ;;  %10768 = vst [vmem:[#allocation107_spill] sm:$0xff] %v7322_v18  ;;  %v7332_v0 = vrot.slane %v2580_v32, %v6613_v9  ;;  %v2610_v49 = vcombine.high %v7319_v52, %v7319_v52  ;;  %v2611_v41 = vcombine.high %v7322_v18, %v7322_v18 }
  0xea   : > { %10769 = vst [vmem:[#allocation108_spill] sm:$0xff] %v7329_v34  ;;  %v7341_v2 = vrot.slane %v2609_v28, %v6617_v16  ;;  %v7346_v60 = vrot.slane %v899_v13, %v6613_v9  ;;  %v7349_v32 = vrot.slane %v900_v46, %v6613_v9  ;;  %v7362_v13 = vrot.slane %v901_v55, %v6613_v9 }
  0xeb   : > { %10770 = vst [vmem:[#allocation109_spill] sm:$0xff] %v7332_v0  ;;  %v7354_v25 = vrot.slane %v2611_v41, %v6617_v16  ;;  %v7359_v43 = vrot.slane %v2610_v49, %v6617_v16  ;;  %v2627_v57 = vrot.slane %v2613_v15, %v6613_v9  ;;  %v7372_v28 = vrot.slane %v2620_v59, %v6613_v9 }
  0xec   : > { %10771 = vst [vmem:[#allocation110_spill] sm:$0xff] %v7341_v2  ;;  %10772 = vst [vmem:[#allocation111_spill] sm:$0xff] %v7346_v60  ;;  %v934_v49 = vcombine.high %v176_v6, %v176_v6  ;;  %v2662_v0 = vcombine.high %v244_v35, %v244_v35  ;;  %v2669_v46 = vrot.slane %v244_v35, %v6613_v9 }
  0xed   : > { %10773 = vst [vmem:[#allocation112_spill] sm:$0xff] %v7349_v32  ;;  %10774 = vst [vmem:[#allocation113_spill] sm:$0xff] %v7354_v25  ;;  %v2628_v25 = vcombine.high %v2620_v59, %v2620_v59  ;;  %v2629_v2 = vcombine.high %v2627_v57, %v2627_v57  ;;  %v7379_v52 = vrot.slane %v2627_v57, %v6613_v9 }
  0xee   : > { %10775 = vst [vmem:[#allocation114_spill] sm:$0xff] %v7359_v43  ;;  %10776 = vst [vmem:[#allocation115_spill] sm:$0xff] %v7362_v13  ;;  %v941_v43 = vrot.slane %v176_v6, %v6613_v9  ;;  %v2658_v59 = vcombine.high %v7372_v28, %v7372_v28  ;;  %v948_v55 = vrot.slane %v934_v49, %v6613_v9 }
  0xef   : > { %10777 = vst [vmem:[#allocation116_spill] sm:$0xff] %v7372_v28  ;;  %10778 = vst [vmem:[#allocation117_spill] sm:$0xff] %v7379_v52  ;;  %v7382_v41 = vrot.slane %v2628_v25, %v6613_v9  ;;  %v7393_v35 = vrot.slane %v2629_v2, %v6613_v9  ;;  %v2659_v57 = vcombine.high %v7379_v52, %v7379_v52  ;;  %v177_v2 = vpop.trf.xlu0 }
  0xf0   : > { %v949_v18 = vcombine.high %v941_v43, %v941_v43  ;;  %v7390_v6 = vrot.slane %v941_v43, %v6613_v9  ;;  %v7402_v15 = vrot.slane %v2658_v59, %v6617_v16  ;;  %v950_v43 = vcombine.high %v948_v55, %v948_v55 }
  0xf1   : > { %10779 = vst [vmem:[#allocation118_spill] sm:$0xff] %v7382_v41  ;;  %10781 = vst [vmem:[#allocation120_spill] sm:$0xff] %v7393_v35  ;;  %v2660_v25 = vcombine.high %v7382_v41, %v7382_v41  ;;  %v7407_v13 = vrot.slane %v948_v55, %v6613_v9  ;;  %v7417_v59 = vrot.slane %v2659_v57, %v6617_v16 }
  0xf2   : > { %10780 = vst [vmem:[#allocation119_spill] sm:$0xff] %v7390_v6  ;;  %10782 = vst [vmem:[#allocation121_spill] sm:$0xff] %v7402_v15  ;;  %v245_v15 = vpop.trf.xlu1  ;;  %v7420_v49 = vrot.slane %v949_v18, %v6613_v9  ;;  %v7423_v55 = vrot.slane %v950_v43, %v6613_v9  ;;  %v2676_v60 = vrot.slane %v2662_v0, %v6613_v9 }
  0xf3   : > { %10783 = vst [vmem:[#allocation122_spill] sm:$0xff] %v7407_v13  ;;  %v7412_v28 = vrot.slane %v2660_v25, %v6617_v16  ;;  %10785 = vst [vmem:[#allocation124_spill] sm:$0xff] %v7417_v59  ;;  %v7431_v44 = vrot.slane %v2669_v46, %v6613_v9  ;;  %v983_v57 = vcombine.high %v177_v2, %v177_v2 }
  0xf4   : > { %10786 = vst [vmem:[#allocation125_spill] sm:$0xff] %v7420_v49  ;;  %10787 = vst [vmem:[#allocation126_spill] sm:$0xff] %v7423_v55  ;;  %v990_v59 = vrot.slane %v177_v2, %v6613_v9  ;;  %v2711_v35 = vcombine.high %v245_v15, %v245_v15  ;;  %v2678_v52 = vcombine.high %v2676_v60, %v2676_v60 }
  0xf5   : > { %10784 = vst [vmem:[#allocation123_spill] sm:$0xff] %v7412_v28  ;;  %v2677_v28 = vcombine.high %v2669_v46, %v2669_v46  ;;  %10788 = vst [vmem:[#allocation127_spill] sm:$0xff] %v7431_v44  ;;  %v7439_v6 = vrot.slane %v2676_v60, %v6613_v9  ;;  %v2707_v46 = vcombine.high %v7431_v44, %v7431_v44 }
  0xf6   : > { %v997_v18 = vrot.slane %v983_v57, %v6613_v9  ;;  %v998_v13 = vcombine.high %v990_v59, %v990_v59  ;;  %v7450_v43 = vrot.slane %v990_v59, %v6613_v9  ;;  %v7453_v2 = vrot.slane %v2678_v52, %v6613_v9  ;;  %v178_v52 = vpop.trf.xlu0 }
  0xf7   : > { %10789 = vst [vmem:[#allocation128_spill] sm:$0xff] %v7439_v6  ;;  %v7442_v0 = vrot.slane %v2677_v28, %v6613_v9  ;;  %v2708_v60 = vcombine.high %v7439_v6, %v7439_v6  ;;  %v7462_v25 = vrot.slane %v2707_v46, %v6617_v16  ;;  %v2718_v49 = vrot.slane %v245_v15, %v6613_v9 }
  0xf8   : > { %10791 = vst [vmem:[#allocation130_spill] sm:$0xff] %v7450_v43  ;;  %10792 = vst [vmem:[#allocation131_spill] sm:$0xff] %v7453_v2  ;;  %v999_v59 = vcombine.high %v997_v18, %v997_v18  ;;  %v7467_v44 = vrot.slane %v997_v18, %v6613_v9  ;;  %v7480_v57 = vrot.slane %v998_v13, %v6613_v9 }
  0xf9   : > { %10790 = vst [vmem:[#allocation129_spill] sm:$0xff] %v7442_v0  ;;  %v2709_v28 = vcombine.high %v7442_v0, %v7442_v0  ;;  %10793 = vst [vmem:[#allocation132_spill] sm:$0xff] %v7462_v25  ;;  %v7477_v46 = vrot.slane %v2708_v60, %v6617_v16  ;;  %v246_v25 = vpop.trf.xlu1  ;;  %v2725_v55 = vrot.slane %v2711_v35, %v6613_v9 }
  0xfa   : > { %10794 = vst [vmem:[#allocation133_spill] sm:$0xff] %v7467_v44  ;;  %10797 = vst [vmem:[#allocation136_spill] sm:$0xff] %v7480_v57  ;;  %v7483_v18 = vrot.slane %v999_v59, %v6613_v9  ;;  %v1032_v2 = vcombine.high %v178_v52, %v178_v52  ;;  %v1039_v60 = vrot.slane %v178_v52, %v6613_v9 }
  0xfb   : > { %v7472_v41 = vrot.slane %v2709_v28, %v6617_v16  ;;  %10796 = vst [vmem:[#allocation135_spill] sm:$0xff] %v7477_v46  ;;  %v2760_v46 = vcombine.high %v246_v25, %v246_v25  ;;  %v2726_v6 = vcombine.high %v2718_v49, %v2718_v49  ;;  %v2727_v43 = vcombine.high %v2725_v55, %v2725_v55 }
  0xfc   : > { %10798 = vst [vmem:[#allocation137_spill] sm:$0xff] %v7483_v18  ;;  %v7498_v28 = vrot.slane %v2718_v49, %v6613_v9  ;;  %v7501_v15 = vrot.slane %v2725_v55, %v6613_v9  ;;  %v1046_v35 = vrot.slane %v1032_v2, %v6613_v9  ;;  %v1047_v52 = vcombine.high %v1039_v60, %v1039_v60 }
  0xfd   : > { %10795 = vst [vmem:[#allocation134_spill] sm:$0xff] %v7472_v41  ;;  %v2767_v41 = vrot.slane %v246_v25, %v6613_v9  ;;  %v7505_v44 = vrot.slane %v1039_v60, %v6613_v9  ;;  %v2774_v13 = vrot.slane %v2760_v46, %v6613_v9  ;;  %v7509_v59 = vrot.slane %v2726_v6, %v6613_v9 }
  0xfe   : > { %10799 = vst [vmem:[#allocation138_spill] sm:$0xff] %v7498_v28  ;;  %10800 = vst [vmem:[#allocation139_spill] sm:$0xff] %v7501_v15  ;;  %v7512_v25 = vrot.slane %v2727_v43, %v6613_v9  ;;  %v2756_v49 = vcombine.high %v7498_v28, %v7498_v28  ;;  %v2757_v55 = vcombine.high %v7501_v15, %v7501_v15  ;;  %v197_v28 = vpop.trf.xlu0 }
  0xff   : > { %10801 = vst [vmem:[#allocation140_spill] sm:$0xff] %v7505_v44  ;;  %10802 = vst [vmem:[#allocation141_spill] sm:$0xff] %v7509_v59  ;;  %v1048_v18 = vcombine.high %v1046_v35, %v1046_v35  ;;  %v7523_v46 = vrot.slane %v1046_v35, %v6613_v9  ;;  %v2758_v6 = vcombine.high %v7509_v59, %v7509_v59 }
 0x100   : > { %10803 = vst [vmem:[#allocation142_spill] sm:$0xff] %v7512_v25  ;;  %v7532_v0 = vrot.slane %v2756_v49, %v6617_v16  ;;  %v7537_v60 = vrot.slane %v2757_v55, %v6617_v16  ;;  %v7540_v35 = vrot.slane %v1047_v52, %v6613_v9  ;;  %v2775_v2 = vcombine.high %v2767_v41, %v2767_v41  ;;  %v265_v25 = vpop.trf.xlu1 }
 0x101   : > { %10804 = vst [vmem:[#allocation143_spill] sm:$0xff] %v7523_v46  ;;  %v7543_v15 = vrot.slane %v1048_v18, %v6613_v9  ;;  %v7546_v43 = vrot.slane %v2758_v6, %v6617_v16  ;;  %v2776_v18 = vcombine.high %v2774_v13, %v2774_v13  ;;  %v7560_v6 = vrot.slane %v2774_v13, %v6613_v9 }
 0x102   : > { %10805 = vst [vmem:[#allocation144_spill] sm:$0xff] %v7532_v0  ;;  %10806 = vst [vmem:[#allocation145_spill] sm:$0xff] %v7537_v60  ;;  %v7557_v60 = vrot.slane %v2767_v41, %v6613_v9  ;;  %v7563_v49 = vrot.slane %v2775_v2, %v6613_v9  ;;  %v1225_v44 = vcombine.high %v197_v28, %v197_v28 }
 0x103   : > { %10807 = vst [vmem:[#allocation146_spill] sm:$0xff] %v7540_v35  ;;  %10808 = vst [vmem:[#allocation147_spill] sm:$0xff] %v7543_v15  ;;  %v1232_v57 = vrot.slane %v197_v28, %v6613_v9  ;;  %v7567_v46 = vrot.slane %v2776_v18, %v6613_v9  ;;  %v2825_v41 = vcombine.high %v265_v25, %v265_v25 }
 0x104   : > { %10809 = vst [vmem:[#allocation148_spill] sm:$0xff] %v7546_v43  ;;  %10810 = vst [vmem:[#allocation149_spill] sm:$0xff] %v7557_v60  ;;  %v2805_v55 = vcombine.high %v7557_v60, %v7557_v60  ;;  %v2806_v13 = vcombine.high %v7560_v6, %v7560_v6  ;;  %v2807_v2 = vcombine.high %v7563_v49, %v7563_v49  ;;  %v198_v43 = vpop.trf.xlu0  ;;  %v266_v47 = vpop.trf.xlu1 }
 0x105   : > { %10811 = vst [vmem:[#allocation150_spill] sm:$0xff] %v7560_v6  ;;  %10812 = vst [vmem:[#allocation151_spill] sm:$0xff] %v7563_v49  ;;  %v1239_v60 = vrot.slane %v1225_v44, %v6613_v9  ;;  %v1240_v49 = vcombine.high %v1232_v57, %v1232_v57  ;;  %v7596_v28 = vrot.slane %v1232_v57, %v6613_v9 }
 0x106   : > { %10813 = vst [vmem:[#allocation152_spill] sm:$0xff] %v7567_v46  ;;  %v7584_v35 = vrot.slane %v2805_v55, %v6617_v16  ;;  %v7590_v0 = vrot.slane %v2807_v2, %v6617_v16  ;;  %v7593_v15 = vrot.slane %v2806_v13, %v6617_v16  ;;  %v2832_v6 = vrot.slane %v265_v25, %v6613_v9 }
 0x107   : > { %v1241_v18 = vcombine.high %v1239_v60, %v1239_v60  ;;  %v7599_v55 = vrot.slane %v1239_v60, %v6613_v9  ;;  %v2839_v52 = vrot.slane %v2825_v41, %v6613_v9  ;;  %v7604_v44 = vrot.slane %v1240_v49, %v6613_v9 }
 0x108   : > { %10814 = vst [vmem:[#allocation153_spill] sm:$0xff] %v7584_v35  ;;  %10815 = vst [vmem:[#allocation154_spill] sm:$0xff] %v7590_v0  ;;  %v1270_v2 = vcombine.high %v7596_v28, %v7596_v28  ;;  %v2840_v41 = vcombine.high %v2832_v6, %v2832_v6  ;;  %v7632_v25 = vrot.slane %v2832_v6, %v6613_v9 }
 0x109   : > { %10816 = vst [vmem:[#allocation155_spill] sm:$0xff] %v7593_v15  ;;  %v1274_v15 = vcombine.high %v198_v43, %v198_v43  ;;  %v7611_v57 = vrot.slane %v1241_v18, %v6613_v9  ;;  %v1271_v60 = vcombine.high %v7599_v55, %v7599_v55  ;;  %v1272_v49 = vcombine.high %v7604_v44, %v7604_v44 }
 0x10a   : > { %v7622_v0 = vrot.slane %v1270_v2, %v6617_v16  ;;  %v2841_v13 = vcombine.high %v2839_v52, %v2839_v52  ;;  %v7638_v46 = vrot.slane %v2839_v52, %v6613_v9  ;;  %v7641_v2 = vrot.slane %v2840_v41, %v6613_v9  ;;  %v199_v52 = vpop.trf.xlu0 }
 0x10b   : > { %v1273_v18 = vcombine.high %v7611_v57, %v7611_v57  ;;  %v7629_v59 = vrot.slane %v1271_v60, %v6617_v16  ;;  %v7635_v32 = vrot.slane %v1272_v49, %v6617_v16  ;;  %v2870_v60 = vcombine.high %v7632_v25, %v7632_v25 }
 0x10c   : > { %v7644_v34 = vrot.slane %v2841_v13, %v6613_v9  ;;  %v1281_v49 = vrot.slane %v198_v43, %v6613_v9  ;;  %v1288_v6 = vrot.slane %v1274_v15, %v6613_v9  ;;  %v2874_v58 = vcombine.high %v266_v47, %v266_v47 }
 0x10d   : > { %v7647_v35 = vrot.slane %v1273_v18, %v6617_v16  ;;  %v7663_v12 = vrot.slane %v2870_v60, %v6617_v16  ;;  %v2881_v41 = vrot.slane %v266_v47, %v6613_v9  ;;  %v1323_v56 = vcombine.high %v199_v52, %v199_v52 }
 0x10e   : > { %v1289_v43 = vcombine.high %v1281_v49, %v1281_v49  ;;  %v7667_v63 = vrot.slane %v1281_v49, %v6613_v9  ;;  %v1330_v13 = vrot.slane %v199_v52, %v6613_v9  ;;  %v1290_v51 = vcombine.high %v1288_v6, %v1288_v6 }
 0x10f   : > { %v7672_v18 = vrot.slane %v1288_v6, %v6613_v9  ;;  %v2888_v49 = vrot.slane %v2874_v58, %v6613_v9  ;;  %v2889_v29 = vcombine.high %v2881_v41, %v2881_v41  ;;  %v7683_v47 = vrot.slane %v2881_v41, %v6613_v9 }
 0x110   : > { %v7675_v24 = vrot.slane %v1289_v43, %v6613_v9  ;;  %v1319_v15 = vcombine.high %v7667_v63, %v7667_v63  ;;  %v7686_v52 = vrot.slane %v1290_v51, %v6613_v9  ;;  %v1338_v40 = vcombine.high %v1330_v13, %v1330_v13 }
 0x111   : > { %10817 = vst [vmem:[#allocation156_spill] sm:$0xff] %v7672_v18  ;;  %v1320_v6 = vcombine.high %v7672_v18, %v7672_v18  ;;  %v2890_v41 = vcombine.high %v2888_v49, %v2888_v49  ;;  %v7700_v45 = vrot.slane %v2888_v49, %v6613_v9  ;;  %v2919_v49 = vcombine.high %v7683_v47, %v7683_v47 }
 0x112   : > { %10818 = vst [vmem:[#allocation157_spill] sm:$0xff] %v7686_v52  ;;  %v1321_v43 = vcombine.high %v7675_v24, %v7675_v24  ;;  %v7695_v60 = vrot.slane %v1319_v15, %v6617_v16  ;;  %v1322_v51 = vcombine.high %v7686_v52, %v7686_v52  ;;  %v7713_v15 = vrot.slane %v2889_v29, %v6613_v9 }
 0x113   : > { %10819 = vst [vmem:[#allocation158_spill] sm:$0xff] %v7700_v45  ;;  %v7710_v14 = vrot.slane %v1320_v6, %v6617_v16  ;;  %v7716_v58 = vrot.slane %v2890_v41, %v6613_v9  ;;  %v1337_v29 = vrot.slane %v1323_v56, %v6613_v9  ;;  %v200_v41 = vpop.trf.xlu0  ;;  %v7737_v21 = vrot.slane %v2919_v49, %v6617_v16 }
 0x114   : > { %v7705_v36 = vrot.slane %v1321_v43, %v6617_v16  ;;  %v7723_v43 = vrot.slane %v1322_v51, %v6617_v16  ;;  %v7740_v6 = vrot.slane %v1330_v13, %v6613_v9  ;;  %v1372_v54 = vcombine.high %v200_v41, %v200_v41 }
 0x115   : > { %10820 = vst [vmem:[#allocation159_spill] sm:$0xff] %v7710_v14  ;;  %10821 = vst [vmem:[#allocation160_spill] sm:$0xff] %v7716_v58  ;;  %v267_v14 = vpop.trf.xlu1  ;;  %v7743_v56 = vrot.slane %v1337_v29, %v6613_v9  ;;  %v1379_v8 = vrot.slane %v200_v41, %v6613_v9  ;;  %v7748_v4 = vrot.slane %v1338_v40, %v6613_v9 }
 0x116   : > { %10822 = vst [vmem:[#allocation161_spill] sm:$0xff] %v7723_v43  ;;  %v1339_v43 = vcombine.high %v1337_v29, %v1337_v29  ;;  %10823 = vst [vmem:[#allocation162_spill] sm:$0xff] %v7740_v6  ;;  %v2923_v45 = vcombine.high %v267_v14, %v267_v14  ;;  %v2930_v17 = vrot.slane %v267_v14, %v6613_v9 }
 0x117   : > { %10824 = vst [vmem:[#allocation163_spill] sm:$0xff] %v7743_v56  ;;  %v1368_v51 = vcombine.high %v7740_v6, %v7740_v6  ;;  %v1369_v13 = vcombine.high %v7743_v56, %v7743_v56  ;;  %v1370_v40 = vcombine.high %v7748_v4, %v7748_v4 }
 0x118   : > { %v7751_v49 = vrot.slane %v1339_v43, %v6613_v9  ;;  %v2937_v41 = vrot.slane %v2923_v45, %v6613_v9  ;;  %v2938_v52 = vcombine.high %v2930_v17, %v2930_v17  ;;  %v7777_v56 = vrot.slane %v2930_v17, %v6613_v9 }
 0x119   : > { %v7769_v18 = vrot.slane %v1368_v51, %v6617_v16  ;;  %v7774_v14 = vrot.slane %v1369_v13, %v6617_v16  ;;  %v7780_v6 = vrot.slane %v1370_v40, %v6617_v16  ;;  %v1386_v40 = vrot.slane %v1372_v54, %v6613_v9 }
 0x11a   : > { %10825 = vst [vmem:[#allocation164_spill] sm:$0xff] %v7751_v49  ;;  %v1371_v43 = vcombine.high %v7751_v49, %v7751_v49  ;;  %v2939_v45 = vcombine.high %v2937_v41, %v2937_v41  ;;  %v7786_v62 = vrot.slane %v2937_v41, %v6613_v9  ;;  %v7789_v51 = vrot.slane %v2938_v52, %v6613_v9 }
 0x11b   : > { %10826 = vst [vmem:[#allocation165_spill] sm:$0xff] %v7769_v18  ;;  %10827 = vst [vmem:[#allocation166_spill] sm:$0xff] %v7774_v14  ;;  %v2968_v13 = vcombine.high %v7777_v56, %v7777_v56  ;;  %v268_v14 = vpop.trf.xlu1  ;;  %v1387_v54 = vcombine.high %v1379_v8, %v1379_v8  ;;  %v1388_v49 = vcombine.high %v1386_v40, %v1386_v40 }
 0x11c   : > { %10828 = vst [vmem:[#allocation167_spill] sm:$0xff] %v7780_v6  ;;  %v7783_v58 = vrot.slane %v1371_v43, %v6617_v16  ;;  %10830 = vst [vmem:[#allocation169_spill] sm:$0xff] %v7786_v62  ;;  %v7792_v29 = vrot.slane %v2939_v45, %v6613_v9  ;;  %v7813_v6 = vrot.slane %v1379_v8, %v6613_v9 }
 0x11d   : > { %10831 = vst [vmem:[#allocation170_spill] sm:$0xff] %v7789_v51  ;;  %v7810_v17 = vrot.slane %v2968_v13, %v6617_v16  ;;  %v7816_v43 = vrot.slane %v1386_v40, %v6613_v9  ;;  %v2972_v41 = vcombine.high %v268_v14, %v268_v14  ;;  %v2979_v52 = vrot.slane %v268_v14, %v6613_v9 }
 0x11e   : > { %10829 = vst [vmem:[#allocation168_spill] sm:$0xff] %v7783_v58  ;;  %10832 = vst [vmem:[#allocation171_spill] sm:$0xff] %v7792_v29  ;;  %v7820_v18 = vrot.slane %v1387_v54, %v6613_v9  ;;  %v7823_v45 = vrot.slane %v1388_v49, %v6613_v9  ;;  %v4896_v13 = vrot.slane %v7641_v2, %v6617_v16 }
 0x11f   : > { %10833 = vst [vmem:[#allocation172_spill] sm:$0xff] %v7810_v17  ;;  %10834 = vst [vmem:[#allocation173_spill] sm:$0xff] %v7813_v6  ;;  %v1417_v8 = vcombine.high %v7813_v6, %v7813_v6  ;;  %v1418_v40 = vcombine.high %v7816_v43, %v7816_v43  ;;  %v2986_v14 = vrot.slane %v2972_v41, %v6613_v9 }
 0x120   : > { %10835 = vst [vmem:[#allocation174_spill] sm:$0xff] %v7816_v43  ;;  %10836 = vst [vmem:[#allocation175_spill] sm:$0xff] %v7820_v18  ;;  %v1419_v49 = vcombine.high %v7820_v18, %v7820_v18  ;;  %v1420_v54 = vcombine.high %v7823_v45, %v7823_v45  ;;  %v2987_v43 = vcombine.high %v2979_v52, %v2979_v52 }
 0x121   : > { %10837 = vst [vmem:[#allocation176_spill] sm:$0xff] %v7823_v45  ;;  %v7844_v17 = vrot.slane %v1417_v8, %v6617_v16  ;;  %v7847_v58 = vrot.slane %v1418_v40, %v6617_v16  ;;  %v7857_v62 = vrot.slane %v2979_v52, %v6613_v9  ;;  %v10843_v29 = vrot.slane %v7596_v28, %v6617_v16 }
 0x122   : > { %v7851_v6 = vrot.slane %v1419_v49, %v6617_v16  ;;  %v7854_v51 = vrot.slane %v1420_v54, %v6617_v16  ;;  %v2988_v40 = vcombine.high %v2986_v14, %v2986_v14  ;;  %v7868_v41 = vrot.slane %v2987_v43, %v6613_v9 }
 0x123   : > { %10838 = vst [vmem:[#allocation177_spill] sm:$0xff] %v7844_v17  ;;  %10839 = vst [vmem:[#allocation178_spill] sm:$0xff] %v7847_v58  ;;  %v5530_v8 = vsel %vm5529_vm0, %v6621_v19, %v10843_v29  ;;  %v7865_v58 = vrot.slane %v2986_v14, %v6613_v9  ;;  %v10846_v49 = vrot.slane %v7604_v44, %v6617_v16  ;;  %v201_v29 = vpop.trf.xlu0 }
 0x124   : > { %10840 = vst [vmem:[#allocation179_spill] sm:$0xff] %v7851_v6  ;;  %10841 = vst [vmem:[#allocation180_spill] sm:$0xff] %v7854_v51  ;;  %v3017_v54 = vcombine.high %v7857_v62, %v7857_v62  ;;  %v7880_v14 = vrot.slane %v2988_v40, %v6613_v9  ;;  %v269_v51 = vpop.trf.xlu1  ;;  %v10849_v40 = vrot.slane %v6625_v22, %v6617_v16 }
 0x125   : > { %10842 = vst [vmem:[#allocation181_spill] sm:$0xff] %v7857_v62  ;;  %10844 = vst [vmem:[#allocation182_spill] sm:$0xff] %v7865_v58  ;;  %v5531_v52 = vsel %vm5529_vm0, %v6631_v27, %v10846_v49  ;;  %v10850_v43 = vrot.slane %v6639_v31, %v6617_v16  ;;  %v1421_v58 = vcombine.high %v201_v29, %v201_v29 }
 0x126   : > { %10845 = vst [vmem:[#allocation183_spill] sm:$0xff] %v7868_v41  ;;  %10847 = vst [vmem:[#allocation184_spill] sm:$0xff] %v7880_v14  ;;  %v7889_v45 = vrot.slane %v3017_v54, %v6617_v16  ;;  %v5659_v6 = vsel %vm5658_vm1, %v5530_v8, %v10849_v40  ;;  %v10851_v54 = vrot.slane %v7632_v25, %v6617_v16 }
 0x127   : > { %v5660_v44 = vsel %vm5658_vm1, %v5531_v52, %v10850_v43  ;;  %v1428_v22 = vrot.slane %v201_v29, %v6613_v9  ;;  %v3021_v8 = vcombine.high %v269_v51, %v269_v51  ;;  %v3028_v40 = vrot.slane %v269_v51, %v6613_v9  ;;  %v202_v49 = vpop.trf.xlu0 }
 0x128   : > { %10848 = vst [vmem:[#allocation185_spill] sm:$0xff] %v7889_v45  ;;  %v5788_v45 = vsel %vm5787_vm2, %v5659_v6, %v10851_v54  ;;  %v5789_v28 = vsel %vm5787_vm2, %v5660_v44, %v4896_v13  ;;  %v1435_v31 = vrot.slane %v1421_v58, %v6613_v9  ;;  %v10852_v52 = vcombine.high %v7641_v2, %v7641_v2 }
 0x129   : > { %v5948_v17 = vcombine.low %v5788_v45, %v5789_v28  ;;  %v10853_v25 = vcombine.high %v6621_v19, %v6621_v19  ;;  %v10854_v45 = vcombine.high %v6631_v27, %v6631_v27  ;;  %v1436_v51 = vcombine.high %v1428_v22, %v1428_v22 }
 0x12a   : > { %v4904_v43 = vrot.slane %v10852_v52, %v6617_v16  ;;  %v7926_v58 = vrot.slane %v1428_v22, %v6613_v9  ;;  %v3035_v2 = vrot.slane %v3021_v8, %v6613_v9  ;;  %v3036_v28 = vcombine.high %v3028_v40, %v3028_v40 }
 0x12b   : > { %v5532_v6 = vsel %vm5529_vm0, %v10853_v25, %v7622_v0  ;;  %v5533_v13 = vsel %vm5529_vm0, %v10854_v45, %v7635_v32  ;;  %5980 = vxpose.xlu0.b32.start [1/16] (narrow) %v5948_v17, 8  ;;  %v1437_v29 = vcombine.high %v1435_v31, %v1435_v31  ;;  %v7930_v44 = vrot.slane %v1435_v31, %v6613_v9 }
 0x12c   : > { %v7933_v19 = vrot.slane %v3028_v40, %v6613_v9  ;;  %v5661_v27 = vsel %vm5658_vm1, %v5532_v6, %v6664_v42  ;;  %v7938_v32 = vrot.slane %v1436_v51, %v6613_v9  ;;  %v1466_v0 = vcombine.high %v7926_v58, %v7926_v58  ;;  %v270_v51 = vpop.trf.xlu1 }
 0x12d   : > { %v3037_v54 = vcombine.high %v3035_v2, %v3035_v2  ;;  %v7945_v22 = vrot.slane %v1437_v29, %v6613_v9  ;;  %v1467_v8 = vcombine.high %v7930_v44, %v7930_v44  ;;  %v7952_v42 = vrot.slane %v3035_v2, %v6613_v9 }
 0x12e   : > { %v1468_v31 = vcombine.high %v7938_v32, %v7938_v32  ;;  %v7959_v25 = vrot.slane %v1466_v0, %v6617_v16  ;;  %v7962_v6 = vrot.slane %v3036_v28, %v6613_v9  ;;  %v3066_v28 = vcombine.high %v7933_v19, %v7933_v19 }
 0x12f   : > { %v1469_v45 = vcombine.high %v7945_v22, %v7945_v22  ;;  %v7969_v2 = vrot.slane %v1467_v8, %v6617_v16  ;;  %v7972_v29 = vrot.slane %v3037_v54, %v6613_v9  ;;  %v5662_v0 = vsel %vm5658_vm1, %v5533_v13, %v6671_v48 }
 0x130   : > { %v7975_v40 = vrot.slane %v1468_v31, %v6617_v16  ;;  %v7993_v14 = vrot.slane %v3066_v28, %v6617_v16  ;;  %v5790_v52 = vsel %vm5787_vm2, %v5661_v27, %v7663_v12  ;;  %v5791_v41 = vsel %vm5787_vm2, %v5662_v0, %v4904_v43 }
 0x131   : > { %v7984_v8 = vrot.slane %v1469_v45, %v6617_v16  ;;  %v1470_v45 = vcombine.high %v202_v49, %v202_v49  ;;  %v1477_v54 = vrot.slane %v202_v49, %v6613_v9  ;;  %v3070_v62 = vcombine.high %v270_v51, %v270_v51 }
 0x132   : > { %v3077_v31 = vrot.slane %v270_v51, %v6613_v9  ;;  %v5949_v18 = vcombine.low %v5790_v52, %v5791_v41  ;;  %v4912_v28 = vrot.slane %v7644_v34, %v6617_v16  ;;  %v10855_v48 = vrot.slane %v7599_v55, %v6617_v16 }
 0x133   : > { %v1484_v17 = vrot.slane %v1470_v45, %v6613_v9  ;;  %v1485_v13 = vcombine.high %v1477_v54, %v1477_v54  ;;  %v8011_v43 = vrot.slane %v1477_v54, %v6613_v9  ;;  %v3084_v49 = vrot.slane %v3070_v62, %v6613_v9 }
 0x134   : > { %v5534_v12 = vsel %vm5529_vm0, %v6628_v26, %v10855_v48  ;;  %v3085_v27 = vcombine.high %v3077_v31, %v3077_v31  ;;  %5981 = vxpose.xlu0.b32.cont [2/16] (narrow) %v5949_v18, 8  ;;  %v8018_v51 = vrot.slane %v3077_v31, %v6613_v9  ;;  %v10858_v55 = vrot.slane %v7611_v57, %v6617_v16 }
 0x135   : > { %10856 = vst [vmem:[#allocation186_spill] sm:$0xff] %v8011_v43  ;;  %v1486_v41 = vcombine.high %v1484_v17, %v1484_v17  ;;  %v8015_v52 = vrot.slane %v1484_v17, %v6613_v9  ;;  %v8026_v54 = vrot.slane %v1485_v13, %v6613_v9  ;;  %v1515_v62 = vcombine.high %v8011_v43, %v8011_v43 }
 0x136   : > { %v5535_v0 = vsel %vm5529_vm0, %v6644_v33, %v10858_v55  ;;  %v3086_v17 = vcombine.high %v3084_v49, %v3084_v49  ;;  %v8040_v48 = vrot.slane %v3084_v49, %v6613_v9 }
 0x137   : > { %10857 = vst [vmem:[#allocation187_spill] sm:$0xff] %v8015_v52  ;;  %10859 = vst [vmem:[#allocation188_spill] sm:$0xff] %v8026_v54  ;;  %v8033_v45 = vrot.slane %v1486_v41, %v6613_v9  ;;  %v1516_v31 = vcombine.high %v8015_v52, %v8015_v52  ;;  %v1517_v13 = vcombine.high %v8026_v54, %v8026_v54  ;;  %v203_v54 = vpop.trf.xlu0 }
 0x138   : > { %10861 = vst [vmem:[#allocation190_spill] sm:$0xff] %v8040_v48  ;;  %v8047_v18 = vrot.slane %v1515_v62, %v6617_v16  ;;  %v8050_v41 = vrot.slane %v3085_v27, %v6613_v9  ;;  %v8060_v52 = vrot.slane %v3086_v17, %v6613_v9  ;;  %v3115_v62 = vcombine.high %v8018_v51, %v8018_v51 }
 0x139   : > { %10860 = vst [vmem:[#allocation189_spill] sm:$0xff] %v8033_v45  ;;  %v1518_v43 = vcombine.high %v8033_v45, %v8033_v45  ;;  %v8057_v49 = vrot.slane %v1516_v31, %v6617_v16  ;;  %v8063_v55 = vrot.slane %v1517_v13, %v6617_v16  ;;  %v10869_v17 = vrot.slane %v6653_v37, %v6617_v16 }
 0x13a   : > { %10862 = vst [vmem:[#allocation191_spill] sm:$0xff] %v8047_v18  ;;  %10864 = vst [vmem:[#allocation193_spill] sm:$0xff] %v8060_v52  ;;  %v8081_v45 = vrot.slane %v3115_v62, %v6617_v16  ;;  %v10870_v13 = vrot.slane %v7638_v46, %v6617_v16  ;;  %v1519_v52 = vcombine.high %v203_v54, %v203_v54 }
 0x13b   : > { %10863 = vst [vmem:[#allocation192_spill] sm:$0xff] %v8057_v49  ;;  %10865 = vst [vmem:[#allocation194_spill] sm:$0xff] %v8063_v55  ;;  %v8072_v57 = vrot.slane %v1518_v43, %v6617_v16  ;;  %v271_v49 = vpop.trf.xlu1  ;;  %v10868_v43 = vrot.slane %v6636_v30, %v6617_v16  ;;  %v5664_v31 = vsel %vm5658_vm1, %v5535_v0, %v10869_v17 }
 0x13c   : > { %10867 = vst [vmem:[#allocation196_spill] sm:$0xff] %v8081_v45  ;;  %v5793_v62 = vsel %vm5787_vm2, %v5664_v31, %v4912_v28  ;;  %v1526_v27 = vrot.slane %v203_v54, %v6613_v9  ;;  %v3119_v45 = vcombine.high %v271_v49, %v271_v49  ;;  %v3126_v30 = vrot.slane %v271_v49, %v6613_v9 }
 0x13d   : > { %10866 = vst [vmem:[#allocation195_spill] sm:$0xff] %v8072_v57  ;;  %v5663_v18 = vsel %vm5658_vm1, %v5534_v12, %v10868_v43  ;;  %v10871_v12 = vcombine.high %v6653_v37, %v6653_v37  ;;  %v1533_v0 = vrot.slane %v1519_v52, %v6613_v9  ;;  %v10872_v28 = vcombine.high %v7638_v46, %v7638_v46 }
 0x13e   : > { %v5792_v57 = vsel %vm5787_vm2, %v5663_v18, %v10870_v13  ;;  %v1534_v17 = vcombine.high %v1526_v27, %v1526_v27  ;;  %v8106_v55 = vrot.slane %v1526_v27, %v6613_v9  ;;  %v3133_v18 = vrot.slane %v3119_v45, %v6613_v9 }
 0x13f   : > { %v5950_v48 = vcombine.low %v5792_v57, %v5793_v62  ;;  %v4280_v43 = vrot.slane %v10871_v12, %v6617_v16  ;;  %v4916_v54 = vrot.slane %v10872_v28, %v6617_v16  ;;  %v3134_v57 = vcombine.high %v3126_v30, %v3126_v30 }
 0x140   : > { %v8114_v49 = vrot.slane %v3126_v30, %v6613_v9  ;;  %v10873_v37 = vcombine.high %v7644_v34, %v7644_v34  ;;  %v1535_v31 = vcombine.high %v1533_v0, %v1533_v0  ;;  %v8121_v27 = vrot.slane %v1533_v0, %v6613_v9 }
 0x141   : > { %5982 = vxpose.xlu0.b32.cont [3/16] (narrow) %v5950_v48, 8  ;;  %v8124_v13 = vrot.slane %v1534_v17, %v6613_v9  ;;  %v1564_v46 = vcombine.high %v8106_v55, %v8106_v55  ;;  %v3135_v48 = vcombine.high %v3133_v18, %v3133_v18  ;;  %v8131_v62 = vrot.slane %v3133_v18, %v6613_v9 }
 0x142   : > { %v4920_v52 = vrot.slane %v10873_v37, %v6617_v16  ;;  %10874 = vst [vmem:[#allocation197_spill] sm:$0xff] %v8121_v27  ;;  %v8134_v34 = vrot.slane %v3134_v57, %v6613_v9  ;;  %v8137_v30 = vrot.slane %v1535_v31, %v6613_v9  ;;  %v1565_v12 = vcombine.high %v8121_v27, %v8121_v27 }
 0x143   : > { %10875 = vst [vmem:[#allocation198_spill] sm:$0xff] %v8124_v13  ;;  %10876 = vst [vmem:[#allocation199_spill] sm:$0xff] %v8131_v62  ;;  %v1566_v0 = vcombine.high %v8124_v13, %v8124_v13  ;;  %v8146_v28 = vrot.slane %v1564_v46, %v6617_v16  ;;  %v8151_v57 = vrot.slane %v3135_v48, %v6613_v9 }
 0x144   : > { %10877 = vst [vmem:[#allocation200_spill] sm:$0xff] %v8137_v30  ;;  %v3164_v37 = vcombine.high %v8114_v49, %v8114_v49  ;;  %v1567_v31 = vcombine.high %v8137_v30, %v8137_v30  ;;  %v8163_v46 = vrot.slane %v1565_v12, %v6617_v16  ;;  %v10882_v27 = vcombine.high %v6628_v26, %v6628_v26 }
 0x145   : > { %10878 = vst [vmem:[#allocation201_spill] sm:$0xff] %v8146_v28  ;;  %v8158_v45 = vrot.slane %v1566_v0, %v6617_v16  ;;  %v204_v28 = vpop.trf.xlu0 }
 0x146   : > { %10880 = vst [vmem:[#allocation203_spill] sm:$0xff] %v8163_v46  ;;  %v8174_v13 = vrot.slane %v1567_v31, %v6617_v16  ;;  %v8179_v17 = vrot.slane %v3164_v37, %v6617_v16  ;;  %v5536_v18 = vsel %vm5529_vm0, %v10882_v27, %v7629_v59  ;;  %v10883_v31 = vcombine.high %v6644_v33, %v6644_v33 }
 0x147   : > { %10879 = vst [vmem:[#allocation202_spill] sm:$0xff] %v8158_v45  ;;  %v272_v45 = vpop.trf.xlu1  ;;  %v1575_v12 = vrot.slane %v204_v28, %v6613_v9  ;;  %v5665_v37 = vsel %vm5658_vm1, %v5536_v18, %v6676_v50 }
 0x148   : > { %10881 = vst [vmem:[#allocation204_spill] sm:$0xff] %v8174_v13  ;;  %v5537_v0 = vsel %vm5529_vm0, %v10883_v31, %v7647_v35  ;;  %v1568_v13 = vcombine.high %v204_v28, %v204_v28  ;;  %v3168_v46 = vcombine.high %v272_v45, %v272_v45  ;;  %v3175_v62 = vrot.slane %v272_v45, %v6613_v9 }
 0x149   : > { %v5666_v48 = vsel %vm5658_vm1, %v5537_v0, %v4280_v43  ;;  %v5794_v26 = vsel %vm5787_vm2, %v5665_v37, %v4916_v54  ;;  %v1583_v33 = vcombine.high %v1575_v12, %v1575_v12  ;;  %v8202_v35 = vrot.slane %v1575_v12, %v6613_v9 }
 0x14a   : > { %v5795_v59 = vsel %vm5787_vm2, %v5666_v48, %v4920_v52  ;;  %v1582_v27 = vrot.slane %v1568_v13, %v6613_v9  ;;  %v3182_v28 = vrot.slane %v3168_v46, %v6613_v9  ;;  %v3183_v31 = vcombine.high %v3175_v62, %v3175_v62  ;;  %v205_v13 = vpop.trf.xlu0 }
 0x14b   : > { %v5951_v30 = vcombine.low %v5794_v26, %v5795_v59  ;;  %v8209_v45 = vrot.slane %v1583_v33, %v6613_v9  ;;  %v8212_v54 = vrot.slane %v3175_v62, %v6613_v9  ;;  %v1613_v52 = vcombine.high %v8202_v35, %v8202_v35 }
 0x14c   : > { %v1584_v50 = vcombine.high %v1582_v27, %v1582_v27  ;;  %v8206_v43 = vrot.slane %v1582_v27, %v6613_v9  ;;  %v3184_v18 = vcombine.high %v3182_v28, %v3182_v28  ;;  %v8219_v46 = vrot.slane %v3182_v28, %v6613_v9 }
 0x14d   : > { %5983 = vxpose.xlu0.b32.cont [4/16] (narrow) %v5951_v30, 8  ;;  %v1615_v62 = vcombine.high %v8209_v45, %v8209_v45  ;;  %v8231_v12 = vrot.slane %v1613_v52, %v6617_v16  ;;  %v8236_v26 = vrot.slane %v3183_v31, %v6613_v9  ;;  %v3213_v52 = vcombine.high %v8212_v54, %v8212_v54 }
 0x14e   : > { %10884 = vst [vmem:[#allocation205_spill] sm:$0xff] %v8219_v46  ;;  %v8222_v48 = vrot.slane %v1584_v50, %v6613_v9  ;;  %v1614_v0 = vcombine.high %v8206_v43, %v8206_v43  ;;  %v8239_v59 = vrot.slane %v3184_v18, %v6613_v9  ;;  %v10887_v18 = vrot.slane %v7667_v63, %v6617_v16 }
 0x14f   : > { %v8244_v33 = vrot.slane %v1615_v62, %v6617_v16  ;;  %v8269_v31 = vrot.slane %v3213_v52, %v6617_v16  ;;  %v10889_v52 = vrot.slane %v6691_v1, %v6617_v16  ;;  %v10890_v63 = vrot.slane %v6708_v10, %v6617_v16  ;;  %v273_v1 = vpop.trf.xlu1 }
 0x150   : > { %v1616_v27 = vcombine.high %v8222_v48, %v8222_v48  ;;  %v8249_v50 = vrot.slane %v1614_v0, %v6617_v16  ;;  %v5538_v37 = vsel %vm5529_vm0, %v6684_v61, %v10887_v18  ;;  %v5024_v0 = vrot.slane %v7962_v6, %v6617_v16 }
 0x151   : > { %v5667_v30 = vsel %vm5658_vm1, %v5538_v37, %v10889_v52  ;;  %v10893_v37 = vrot.slane %v7683_v47, %v6617_v16  ;;  %v10895_v52 = vrot.slane %v6886_v38, %v6617_v16  ;;  %v10897_v47 = vrot.slane %v7933_v19, %v6617_v16 }
 0x152   : > { %10885 = vst [vmem:[#allocation206_spill] sm:$0xff] %v8249_v50  ;;  %v8260_v62 = vrot.slane %v1616_v27, %v6617_v16  ;;  %v10888_v27 = vrot.slane %v7675_v24, %v6617_v16  ;;  %v10891_v24 = vrot.slane %v7926_v58, %v6617_v16  ;;  %v1617_v46 = vcombine.high %v205_v13, %v205_v13 }
 0x153   : > { %v5796_v10 = vsel %vm5787_vm2, %v5667_v30, %v10893_v37  ;;  %v3217_v38 = vcombine.high %v273_v1, %v273_v1  ;;  %v10899_v19 = vcombine.high %v6684_v61, %v6684_v61 }
 0x154   : > { %10886 = vst [vmem:[#allocation207_spill] sm:$0xff] %v8260_v62  ;;  %v5539_v28 = vsel %vm5529_vm0, %v6695_v3, %v10888_v27  ;;  %v5562_v27 = vsel %vm5529_vm0, %v6831_v11, %v10891_v24  ;;  %v10892_v62 = vrot.slane %v7938_v32, %v6617_v16  ;;  %v10896_v32 = vrot.slane %v6892_v5, %v6617_v16 }
 0x155   : > { %v5668_v18 = vsel %vm5658_vm1, %v5539_v28, %v10890_v63  ;;  %v10894_v28 = vrot.slane %v7713_v15, %v6617_v16  ;;  %v5691_v63 = vsel %vm5658_vm1, %v5562_v27, %v10895_v52  ;;  %v3224_v27 = vrot.slane %v273_v1, %v6613_v9 }
 0x156   : > { %v5563_v50 = vsel %vm5529_vm0, %v6848_v7, %v10892_v62  ;;  %v5820_v30 = vsel %vm5787_vm2, %v5691_v63, %v10897_v47  ;;  %v1631_v5 = vrot.slane %v1617_v46, %v6613_v9 }
 0x157   : > { %v5797_v58 = vsel %vm5787_vm2, %v5668_v18, %v10894_v28  ;;  %v5692_v62 = vsel %vm5658_vm1, %v5563_v50, %v10896_v32  ;;  %v1624_v28 = vrot.slane %v205_v13, %v6613_v9  ;;  %v10898_v50 = vcombine.high %v7713_v15, %v7713_v15 }
 0x158   : > { %v5952_v24 = vcombine.low %v5796_v10, %v5797_v58  ;;  %v5821_v37 = vsel %vm5787_vm2, %v5692_v62, %v5024_v0  ;;  %v5540_v0 = vsel %vm5529_vm0, %v10899_v19, %v7695_v60  ;;  %v10900_v13 = vcombine.high %v6695_v3, %v6695_v3  ;;  %v10922_v62 = vld [vmem:[#allocation3_spill] sm:$0xff] }
 0x159   : > { %v6044_v18 = vcombine.low %v5820_v30, %v5821_v37  ;;  %v4936_v10 = vrot.slane %v10898_v50, %v6617_v16  ;;  %v1632_v58 = vcombine.high %v1624_v28, %v1624_v28  ;;  %v8340_v46 = vrot.slane %v1624_v28, %v6613_v9  ;;  %v10920_v28 = vld [vmem:[#allocation156_spill] sm:$0xff] }
 0x15a   : > { %5984 = vxpose.xlu0.b32.cont [5/16] (narrow) %v5952_v24, 8  ;;  %v5541_v1 = vsel %vm5529_vm0, %v10900_v13, %v7705_v36  ;;  %v3231_v15 = vrot.slane %v3217_v38, %v6613_v9  ;;  %v3232_v52 = vcombine.high %v3224_v27, %v3224_v27  ;;  %v1633_v63 = vcombine.high %v1631_v5, %v1631_v5 }
 0x15b   : > { %6076 = vxpose.xlu1.b32.start [1/16] (narrow) %v6044_v18, 8  ;;  %v8344_v32 = vrot.slane %v1631_v5, %v6613_v9  ;;  %v8347_v61 = vrot.slane %v3224_v27, %v6613_v9  ;;  %v5669_v3 = vsel %vm5658_vm1, %v5540_v0, %v6728_v23  ;;  %v8352_v36 = vrot.slane %v1632_v58, %v6613_v9 }
 0x15c   : > { %v1662_v60 = vcombine.high %v8340_v46, %v8340_v46  ;;  %v3233_v24 = vcombine.high %v3231_v15, %v3231_v15  ;;  %v8359_v47 = vrot.slane %v1633_v63, %v6613_v9  ;;  %v8366_v23 = vrot.slane %v3231_v15, %v6613_v9  ;;  %v206_v63 = vpop.trf.xlu0 }
 0x15d   : > { %v1663_v30 = vcombine.high %v8344_v32, %v8344_v32  ;;  %v1664_v18 = vcombine.high %v8352_v36, %v8352_v36  ;;  %v8376_v27 = vrot.slane %v3232_v52, %v6613_v9  ;;  %v3262_v58 = vcombine.high %v8347_v61, %v8347_v61  ;;  %v274_v52 = vpop.trf.xlu1 }
 0x15e   : > { %v8373_v38 = vrot.slane %v1662_v60, %v6617_v16  ;;  %v1665_v5 = vcombine.high %v8359_v47, %v8359_v47  ;;  %v8386_v0 = vrot.slane %v3233_v24, %v6613_v9  ;;  %v5670_v15 = vsel %vm5658_vm1, %v5541_v1, %v6738_v39 }
 0x15f   : > { %v8383_v19 = vrot.slane %v1663_v30, %v6617_v16  ;;  %v8389_v13 = vrot.slane %v1664_v18, %v6617_v16  ;;  %v8407_v50 = vrot.slane %v3262_v58, %v6617_v16  ;;  %v5798_v37 = vsel %vm5787_vm2, %v5669_v3, %v7737_v21 }
 0x160   : > { %v8398_v60 = vrot.slane %v1665_v5, %v6617_v16  ;;  %v10903_v5 = vcombine.high %v7962_v6, %v7962_v6  ;;  %v5799_v30 = vsel %vm5787_vm2, %v5670_v15, %v4936_v10  ;;  %v10904_v18 = vcombine.high %v6831_v11, %v6831_v11 }
 0x161   : > { %10901 = vst [vmem:[#allocation208_spill] sm:$0xff] %v8383_v19  ;;  %v10905_v39 = vcombine.high %v6848_v7, %v6848_v7  ;;  %v1666_v1 = vcombine.high %v206_v63, %v206_v63  ;;  %v5953_v3 = vcombine.low %v5798_v37, %v5799_v30  ;;  %v1673_v15 = vrot.slane %v206_v63, %v6613_v9 }
 0x162   : > { %10902 = vst [vmem:[#allocation209_spill] sm:$0xff] %v8398_v60  ;;  %v5032_v24 = vrot.slane %v10903_v5, %v6617_v16  ;;  %v5564_v58 = vsel %vm5529_vm0, %v10904_v18, %v7959_v25  ;;  %v3266_v7 = vcombine.high %v274_v52, %v274_v52 }
 0x163   : > { %v5565_v21 = vsel %vm5529_vm0, %v10905_v39, %v7975_v40  ;;  %v5693_v6 = vsel %vm5658_vm1, %v5564_v58, %v6916_v20  ;;  %v1680_v18 = vrot.slane %v1666_v1, %v6613_v9  ;;  %5985 = vxpose.xlu0.b32.cont [6/16] (narrow) %v5953_v3, 8  ;;  %v1681_v5 = vcombine.high %v1673_v15, %v1673_v15 }
 0x164   : > { %v5694_v10 = vsel %vm5658_vm1, %v5565_v21, %v6919_v53  ;;  %v5822_v11 = vsel %vm5787_vm2, %v5693_v6, %v7993_v14  ;;  %v8438_v37 = vrot.slane %v1673_v15, %v6613_v9  ;;  %v3273_v20 = vrot.slane %v274_v52, %v6613_v9  ;;  %v10908_v14 = vld [vmem:[#allocation160_spill] sm:$0xff] }
 0x165   : > { %v5823_v25 = vsel %vm5787_vm2, %v5694_v10, %v5032_v24  ;;  %v1682_v30 = vcombine.high %v1680_v18, %v1680_v18  ;;  %v8442_v53 = vrot.slane %v1680_v18, %v6613_v9  ;;  %v3280_v63 = vrot.slane %v3266_v7, %v6613_v9 }
 0x166   : > { %v6045_v40 = vcombine.low %v5822_v11, %v5823_v25  ;;  %10906 = vst [vmem:[#allocation210_spill] sm:$0xff] %v8438_v37  ;;  %v4944_v24 = vrot.slane %v10908_v14, %v6617_v16  ;;  %v8448_v58 = vrot.slane %v1681_v5, %v6613_v9  ;;  %v1711_v39 = vcombine.high %v8438_v37, %v8438_v37 }
 0x167   : > { %10907 = vst [vmem:[#allocation211_spill] sm:$0xff] %v8442_v53  ;;  %v3281_v52 = vcombine.high %v3273_v20, %v3273_v20  ;;  %v8455_v1 = vrot.slane %v1682_v30, %v6613_v9  ;;  %v1712_v3 = vcombine.high %v8442_v53, %v8442_v53  ;;  %v3282_v10 = vcombine.high %v3280_v63, %v3280_v63 }
 0x168   : > { %6077 = vxpose.xlu1.b32.cont [2/16] (narrow) %v6045_v40, 8  ;;  %10909 = vst [vmem:[#allocation160_spill] sm:$0xff] %v8448_v58  ;;  %v1713_v15 = vcombine.high %v8448_v58, %v8448_v58  ;;  %v8466_v25 = vrot.slane %v1711_v39, %v6617_v16  ;;  %v8469_v18 = vrot.slane %v3273_v20, %v6613_v9 }
 0x169   : > { %10910 = vst [vmem:[#allocation212_spill] sm:$0xff] %v8455_v1  ;;  %v1714_v7 = vcombine.high %v8455_v1, %v8455_v1  ;;  %v8476_v5 = vrot.slane %v1712_v3, %v6617_v16  ;;  %v8479_v30 = vrot.slane %v3280_v63, %v6613_v9  ;;  %v8485_v39 = vrot.slane %v3281_v52, %v6613_v9  ;;  %v207_v1 = vpop.trf.xlu0 }
 0x16a   : > { %10911 = vst [vmem:[#allocation213_spill] sm:$0xff] %v8466_v25  ;;  %10912 = vst [vmem:[#allocation214_spill] sm:$0xff] %v8469_v18  ;;  %v8482_v6 = vrot.slane %v1713_v15, %v6617_v16  ;;  %v8488_v20 = vrot.slane %v3282_v10, %v6613_v9  ;;  %v3311_v11 = vcombine.high %v8469_v18, %v8469_v18  ;;  %v10934_v25 = vld [vmem:[#allocation32_spill] sm:$0xff]  ;;  %v275_v18 = vpop.trf.xlu1 }
 0x16b   : > { %10913 = vst [vmem:[#allocation215_spill] sm:$0xff] %v8476_v5  ;;  %10914 = vst [vmem:[#allocation216_spill] sm:$0xff] %v8479_v30  ;;  %v8493_v40 = vrot.slane %v1714_v7, %v6617_v16  ;;  %v10921_v3 = vrot.slane %v10920_v28, %v6617_v16  ;;  %v10925_v5 = vld [vmem:[#allocation4_spill] sm:$0xff]  ;;  %v5040_v10 = vrot.slane %v7972_v29, %v6617_v16  ;;  %v10928_v28 = vld [vmem:[#allocation5_spill] sm:$0xff] }
 0x16c   : > { %10915 = vst [vmem:[#allocation217_spill] sm:$0xff] %v8482_v6  ;;  %10916 = vst [vmem:[#allocation218_spill] sm:$0xff] %v8485_v39  ;;  %v8508_v7 = vrot.slane %v3311_v11, %v6617_v16  ;;  %v10926_v21 = vrot.slane %v7930_v44, %v6617_v16  ;;  %v10927_v11 = vld [vmem:[#allocation26_spill] sm:$0xff]  ;;  %v10929_v53 = vrot.slane %v10928_v28, %v6617_v16  ;;  %v10933_v6 = vld [vmem:[#allocation29_spill] sm:$0xff] }
 0x16d   : > { %10917 = vst [vmem:[#allocation219_spill] sm:$0xff] %v8488_v20  ;;  %10918 = vst [vmem:[#allocation220_spill] sm:$0xff] %v8493_v40  ;;  %v5542_v63 = vsel %vm5529_vm0, %v10922_v62, %v10921_v3  ;;  %v10923_v40 = vld [vmem:[#allocation157_spill] sm:$0xff]  ;;  %v10930_v20 = vld [vmem:[#allocation6_spill] sm:$0xff]  ;;  %v1722_v60 = vrot.slane %v207_v1, %v6613_v9 }
 0x16e   : > { %10919 = vst [vmem:[#allocation221_spill] sm:$0xff] %v8508_v7  ;;  %v10924_v15 = vrot.slane %v10923_v40, %v6617_v16  ;;  %v5566_v30 = vsel %vm5529_vm0, %v10927_v11, %v10926_v21  ;;  %v5671_v3 = vsel %vm5658_vm1, %v5542_v63, %v10929_v53  ;;  %v10931_v40 = vrot.slane %v10930_v20, %v6617_v16  ;;  %v10936_v28 = vld [vmem:[#allocation158_spill] sm:$0xff] }
 0x16f   : > { %v10932_v7 = vrot.slane %v7945_v22, %v6617_v16  ;;  %v10935_v21 = vrot.slane %v10934_v25, %v6617_v16  ;;  %v10937_v53 = vrot.slane %v10936_v28, %v6617_v16 }
 0x170   : > { %v5543_v52 = vsel %vm5529_vm0, %v10925_v5, %v10924_v15 }
 0x171   : > { %v5672_v15 = vsel %vm5658_vm1, %v5543_v52, %v10931_v40  ;;  %v5567_v44 = vsel %vm5529_vm0, %v10933_v6, %v10932_v7  ;;  %v5695_v39 = vsel %vm5658_vm1, %v5566_v30, %v10935_v21  ;;  %v5800_v63 = vsel %vm5787_vm2, %v5671_v3, %v10937_v53  ;;  %v10938_v52 = vld [vmem:[#allocation33_spill] sm:$0xff] }
 0x172   : > { %v5801_v58 = vsel %vm5787_vm2, %v5672_v15, %v4944_v24  ;;  %v10939_v40 = vrot.slane %v10938_v52, %v6617_v16  ;;  %v10940_v7 = vrot.slane %v7952_v42, %v6617_v16  ;;  %v1715_v21 = vcombine.high %v207_v1, %v207_v1 }
 0x173   : > { %v5954_v37 = vcombine.low %v5800_v63, %v5801_v58  ;;  %v3315_v3 = vcombine.high %v275_v18, %v275_v18  ;;  %v3322_v24 = vrot.slane %v275_v18, %v6613_v9  ;;  %v10941_v15 = vcombine.high %v10930_v20, %v10930_v20 }
 0x174   : > { %v5696_v22 = vsel %vm5658_vm1, %v5567_v44, %v10939_v40  ;;  %v5824_v25 = vsel %vm5787_vm2, %v5695_v39, %v10940_v7  ;;  %v1729_v53 = vrot.slane %v1715_v21, %v6613_v9  ;;  %v1730_v40 = vcombine.high %v1722_v60, %v1722_v60 }
 0x175   : > { %v5825_v30 = vsel %vm5787_vm2, %v5696_v22, %v5040_v10  ;;  %v4312_v44 = vrot.slane %v10941_v15, %v6617_v16  ;;  %5986 = vxpose.xlu0.b32.cont [7/16] (narrow) %v5954_v37, 8  ;;  %v8566_v58 = vrot.slane %v1722_v60, %v6613_v9  ;;  %v10943_v1 = vcombine.high %v10936_v28, %v10936_v28 }
 0x176   : > { %v6046_v19 = vcombine.low %v5824_v25, %v5825_v30  ;;  %v3329_v18 = vrot.slane %v3315_v3, %v6613_v9  ;;  %v3330_v10 = vcombine.high %v3322_v24, %v3322_v24  ;;  %v8574_v63 = vrot.slane %v3322_v24, %v6613_v9 }
 0x177   : > { %10942 = vst [vmem:[#allocation156_spill] sm:$0xff] %v8566_v58  ;;  %v4948_v39 = vrot.slane %v10943_v1, %v6617_v16  ;;  %v10945_v37 = vcombine.high %v10908_v14, %v10908_v14  ;;  %v1731_v22 = vcombine.high %v1729_v53, %v1729_v53  ;;  %v8581_v60 = vrot.slane %v1729_v53, %v6613_v9 }
 0x178   : > { %6078 = vxpose.xlu1.b32.cont [3/16] (narrow) %v6046_v19, 8  ;;  %10944 = vst [vmem:[#allocation3_spill] sm:$0xff] %v8574_v63  ;;  %v8584_v7 = vrot.slane %v1730_v40, %v6613_v9  ;;  %v1760_v19 = vcombine.high %v8566_v58, %v8566_v58  ;;  %v3331_v25 = vcombine.high %v3329_v18, %v3329_v18 }
 0x179   : > { %v4952_v20 = vrot.slane %v10945_v37, %v6617_v16  ;;  %10946 = vst [vmem:[#allocation157_spill] sm:$0xff] %v8581_v60  ;;  %v8591_v30 = vrot.slane %v3329_v18, %v6613_v9  ;;  %v8594_v14 = vrot.slane %v3330_v10, %v6613_v9  ;;  %v8597_v21 = vrot.slane %v1731_v22, %v6613_v9 }
 0x17a   : > { %10947 = vst [vmem:[#allocation4_spill] sm:$0xff] %v8584_v7  ;;  %v1761_v3 = vcombine.high %v8581_v60, %v8581_v60  ;;  %v1762_v24 = vcombine.high %v8584_v7, %v8584_v7  ;;  %v8606_v53 = vrot.slane %v1760_v19, %v6617_v16  ;;  %v8611_v1 = vrot.slane %v3331_v25, %v6613_v9 }
 0x17b   : > { %10948 = vst [vmem:[#allocation26_spill] sm:$0xff] %v8591_v30  ;;  %10949 = vst [vmem:[#allocation5_spill] sm:$0xff] %v8594_v14  ;;  %v3360_v18 = vcombine.high %v8574_v63, %v8574_v63  ;;  %v1763_v10 = vcombine.high %v8597_v21, %v8597_v21  ;;  %v10958_v25 = vcombine.high %v10922_v62, %v10922_v62  ;;  %v208_v30 = vpop.trf.xlu0  ;;  %v10963_v62 = vld [vmem:[#allocation8_spill] sm:$0xff]  ;;  %v11025_v63 = vld [vmem:[#allocation45_spill] sm:$0xff] }
 0x17c   : > { %10950 = vst [vmem:[#allocation6_spill] sm:$0xff] %v8597_v21  ;;  %10951 = vst [vmem:[#allocation29_spill] sm:$0xff] %v8606_v53  ;;  %v8618_v37 = vrot.slane %v1762_v24, %v6617_v16  ;;  %v8623_v19 = vrot.slane %v1761_v3, %v6617_v16  ;;  %v10959_v21 = vld [vmem:[#allocation161_spill] sm:$0xff]  ;;  %v10962_v40 = vcombine.high %v7952_v42, %v7952_v42  ;;  %v11020_v53 = vld [vmem:[#allocation19_spill] sm:$0xff] }
 0x17d   : > { %10952 = vst [vmem:[#allocation32_spill] sm:$0xff] %v8611_v1  ;;  %v8634_v24 = vrot.slane %v1763_v10, %v6617_v16  ;;  %v8639_v3 = vrot.slane %v3360_v18, %v6617_v16  ;;  %v10960_v10 = vcombine.high %v10925_v5, %v10925_v5  ;;  %v10961_v18 = vcombine.high %v10938_v52, %v10938_v52  ;;  %v11021_v14 = vld [vmem:[#allocation172_spill] sm:$0xff] }
 0x17e   : > { %10953 = vst [vmem:[#allocation158_spill] sm:$0xff] %v8618_v37  ;;  %10954 = vst [vmem:[#allocation33_spill] sm:$0xff] %v8623_v19  ;;  %v10957_v19 = vld [vmem:[#allocation159_spill] sm:$0xff]  ;;  %v10964_v5 = vcombine.high %v7972_v29, %v7972_v29  ;;  %v10965_v52 = vcombine.high %v10927_v11, %v10927_v11 }
 0x17f   : > { %10955 = vst [vmem:[#allocation222_spill] sm:$0xff] %v8634_v24  ;;  %10956 = vst [vmem:[#allocation223_spill] sm:$0xff] %v8639_v3  ;;  %v5544_v15 = vsel %vm5529_vm0, %v10958_v25, %v10957_v19  ;;  %v5545_v28 = vsel %vm5529_vm0, %v10960_v10, %v10959_v21  ;;  %v4408_v22 = vrot.slane %v10961_v18, %v6617_v16  ;;  %v276_v18 = vpop.trf.xlu1  ;;  %v11018_v37 = vld [vmem:[#allocation191_spill] sm:$0xff] }
 0x180   : > { %v5044_v24 = vrot.slane %v10962_v40, %v6617_v16  ;;  %v5673_v19 = vsel %vm5658_vm1, %v5544_v15, %v10963_v62  ;;  %v5674_v25 = vsel %vm5658_vm1, %v5545_v28, %v4312_v44  ;;  %v5048_v21 = vrot.slane %v10964_v5, %v6617_v16  ;;  %v10967_v15 = vld [vmem:[#allocation34_spill] sm:$0xff] }
 0x181   : > { %v5568_v10 = vsel %vm5529_vm0, %v10965_v52, %v7969_v2  ;;  %v5802_v42 = vsel %vm5787_vm2, %v5673_v19, %v4948_v39  ;;  %v5803_v40 = vsel %vm5787_vm2, %v5674_v25, %v4952_v20  ;;  %v10966_v44 = vcombine.high %v10933_v6, %v10933_v6  ;;  %v10968_v25 = vld [vmem:[#allocation162_spill] sm:$0xff] }
 0x182   : > { %v5697_v29 = vsel %vm5658_vm1, %v5568_v10, %v10967_v15  ;;  %v5955_v62 = vcombine.low %v5802_v42, %v5803_v40  ;;  %v1764_v2 = vcombine.high %v208_v30, %v208_v30  ;;  %v1771_v39 = vrot.slane %v208_v30, %v6613_v9  ;;  %v10970_v42 = vld [vmem:[#allocation7_spill] sm:$0xff]  ;;  %v10972_v40 = vld [vmem:[#allocation10_spill] sm:$0xff] }
 0x183   : > { %v5569_v28 = vsel %vm5529_vm0, %v10966_v44, %v7984_v8  ;;  %v5826_v11 = vsel %vm5787_vm2, %v5697_v29, %v5044_v24  ;;  %v3364_v20 = vcombine.high %v276_v18, %v276_v18  ;;  %v3371_v19 = vrot.slane %v276_v18, %v6613_v9 }
 0x184   : > { %v5698_v5 = vsel %vm5658_vm1, %v5569_v28, %v4408_v22  ;;  %5987 = vxpose.xlu0.b32.cont [8/16] (narrow) %v5955_v62, 8  ;;  %v1778_v8 = vrot.slane %v1764_v2, %v6613_v9  ;;  %v10969_v10 = vrot.slane %v10968_v25, %v6617_v16  ;;  %v10971_v24 = vrot.slane %v7748_v4, %v6617_v16 }
 0x185   : > { %v5827_v52 = vsel %vm5787_vm2, %v5698_v5, %v5048_v21  ;;  %v1779_v30 = vcombine.high %v1771_v39, %v1771_v39  ;;  %v8699_v44 = vrot.slane %v1771_v39, %v6613_v9  ;;  %v3378_v18 = vrot.slane %v3364_v20, %v6613_v9  ;;  %v10976_v5 = vld [vmem:[#allocation12_spill] sm:$0xff]  ;;  %v209_v39 = vpop.trf.xlu0 }
 0x186   : > { %v6047_v6 = vcombine.low %v5826_v11, %v5827_v52  ;;  %v5546_v22 = vsel %vm5529_vm0, %v10970_v42, %v10969_v10  ;;  %v5547_v21 = vsel %vm5529_vm0, %v10972_v40, %v10971_v24  ;;  %v3379_v28 = vcombine.high %v3371_v19, %v3371_v19 }
 0x187   : > { %10973 = vst [vmem:[#allocation159_spill] sm:$0xff] %v8699_v44  ;;  %v1780_v15 = vcombine.high %v1778_v8, %v1778_v8  ;;  %v8703_v29 = vrot.slane %v1778_v8, %v6613_v9  ;;  %v8706_v62 = vrot.slane %v3371_v19, %v6613_v9  ;;  %v10977_v4 = vrot.slane %v10976_v5, %v6617_v16 }
 0x188   : > { %6079 = vxpose.xlu1.b32.cont [4/16] (narrow) %v6047_v6, 8  ;;  %v8713_v2 = vrot.slane %v1779_v30, %v6613_v9  ;;  %v1809_v52 = vcombine.high %v8699_v44, %v8699_v44  ;;  %v3380_v20 = vcombine.high %v3378_v18, %v3378_v18  ;;  %v8727_v25 = vrot.slane %v3378_v18, %v6613_v9 }
 0x189   : > { %10974 = vst [vmem:[#allocation161_spill] sm:$0xff] %v8703_v29  ;;  %10975 = vst [vmem:[#allocation8_spill] sm:$0xff] %v8706_v62  ;;  %v5675_v11 = vsel %vm5658_vm1, %v5546_v22, %v10977_v4  ;;  %v8720_v6 = vrot.slane %v1780_v15, %v6613_v9  ;;  %v1810_v19 = vcombine.high %v8703_v29, %v8703_v29  ;;  %v10988_v22 = vld [vmem:[#allocation14_spill] sm:$0xff]  ;;  %v210_v60 = vpop.trf.xlu0 }
 0x18a   : > { %10978 = vst [vmem:[#allocation34_spill] sm:$0xff] %v8713_v2  ;;  %10980 = vst [vmem:[#allocation7_spill] sm:$0xff] %v8727_v25  ;;  %v1811_v10 = vcombine.high %v8713_v2, %v8713_v2  ;;  %v8734_v24 = vrot.slane %v1809_v52, %v6617_v16  ;;  %v8737_v30 = vrot.slane %v3379_v28, %v6613_v9  ;;  %v10991_v29 = vld [vmem:[#allocation170_spill] sm:$0xff]  ;;  %v10995_v28 = vld [vmem:[#allocation35_spill] sm:$0xff] }
 0x18b   : > { %10979 = vst [vmem:[#allocation162_spill] sm:$0xff] %v8720_v6  ;;  %v1812_v15 = vcombine.high %v8720_v6, %v8720_v6  ;;  %v8744_v18 = vrot.slane %v1810_v19, %v6617_v16  ;;  %v8747_v4 = vrot.slane %v3380_v20, %v6613_v9  ;;  %v3409_v52 = vcombine.high %v8706_v62, %v8706_v62  ;;  %v277_v19 = vpop.trf.xlu1 }
 0x18c   : > { %10981 = vst [vmem:[#allocation10_spill] sm:$0xff] %v8734_v24  ;;  %10982 = vst [vmem:[#allocation12_spill] sm:$0xff] %v8737_v30  ;;  %v8750_v8 = vrot.slane %v1811_v10, %v6617_v16  ;;  %v10989_v6 = vrot.slane %v10988_v22, %v6617_v16  ;;  %v10990_v20 = vrot.slane %v7777_v56, %v6617_v16  ;;  %v10996_v22 = vld [vmem:[#allocation188_spill] sm:$0xff] }
 0x18d   : > { %10983 = vst [vmem:[#allocation224_spill] sm:$0xff] %v8744_v18  ;;  %10984 = vst [vmem:[#allocation225_spill] sm:$0xff] %v8747_v4  ;;  %v8759_v5 = vrot.slane %v1812_v15, %v6617_v16  ;;  %v8768_v18 = vrot.slane %v3409_v52, %v6617_v16  ;;  %v10992_v10 = vrot.slane %v10991_v29, %v6617_v16  ;;  %v10993_v4 = vld [vmem:[#allocation186_spill] sm:$0xff] }
 0x18e   : > { %10985 = vst [vmem:[#allocation226_spill] sm:$0xff] %v8750_v8  ;;  %v5676_v15 = vsel %vm5658_vm1, %v5547_v21, %v10989_v6  ;;  %v10997_v21 = vrot.slane %v10996_v22, %v6617_v16  ;;  %v10998_v6 = vld [vmem:[#allocation38_spill] sm:$0xff]  ;;  %v1813_v8 = vcombine.high %v209_v39, %v209_v39  ;;  %v11003_v22 = vrot.slane %v8018_v51, %v6617_v16 }
 0x18f   : > { %10986 = vst [vmem:[#allocation227_spill] sm:$0xff] %v8759_v5  ;;  %10987 = vst [vmem:[#allocation228_spill] sm:$0xff] %v8768_v18  ;;  %v5804_v5 = vsel %vm5787_vm2, %v5675_v11, %v10990_v20  ;;  %v5805_v52 = vsel %vm5787_vm2, %v5676_v15, %v10992_v10  ;;  %v10994_v18 = vrot.slane %v10993_v4, %v6617_v16  ;;  %v10999_v20 = vld [vmem:[#allocation37_spill] sm:$0xff] }
 0x190   : > { %v5571_v56 = vsel %vm5529_vm0, %v10998_v6, %v10997_v21  ;;  %v5956_v11 = vcombine.low %v5804_v5, %v5805_v52  ;;  %v11000_v24 = vrot.slane %v10999_v20, %v6617_v16  ;;  %v11001_v10 = vld [vmem:[#allocation41_spill] sm:$0xff]  ;;  %v11004_v5 = vrot.slane %v8050_v41, %v6617_v16 }
 0x191   : > { %v5570_v25 = vsel %vm5529_vm0, %v10995_v28, %v10994_v18  ;;  %v11002_v15 = vrot.slane %v11001_v10, %v6617_v16  ;;  %v1820_v18 = vrot.slane %v209_v39, %v6613_v9  ;;  %v1827_v21 = vrot.slane %v1813_v8, %v6613_v9 }
 0x192   : > { %v5699_v30 = vsel %vm5658_vm1, %v5570_v25, %v11000_v24  ;;  %v3413_v25 = vcombine.high %v277_v19, %v277_v19  ;;  %5988 = vxpose.xlu0.b32.cont [9/16] (narrow) %v5956_v11, 8  ;;  %v3420_v39 = vrot.slane %v277_v19, %v6613_v9  ;;  %v11013_v44 = vcombine.high %v10970_v42, %v10970_v42 }
 0x193   : > { %v5700_v4 = vsel %vm5658_vm1, %v5571_v56, %v11002_v15  ;;  %v5828_v62 = vsel %vm5787_vm2, %v5699_v30, %v11003_v22  ;;  %v1828_v20 = vcombine.high %v1820_v18, %v1820_v18  ;;  %v8813_v56 = vrot.slane %v1820_v18, %v6613_v9 }
 0x194   : > { %v5829_v52 = vsel %vm5787_vm2, %v5700_v4, %v11004_v5  ;;  %v1829_v10 = vcombine.high %v1827_v21, %v1827_v21  ;;  %v8817_v51 = vrot.slane %v1827_v21, %v6613_v9  ;;  %v3427_v30 = vrot.slane %v3413_v25, %v6613_v9 }
 0x195   : > { %v6048_v24 = vcombine.low %v5828_v62, %v5829_v52  ;;  %v11006_v15 = vcombine.high %v10991_v29, %v10991_v29  ;;  %v8825_v62 = vrot.slane %v1828_v20, %v6613_v9  ;;  %v1858_v11 = vcombine.high %v8813_v56, %v8813_v56 }
 0x196   : > { %11005 = vst [vmem:[#allocation14_spill] sm:$0xff] %v8817_v51  ;;  %v3428_v4 = vcombine.high %v3420_v39, %v3420_v39  ;;  %v8832_v18 = vrot.slane %v1829_v10, %v6613_v9  ;;  %v1859_v22 = vcombine.high %v8817_v51, %v8817_v51  ;;  %v3429_v5 = vcombine.high %v3427_v30, %v3427_v30  ;;  %v11064_v51 = vld [vmem:[#allocation190_spill] sm:$0xff] }
 0x197   : > { %v4968_v8 = vrot.slane %v11006_v15, %v6617_v16  ;;  %6080 = vxpose.xlu1.b32.cont [5/16] (narrow) %v6048_v24, 8  ;;  %v1860_v52 = vcombine.high %v8825_v62, %v8825_v62  ;;  %v8843_v25 = vrot.slane %v1858_v11, %v6617_v16  ;;  %v8846_v24 = vrot.slane %v3420_v39, %v6613_v9 }
 0x198   : > { %11007 = vst [vmem:[#allocation170_spill] sm:$0xff] %v8832_v18  ;;  %v1861_v20 = vcombine.high %v8832_v18, %v8832_v18  ;;  %v8853_v15 = vrot.slane %v1859_v22, %v6617_v16  ;;  %v8856_v29 = vrot.slane %v3427_v30, %v6613_v9  ;;  %v8862_v11 = vrot.slane %v3428_v4, %v6613_v9  ;;  %v11014_v30 = vld [vmem:[#allocation167_spill] sm:$0xff]  ;;  %v11016_v4 = vld [vmem:[#allocation17_spill] sm:$0xff] }
 0x199   : > { %v8859_v21 = vrot.slane %v1860_v52, %v6617_v16  ;;  %v8865_v39 = vrot.slane %v3429_v5, %v6613_v9  ;;  %v3458_v19 = vcombine.high %v8846_v24, %v8846_v24  ;;  %v11015_v52 = vcombine.high %v10972_v40, %v10972_v40 }
 0x19a   : > { %11008 = vst [vmem:[#allocation186_spill] sm:$0xff] %v8853_v15  ;;  %11009 = vst [vmem:[#allocation35_spill] sm:$0xff] %v8856_v29  ;;  %v8870_v10 = vrot.slane %v1861_v20, %v6617_v16  ;;  %v11012_v20 = vld [vmem:[#allocation165_spill] sm:$0xff]  ;;  %v11019_v42 = vcombine.high %v10995_v28, %v10995_v28 }
 0x19b   : > { %11010 = vst [vmem:[#allocation188_spill] sm:$0xff] %v8865_v39  ;;  %v8883_v2 = vrot.slane %v3458_v19, %v6617_v16  ;;  %v5548_v22 = vsel %vm5529_vm0, %v11013_v44, %v11012_v20  ;;  %v5549_v1 = vsel %vm5529_vm0, %v11015_v52, %v11014_v30  ;;  %v11017_v19 = vcombine.high %v8050_v41, %v8050_v41  ;;  %v278_v20 = vpop.trf.xlu1  ;;  %v11022_v52 = vld [vmem:[#allocation194_spill] sm:$0xff] }
 0x19c   : > { %11011 = vst [vmem:[#allocation38_spill] sm:$0xff] %v8870_v10  ;;  %v5677_v3 = vsel %vm5658_vm1, %v5548_v22, %v11016_v4  ;;  %v5572_v44 = vsel %vm5529_vm0, %v11019_v42, %v11018_v37  ;;  %v5678_v40 = vsel %vm5658_vm1, %v5549_v1, %v11020_v53  ;;  %v11023_v22 = vcombine.high %v10998_v6, %v10998_v6  ;;  %v11024_v4 = vld [vmem:[#allocation43_spill] sm:$0xff]  ;;  %v11026_v42 = vld [vmem:[#allocation196_spill] sm:$0xff] }
 0x19d   : > { %v5064_v5 = vrot.slane %v11017_v19, %v6617_v16  ;;  %v5806_v30 = vsel %vm5787_vm2, %v5677_v3, %v11021_v14  ;;  %v5701_v19 = vsel %vm5658_vm1, %v5572_v44, %v11024_v4  ;;  %v5807_v28 = vsel %vm5787_vm2, %v5678_v40, %v4968_v8  ;;  %v11027_v8 = vld [vmem:[#allocation171_spill] sm:$0xff] }
 0x19e   : > { %v5573_v41 = vsel %vm5529_vm0, %v11023_v22, %v11022_v52  ;;  %v5830_v53 = vsel %vm5787_vm2, %v5701_v19, %v11026_v42  ;;  %v1862_v1 = vcombine.high %v210_v60, %v210_v60  ;;  %v5957_v7 = vcombine.low %v5806_v30, %v5807_v28  ;;  %v11060_v10 = vld [vmem:[#allocation39_spill] sm:$0xff] }
 0x19f   : > { %v5702_v37 = vsel %vm5658_vm1, %v5573_v41, %v11025_v63  ;;  %v1869_v3 = vrot.slane %v210_v60, %v6613_v9  ;;  %v3462_v6 = vcombine.high %v278_v20, %v278_v20  ;;  %v3469_v44 = vrot.slane %v278_v20, %v6613_v9  ;;  %v11029_v41 = vld [vmem:[#allocation163_spill] sm:$0xff]  ;;  %v11031_v60 = vld [vmem:[#allocation9_spill] sm:$0xff] }
 0x1a0   : > { %v5831_v14 = vsel %vm5787_vm2, %v5702_v37, %v5064_v5  ;;  %v1876_v52 = vrot.slane %v1862_v1, %v6613_v9  ;;  %v4976_v40 = vrot.slane %v11027_v8, %v6617_v16  ;;  %5989 = vxpose.xlu0.b32.cont [10/16] (narrow) %v5957_v7, 8  ;;  %v11030_v5 = vrot.slane %v11029_v41, %v6617_v16 }
 0x1a1   : > { %v6049_v58 = vcombine.low %v5830_v53, %v5831_v14  ;;  %v1877_v63 = vcombine.high %v1869_v3, %v1869_v3  ;;  %v8929_v22 = vrot.slane %v1869_v3, %v6613_v9  ;;  %v3476_v30 = vrot.slane %v3462_v6, %v6613_v9  ;;  %v11044_v53 = vld [vmem:[#allocation164_spill] sm:$0xff] }
 0x1a2   : > { %v5550_v4 = vsel %vm5529_vm0, %v11031_v60, %v11030_v5  ;;  %v1878_v19 = vcombine.high %v1876_v52, %v1876_v52  ;;  %v8938_v20 = vrot.slane %v1876_v52, %v6613_v9  ;;  %v3477_v28 = vcombine.high %v3469_v44, %v3469_v44 }
 0x1a3   : > { %11028 = vst [vmem:[#allocation37_spill] sm:$0xff] %v8929_v22  ;;  %6081 = vxpose.xlu1.b32.cont [6/16] (narrow) %v6049_v58, 8  ;;  %v8941_v7 = vrot.slane %v3469_v44, %v6613_v9  ;;  %v8944_v37 = vrot.slane %v1877_v63, %v6613_v9  ;;  %v1907_v42 = vcombine.high %v8929_v22, %v8929_v22 }
 0x1a4   : > { %11032 = vst [vmem:[#allocation41_spill] sm:$0xff] %v8938_v20  ;;  %v3478_v1 = vcombine.high %v3476_v30, %v3476_v30  ;;  %v8951_v58 = vrot.slane %v1878_v19, %v6613_v9  ;;  %v1908_v14 = vcombine.high %v8938_v20, %v8938_v20  ;;  %v8958_v6 = vrot.slane %v3476_v30, %v6613_v9 }
 0x1a5   : > { %11033 = vst [vmem:[#allocation165_spill] sm:$0xff] %v8941_v7  ;;  %11034 = vst [vmem:[#allocation167_spill] sm:$0xff] %v8944_v37  ;;  %v1909_v52 = vcombine.high %v8944_v37, %v8944_v37  ;;  %v8965_v63 = vrot.slane %v1907_v42, %v6617_v16  ;;  %v8968_v41 = vrot.slane %v3477_v28, %v6613_v9  ;;  %v11057_v37 = vld [vmem:[#allocation189_spill] sm:$0xff] }
 0x1a6   : > { %11035 = vst [vmem:[#allocation17_spill] sm:$0xff] %v8951_v58  ;;  %11036 = vst [vmem:[#allocation191_spill] sm:$0xff] %v8958_v6  ;;  %v1910_v5 = vcombine.high %v8951_v58, %v8951_v58  ;;  %v8975_v30 = vrot.slane %v1908_v14, %v6617_v16  ;;  %v8978_v3 = vrot.slane %v3478_v1, %v6613_v9  ;;  %v11047_v14 = vld [vmem:[#allocation13_spill] sm:$0xff] }
 0x1a7   : > { %11037 = vst [vmem:[#allocation19_spill] sm:$0xff] %v8965_v63  ;;  %11038 = vst [vmem:[#allocation172_spill] sm:$0xff] %v8968_v41  ;;  %v8981_v44 = vrot.slane %v1909_v52, %v6617_v16  ;;  %v3507_v42 = vcombine.high %v8941_v7, %v8941_v7  ;;  %v11054_v41 = vld [vmem:[#allocation187_spill] sm:$0xff]  ;;  %v11056_v7 = vld [vmem:[#allocation36_spill] sm:$0xff] }
 0x1a8   : > { %11039 = vst [vmem:[#allocation194_spill] sm:$0xff] %v8975_v30  ;;  %11040 = vst [vmem:[#allocation43_spill] sm:$0xff] %v8978_v3  ;;  %v8990_v19 = vrot.slane %v1910_v5, %v6617_v16  ;;  %v211_v30 = vpop.trf.xlu0  ;;  %v11045_v5 = vrot.slane %v11044_v53, %v6617_v16  ;;  %v11048_v3 = vrot.slane %v11047_v14, %v6617_v16  ;;  %v11053_v53 = vld [vmem:[#allocation193_spill] sm:$0xff] }
 0x1a9   : > { %11041 = vst [vmem:[#allocation45_spill] sm:$0xff] %v8981_v44  ;;  %v8999_v58 = vrot.slane %v3507_v42, %v6617_v16  ;;  %v11049_v44 = vld [vmem:[#allocation16_spill] sm:$0xff]  ;;  %v5072_v6 = vrot.slane %v11053_v53, %v6617_v16  ;;  %v1911_v15 = vcombine.high %v211_v30, %v211_v30 }
 0x1aa   : > { %11042 = vst [vmem:[#allocation196_spill] sm:$0xff] %v8990_v19  ;;  %v11046_v19 = vld [vmem:[#allocation11_spill] sm:$0xff]  ;;  %v5679_v1 = vsel %vm5658_vm1, %v5550_v4, %v11048_v3  ;;  %v11050_v52 = vrot.slane %v11049_v44, %v6617_v16  ;;  %v279_v4 = vpop.trf.xlu1 }
 0x1ab   : > { %11043 = vst [vmem:[#allocation171_spill] sm:$0xff] %v8999_v58  ;;  %v5551_v20 = vsel %vm5529_vm0, %v11046_v19, %v11045_v5  ;;  %v11051_v58 = vld [vmem:[#allocation169_spill] sm:$0xff]  ;;  %v11055_v5 = vrot.slane %v11054_v41, %v6617_v16  ;;  %v11062_v41 = vld [vmem:[#allocation42_spill] sm:$0xff]  ;;  %v3511_v39 = vcombine.high %v279_v4, %v279_v4 }
 0x1ac   : > { %v5680_v42 = vsel %vm5658_vm1, %v5551_v20, %v11050_v52  ;;  %v11052_v63 = vrot.slane %v11051_v58, %v6617_v16  ;;  %v11058_v20 = vrot.slane %v11057_v37, %v6617_v16  ;;  %v11059_v52 = vld [vmem:[#allocation40_spill] sm:$0xff]  ;;  %v11063_v18 = vrot.slane %v11062_v41, %v6617_v16 }
 0x1ad   : > { %v5574_v14 = vsel %vm5529_vm0, %v11056_v7, %v11055_v5  ;;  %v5809_v3 = vsel %vm5787_vm2, %v5680_v42, %v4976_v40  ;;  %v11065_v40 = vrot.slane %v11064_v51, %v6617_v16  ;;  %v1918_v42 = vrot.slane %v211_v30, %v6613_v9 }
 0x1ae   : > { %v5808_v28 = vsel %vm5787_vm2, %v5679_v1, %v11052_v63  ;;  %v5575_v22 = vsel %vm5529_vm0, %v11059_v52, %v11058_v20  ;;  %v11061_v63 = vrot.slane %v11060_v10, %v6617_v16  ;;  %v1925_v10 = vrot.slane %v1911_v15, %v6613_v9 }
 0x1af   : > { %v5958_v29 = vcombine.low %v5808_v28, %v5809_v3  ;;  %v5704_v5 = vsel %vm5658_vm1, %v5575_v22, %v11063_v18  ;;  %v1926_v3 = vcombine.high %v1918_v42, %v1918_v42  ;;  %v11066_v18 = vcombine.high %v11049_v44, %v11049_v44 }
 0x1b0   : > { %v5703_v1 = vsel %vm5658_vm1, %v5574_v14, %v11061_v63  ;;  %v5833_v20 = vsel %vm5787_vm2, %v5704_v5, %v5072_v6  ;;  %v3518_v14 = vrot.slane %v279_v4, %v6613_v9  ;;  %v9050_v63 = vrot.slane %v1918_v42, %v6613_v9 }
 0x1b1   : > { %v5832_v37 = vsel %vm5787_vm2, %v5703_v1, %v11065_v40  ;;  %5990 = vxpose.xlu0.b32.cont [11/16] (narrow) %v5958_v29, 8  ;;  %v4344_v22 = vrot.slane %v11066_v18, %v6617_v16  ;;  %v1927_v1 = vcombine.high %v1925_v10, %v1925_v10  ;;  %v9057_v30 = vrot.slane %v1925_v10, %v6613_v9 }
 0x1b2   : > { %v6050_v28 = vcombine.low %v5832_v37, %v5833_v20  ;;  %v3525_v15 = vrot.slane %v3511_v39, %v6613_v9  ;;  %v3526_v6 = vcombine.high %v3518_v14, %v3518_v14  ;;  %v9061_v29 = vrot.slane %v1926_v3, %v6613_v9 }
 0x1b3   : > { %11067 = vst [vmem:[#allocation163_spill] sm:$0xff] %v9057_v30  ;;  %v1956_v4 = vcombine.high %v9050_v63, %v9050_v63  ;;  %v9068_v44 = vrot.slane %v3518_v14, %v6613_v9  ;;  %v9071_v40 = vrot.slane %v1927_v1, %v6613_v9  ;;  %v1957_v39 = vcombine.high %v9057_v30, %v9057_v30  ;;  %v212_v30 = vpop.trf.xlu0 }
 0x1b4   : > { %6082 = vxpose.xlu1.b32.cont [7/16] (narrow) %v6050_v28, 8  ;;  %v3527_v42 = vcombine.high %v3525_v15, %v3525_v15  ;;  %v1958_v20 = vcombine.high %v9061_v29, %v9061_v29  ;;  %v9085_v14 = vrot.slane %v3525_v15, %v6613_v9  ;;  %v9095_v37 = vrot.slane %v3526_v6, %v6613_v9 }
 0x1b5   : > { %11068 = vst [vmem:[#allocation9_spill] sm:$0xff] %v9071_v40  ;;  %v9082_v28 = vrot.slane %v1956_v4, %v6617_v16  ;;  %v1959_v3 = vcombine.high %v9071_v40, %v9071_v40  ;;  %v9092_v1 = vrot.slane %v1957_v39, %v6617_v16  ;;  %v3556_v15 = vcombine.high %v9068_v44, %v9068_v44  ;;  %v11077_v40 = vld [vmem:[#allocation168_spill] sm:$0xff] }
 0x1b6   : > { %11069 = vst [vmem:[#allocation164_spill] sm:$0xff] %v9085_v14  ;;  %v9098_v10 = vrot.slane %v1958_v20, %v6617_v16  ;;  %v9101_v4 = vrot.slane %v3527_v42, %v6613_v9  ;;  %v11074_v6 = vcombine.high %v11027_v8, %v11027_v8  ;;  %v11075_v20 = vld [vmem:[#allocation166_spill] sm:$0xff]  ;;  %v11076_v42 = vcombine.high %v11031_v60, %v11031_v60  ;;  %v11080_v8 = vld [vmem:[#allocation20_spill] sm:$0xff] }
 0x1b7   : > { %11070 = vst [vmem:[#allocation11_spill] sm:$0xff] %v9092_v1  ;;  %v9108_v18 = vrot.slane %v1959_v3, %v6617_v16  ;;  %v9119_v1 = vrot.slane %v3556_v15, %v6617_v16  ;;  %v11073_v3 = vcombine.high %v11051_v58, %v11051_v58  ;;  %v11078_v5 = vcombine.high %v11046_v19, %v11046_v19 }
 0x1b8   : > { %11071 = vst [vmem:[#allocation13_spill] sm:$0xff] %v9101_v4  ;;  %v5552_v15 = vsel %vm5529_vm0, %v11076_v42, %v11075_v20  ;;  %v11079_v58 = vcombine.high %v11062_v41, %v11062_v41  ;;  %v11081_v60 = vcombine.high %v11064_v51, %v11064_v51  ;;  %v11082_v19 = vcombine.high %v11053_v53, %v11053_v53  ;;  %v11087_v53 = vld [vmem:[#allocation44_spill] sm:$0xff] }
 0x1b9   : > { %11072 = vst [vmem:[#allocation16_spill] sm:$0xff] %v9108_v18  ;;  %v4980_v39 = vrot.slane %v11073_v3, %v6617_v16  ;;  %v4984_v18 = vrot.slane %v11074_v6, %v6617_v16  ;;  %v5553_v14 = vsel %vm5529_vm0, %v11078_v5, %v11077_v40  ;;  %v5681_v6 = vsel %vm5658_vm1, %v5552_v15, %v11080_v8  ;;  %v280_v40 = vpop.trf.xlu1 }
 0x1ba   : > { %v4440_v3 = vrot.slane %v11079_v58, %v6617_v16  ;;  %v5682_v4 = vsel %vm5658_vm1, %v5553_v14, %v4344_v22  ;;  %v5076_v20 = vrot.slane %v11081_v60, %v6617_v16  ;;  %v5080_v5 = vrot.slane %v11082_v19, %v6617_v16  ;;  %v11083_v58 = vld [vmem:[#allocation192_spill] sm:$0xff]  ;;  %v11085_v14 = vld [vmem:[#allocation195_spill] sm:$0xff] }
 0x1bb   : > { %v5810_v41 = vsel %vm5787_vm2, %v5681_v6, %v4980_v39  ;;  %v5811_v42 = vsel %vm5787_vm2, %v5682_v4, %v4984_v18  ;;  %v11084_v15 = vcombine.high %v11056_v7, %v11056_v7  ;;  %v11086_v51 = vcombine.high %v11059_v52, %v11059_v52 }
 0x1bc   : > { %v5959_v60 = vcombine.low %v5810_v41, %v5811_v42  ;;  %v1960_v6 = vcombine.high %v212_v30, %v212_v30  ;;  %v1967_v7 = vrot.slane %v212_v30, %v6613_v9  ;;  %v11088_v41 = vld [vmem:[#allocation173_spill] sm:$0xff]  ;;  %v11091_v30 = vld [vmem:[#allocation175_spill] sm:$0xff] }
 0x1bd   : > { %v5576_v22 = vsel %vm5529_vm0, %v11084_v15, %v11083_v58  ;;  %v5577_v8 = vsel %vm5529_vm0, %v11086_v51, %v11085_v14  ;;  %v3560_v58 = vcombine.high %v280_v40, %v280_v40  ;;  %v3567_v14 = vrot.slane %v280_v40, %v6613_v9 }
 0x1be   : > { %v5705_v19 = vsel %vm5658_vm1, %v5576_v22, %v11087_v53  ;;  %v5706_v39 = vsel %vm5658_vm1, %v5577_v8, %v4440_v3  ;;  %5991 = vxpose.xlu0.b32.cont [12/16] (narrow) %v5959_v60, 8  ;;  %v1974_v52 = vrot.slane %v1960_v6, %v6613_v9  ;;  %v11089_v42 = vrot.slane %v11088_v41, %v6617_v16  ;;  %v11090_v22 = vld [vmem:[#allocation15_spill] sm:$0xff]  ;;  %v11093_v60 = vld [vmem:[#allocation21_spill] sm:$0xff] }
 0x1bf   : > { %v5834_v18 = vsel %vm5787_vm2, %v5705_v19, %v5076_v20  ;;  %v5835_v4 = vsel %vm5787_vm2, %v5706_v39, %v5080_v5  ;;  %v1975_v51 = vcombine.high %v1967_v7, %v1967_v7  ;;  %v9182_v20 = vrot.slane %v1967_v7, %v6613_v9 }
 0x1c0   : > { %v6051_v15 = vcombine.low %v5834_v18, %v5835_v4  ;;  %v5554_v3 = vsel %vm5529_vm0, %v11090_v22, %v11089_v42  ;;  %v3574_v5 = vrot.slane %v3560_v58, %v6613_v9  ;;  %v11092_v8 = vrot.slane %v11091_v30, %v6617_v16 }
 0x1c1   : > { %v1976_v40 = vcombine.high %v1974_v52, %v1974_v52  ;;  %v9191_v19 = vrot.slane %v1974_v52, %v6613_v9  ;;  %v3575_v39 = vcombine.high %v3567_v14, %v3567_v14  ;;  %v9194_v6 = vrot.slane %v3567_v14, %v6613_v9 }
 0x1c2   : > { %v5555_v53 = vsel %vm5529_vm0, %v11093_v60, %v11092_v8  ;;  %6083 = vxpose.xlu1.b32.cont [8/16] (narrow) %v6051_v15, 8  ;;  %v9197_v18 = vrot.slane %v1975_v51, %v6613_v9  ;;  %v2005_v4 = vcombine.high %v9182_v20, %v9182_v20  ;;  %v3576_v58 = vcombine.high %v3574_v5, %v3574_v5 }
 0x1c3   : > { %11094 = vst [vmem:[#allocation169_spill] sm:$0xff] %v9191_v19  ;;  %v9204_v15 = vrot.slane %v1976_v40, %v6613_v9  ;;  %v2006_v52 = vcombine.high %v9191_v19, %v9191_v19  ;;  %v9211_v41 = vrot.slane %v3574_v5, %v6613_v9  ;;  %v9221_v8 = vrot.slane %v3575_v39, %v6613_v9 }
 0x1c4   : > { %v2007_v42 = vcombine.high %v9197_v18, %v9197_v18  ;;  %v9218_v30 = vrot.slane %v2005_v4, %v6617_v16  ;;  %v9231_v7 = vrot.slane %v3576_v58, %v6613_v9  ;;  %v3605_v4 = vcombine.high %v9194_v6, %v9194_v6  ;;  %v11108_v58 = vld [vmem:[#allocation181_spill] sm:$0xff] }
 0x1c5   : > { %11095 = vst [vmem:[#allocation193_spill] sm:$0xff] %v9204_v15  ;;  %11096 = vst [vmem:[#allocation187_spill] sm:$0xff] %v9211_v41  ;;  %v2008_v40 = vcombine.high %v9204_v15, %v9204_v15  ;;  %v9228_v5 = vrot.slane %v2006_v52, %v6617_v16  ;;  %v11113_v41 = vld [vmem:[#allocation46_spill] sm:$0xff] }
 0x1c6   : > { %11097 = vst [vmem:[#allocation36_spill] sm:$0xff] %v9218_v30  ;;  %11098 = vst [vmem:[#allocation189_spill] sm:$0xff] %v9221_v8  ;;  %v9234_v51 = vrot.slane %v2007_v42, %v6617_v16  ;;  %v9252_v9 = vrot.slane %v3605_v4, %v6617_v16  ;;  %v11110_v4 = vld [vmem:[#allocation183_spill] sm:$0xff]  ;;  %v11119_v30 = vld [vmem:[#allocation52_spill] sm:$0xff] }
 0x1c7   : > { %11099 = vst [vmem:[#allocation40_spill] sm:$0xff] %v9228_v5  ;;  %11100 = vst [vmem:[#allocation39_spill] sm:$0xff] %v9231_v7  ;;  %v9243_v14 = vrot.slane %v2008_v40, %v6617_v16  ;;  %v11104_v5 = vld [vmem:[#allocation23_spill] sm:$0xff]  ;;  %v11109_v7 = vrot.slane %v11108_v58, %v6617_v16 }
 0x1c8   : > { %11101 = vst [vmem:[#allocation42_spill] sm:$0xff] %v9234_v51  ;;  %11103 = vst [vmem:[#allocation166_spill] sm:$0xff] %v9252_v9  ;;  %v11105_v19 = vrot.slane %v11104_v5, %v6617_v16  ;;  %v11111_v9 = vrot.slane %v11110_v4, %v6617_v16  ;;  %v11112_v5 = vrot.slane %v8106_v55, %v6617_v16  ;;  %v11117_v51 = vld [vmem:[#allocation48_spill] sm:$0xff] }
 0x1c9   : > { %11102 = vst [vmem:[#allocation190_spill] sm:$0xff] %v9243_v14  ;;  %v11106_v14 = vld [vmem:[#allocation25_spill] sm:$0xff] }
 0x1ca   : > { %v5683_v40 = vsel %vm5658_vm1, %v5554_v3, %v11105_v19  ;;  %v11107_v52 = vrot.slane %v11106_v14, %v6617_v16  ;;  %v5578_v3 = vsel %vm5529_vm0, %v11113_v41, %v11112_v5  ;;  %v11114_v19 = vld [vmem:[#allocation198_spill] sm:$0xff] }
 0x1cb   : > { %v5812_v42 = vsel %vm5787_vm2, %v5683_v40, %v11109_v7  ;;  %v11115_v14 = vrot.slane %v11114_v19, %v6617_v16  ;;  %v11118_v7 = vrot.slane %v11117_v51, %v6617_v16  ;;  %v11122_v19 = vrot.slane %v8114_v49, %v6617_v16 }
 0x1cc   : > { %v5684_v15 = vsel %vm5658_vm1, %v5555_v53, %v11107_v52  ;;  %v11116_v53 = vld [vmem:[#allocation49_spill] sm:$0xff]  ;;  %v11123_v51 = vrot.slane %v8134_v34, %v6617_v16 }
 0x1cd   : > { %v5813_v39 = vsel %vm5787_vm2, %v5684_v15, %v11111_v9  ;;  %v5579_v52 = vsel %vm5529_vm0, %v11116_v53, %v11115_v14  ;;  %v5707_v40 = vsel %vm5658_vm1, %v5578_v3, %v11118_v7  ;;  %v11120_v9 = vrot.slane %v11119_v30, %v6617_v16  ;;  %v11124_v3 = vld [vmem:[#allocation177_spill] sm:$0xff] }
 0x1ce   : > { %v5960_v58 = vcombine.low %v5812_v42, %v5813_v39  ;;  %v11121_v15 = vcombine.high %v11110_v4, %v11110_v4  ;;  %v5836_v39 = vsel %vm5787_vm2, %v5707_v40, %v11122_v19  ;;  %v11125_v30 = vcombine.high %v11090_v22, %v11090_v22  ;;  %v11128_v40 = vld [vmem:[#allocation28_spill] sm:$0xff] }
 0x1cf   : > { %v5708_v55 = vsel %vm5658_vm1, %v5579_v52, %v11120_v9  ;;  %v11126_v52 = vld [vmem:[#allocation179_spill] sm:$0xff]  ;;  %v11127_v4 = vcombine.high %v11093_v60, %v11093_v60  ;;  %v11130_v22 = vcombine.high %v8134_v34, %v8134_v34 }
 0x1d0   : > { %v5000_v5 = vrot.slane %v11121_v15, %v6617_v16  ;;  %v5837_v42 = vsel %vm5787_vm2, %v5708_v55, %v11123_v51  ;;  %v5556_v14 = vsel %vm5529_vm0, %v11125_v30, %v11124_v3  ;;  %5992 = vxpose.xlu0.b32.cont [13/16] (narrow) %v5960_v58, 8  ;;  %v11129_v15 = vld [vmem:[#allocation30_spill] sm:$0xff]  ;;  %v11131_v51 = vld [vmem:[#allocation185_spill] sm:$0xff]  ;;  %v11133_v58 = vcombine.high %v11113_v41, %v11113_v41 }
 0x1d1   : > { %v5557_v7 = vsel %vm5529_vm0, %v11127_v4, %v11126_v52  ;;  %v6052_v49 = vcombine.low %v5836_v39, %v5837_v42  ;;  %v5685_v9 = vsel %vm5658_vm1, %v5556_v14, %v11128_v40  ;;  %v5096_v19 = vrot.slane %v11130_v22, %v6617_v16  ;;  %v11132_v30 = vld [vmem:[#allocation201_spill] sm:$0xff]  ;;  %v11134_v42 = vld [vmem:[#allocation202_spill] sm:$0xff]  ;;  %v11137_v40 = vld [vmem:[#allocation56_spill] sm:$0xff] }
 0x1d2   : > { %v5686_v55 = vsel %vm5658_vm1, %v5557_v7, %v11129_v15  ;;  %v5814_v3 = vsel %vm5787_vm2, %v5685_v9, %v11131_v51  ;;  %v5580_v39 = vsel %vm5529_vm0, %v11133_v58, %v11132_v30  ;;  %v11135_v14 = vcombine.high %v11116_v53, %v11116_v53  ;;  %v11136_v4 = vld [vmem:[#allocation54_spill] sm:$0xff]  ;;  %v11138_v9 = vld [vmem:[#allocation184_spill] sm:$0xff] }
 0x1d3   : > { %v5815_v60 = vsel %vm5787_vm2, %v5686_v55, %v5000_v5  ;;  %6084 = vxpose.xlu1.b32.cont [9/16] (narrow) %v6052_v49, 8  ;;  %v5709_v7 = vsel %vm5658_vm1, %v5580_v39, %v11136_v4  ;;  %v5008_v15 = vrot.slane %v11138_v9, %v6617_v16  ;;  %v11139_v22 = vld [vmem:[#allocation174_spill] sm:$0xff] }
 0x1d4   : > { %v5581_v52 = vsel %vm5529_vm0, %v11135_v14, %v11134_v42  ;;  %v5961_v34 = vcombine.low %v5814_v3, %v5815_v60  ;;  %v5838_v41 = vsel %vm5787_vm2, %v5709_v7, %v8179_v17  ;;  %v11140_v53 = vrot.slane %v11139_v22, %v6617_v16  ;;  %v11141_v51 = vld [vmem:[#allocation18_spill] sm:$0xff]  ;;  %v11142_v3 = vld [vmem:[#allocation176_spill] sm:$0xff] }
 0x1d5   : > { %v5710_v5 = vsel %vm5658_vm1, %v5581_v52, %v11137_v40  ;;  %v11143_v60 = vrot.slane %v11142_v3, %v6617_v16  ;;  %v11144_v30 = vld [vmem:[#allocation22_spill] sm:$0xff]  ;;  %v11145_v42 = vld [vmem:[#allocation24_spill] sm:$0xff]  ;;  %v5104_v7 = vrot.slane %v8151_v57, %v6617_v16 }
 0x1d6   : > { %v5839_v55 = vsel %vm5787_vm2, %v5710_v5, %v5096_v19  ;;  %v5558_v49 = vsel %vm5529_vm0, %v11141_v51, %v11140_v53  ;;  %5993 = vxpose.xlu0.b32.cont [14/16] (narrow) %v5961_v34, 8  ;;  %v11146_v14 = vrot.slane %v11145_v42, %v6617_v16  ;;  %v11147_v19 = vld [vmem:[#allocation27_spill] sm:$0xff]  ;;  %v11149_v40 = vld [vmem:[#allocation182_spill] sm:$0xff]  ;;  %v11154_v3 = vld [vmem:[#allocation200_spill] sm:$0xff] }
 0x1d7   : > { %v5559_v58 = vsel %vm5529_vm0, %v11144_v30, %v11143_v60  ;;  %v6053_v39 = vcombine.low %v5838_v41, %v5839_v55  ;;  %v11148_v52 = vrot.slane %v11147_v19, %v6617_v16  ;;  %v11150_v5 = vrot.slane %v11149_v40, %v6617_v16  ;;  %v11151_v41 = vld [vmem:[#allocation197_spill] sm:$0xff]  ;;  %v11153_v53 = vld [vmem:[#allocation47_spill] sm:$0xff] }
 0x1d8   : > { %v5687_v17 = vsel %vm5658_vm1, %v5558_v49, %v11146_v14  ;;  %v11152_v55 = vrot.slane %v11151_v41, %v6617_v16  ;;  %v11155_v60 = vrot.slane %v11154_v3, %v6617_v16  ;;  %v11161_v41 = vcombine.high %v11147_v19, %v11147_v19  ;;  %v11162_v3 = vld [vmem:[#allocation199_spill] sm:$0xff] }
 0x1d9   : > { %v5688_v4 = vsel %vm5658_vm1, %v5559_v58, %v11148_v52  ;;  %v5816_v22 = vsel %vm5787_vm2, %v5687_v17, %v11150_v5  ;;  %v11156_v58 = vld [vmem:[#allocation50_spill] sm:$0xff]  ;;  %6085 = vxpose.xlu1.b32.cont [10/16] (narrow) %v6053_v39, 8  ;;  %v11157_v52 = vld [vmem:[#allocation51_spill] sm:$0xff] }
 0x1da   : > { %v5817_v34 = vsel %vm5787_vm2, %v5688_v4, %v5008_v15  ;;  %v5582_v49 = vsel %vm5529_vm0, %v11153_v53, %v11152_v55  ;;  %v5583_v42 = vsel %vm5529_vm0, %v11156_v58, %v11155_v60  ;;  %v11158_v8 = vrot.slane %v11157_v52, %v6617_v16  ;;  %v11159_v15 = vld [vmem:[#allocation53_spill] sm:$0xff]  ;;  %v11166_v52 = vld [vmem:[#allocation178_spill] sm:$0xff] }
 0x1db   : > { %v5962_v14 = vcombine.low %v5816_v22, %v5817_v34  ;;  %v11160_v4 = vrot.slane %v11159_v15, %v6617_v16  ;;  %v4376_v55 = vrot.slane %v11161_v41, %v6617_v16  ;;  %v11163_v60 = vrot.slane %v11162_v3, %v6617_v16  ;;  %v11168_v41 = vld [vmem:[#allocation180_spill] sm:$0xff] }
 0x1dc   : > { %v5711_v17 = vsel %vm5658_vm1, %v5582_v49, %v11158_v8  ;;  %v11164_v8 = vcombine.high %v11149_v40, %v11149_v40  ;;  %v11165_v49 = vcombine.high %v11138_v9, %v11138_v9 }
 0x1dd   : > { %v5712_v5 = vsel %vm5658_vm1, %v5583_v42, %v11160_v4  ;;  %v5840_v39 = vsel %vm5787_vm2, %v5711_v17, %v11163_v60  ;;  %5994 = vxpose.xlu0.b32.cont [15/16] (narrow) %v5962_v14, 8  ;;  %v11167_v4 = vcombine.high %v11141_v51, %v11141_v51  ;;  %v11171_v60 = vld [vmem:[#allocation31_spill] sm:$0xff]  ;;  %v11172_v51 = vcombine.high %v11162_v3, %v11162_v3 }
 0x1de   : > { %v5841_v22 = vsel %vm5787_vm2, %v5712_v5, %v5104_v7  ;;  %v5012_v34 = vrot.slane %v11164_v8, %v6617_v16  ;;  %v5016_v42 = vrot.slane %v11165_v49, %v6617_v16  ;;  %v11169_v7 = vcombine.high %v11144_v30, %v11144_v30 }
 0x1df   : > { %v6054_v19 = vcombine.low %v5840_v39, %v5841_v22  ;;  %v5560_v17 = vsel %vm5529_vm0, %v11167_v4, %v11166_v52  ;;  %v11170_v5 = vcombine.high %v11159_v15, %v11159_v15  ;;  %v5108_v22 = vrot.slane %v11172_v51, %v6617_v16  ;;  %v11174_v52 = vld [vmem:[#allocation203_spill] sm:$0xff]  ;;  %v11183_v51 = vld [vmem:[#allocation61_spill] sm:$0xff] }
 0x1e0   : > { %v5561_v40 = vsel %vm5529_vm0, %v11169_v7, %v11168_v41  ;;  %v5689_v14 = vsel %vm5658_vm1, %v5560_v17, %v11171_v60  ;;  %v11173_v30 = vcombine.high %v8151_v57, %v8151_v57  ;;  %v11175_v4 = vcombine.high %v11153_v53, %v11153_v53  ;;  %v11176_v17 = vld [vmem:[#allocation204_spill] sm:$0xff]  ;;  %v11178_v57 = vld [vmem:[#allocation57_spill] sm:$0xff] }
 0x1e1   : > { %v4472_v9 = vrot.slane %v11170_v5, %v6617_v16  ;;  %v5690_v39 = vsel %vm5658_vm1, %v5561_v40, %v4376_v55  ;;  %6086 = vxpose.xlu1.b32.cont [11/16] (narrow) %v6054_v19, 8  ;;  %v5818_v49 = vsel %vm5787_vm2, %v5689_v14, %v5012_v34  ;;  %v11177_v3 = vcombine.high %v11156_v58, %v11156_v58  ;;  %v11180_v40 = vld [vmem:[#allocation55_spill] sm:$0xff] }
 0x1e2   : > { %v5112_v8 = vrot.slane %v11173_v30, %v6617_v16  ;;  %v5819_v15 = vsel %vm5787_vm2, %v5690_v39, %v5016_v42  ;;  %v5584_v55 = vsel %vm5529_vm0, %v11175_v4, %v11174_v52  ;;  %v11179_v42 = vrot.slane %v8202_v35, %v6617_v16  ;;  %v11182_v14 = vld [vmem:[#allocation59_spill] sm:$0xff] }
 0x1e3   : > { %v5585_v41 = vsel %vm5529_vm0, %v11177_v3, %v11176_v17  ;;  %v5963_v7 = vcombine.low %v5818_v49, %v5819_v15  ;;  %v5713_v19 = vsel %vm5658_vm1, %v5584_v55, %v11178_v57  ;;  %v11181_v58 = vrot.slane %v8209_v45, %v6617_v16  ;;  %v11185_v49 = vld [vmem:[#allocation64_spill] sm:$0xff]  ;;  %v11190_v3 = vld [vmem:[#allocation63_spill] sm:$0xff] }
 0x1e4   : > { %v5714_v34 = vsel %vm5658_vm1, %v5585_v41, %v4472_v9  ;;  %v5586_v53 = vsel %vm5529_vm0, %v11180_v40, %v11179_v42  ;;  %v5842_v5 = vsel %vm5787_vm2, %v5713_v19, %v5108_v22  ;;  %v11184_v30 = vrot.slane %v11183_v51, %v6617_v16 }
 0x1e5   : > { %v5843_v60 = vsel %vm5787_vm2, %v5714_v34, %v5112_v8  ;;  %v5587_v39 = vsel %vm5529_vm0, %v11182_v14, %v11181_v58  ;;  %5995 = vxpose.xlu0.b32.end [16/16] (narrow) %v5963_v7, 8  ;;  %v11186_v15 = vrot.slane %v11185_v49, %v6617_v16  ;;  %v11187_v8 = vrot.slane %v8212_v54, %v6617_v16  ;;  %v11192_v54 = vld [vmem:[#allocation69_spill] sm:$0xff] }
 0x1e6   : > { %v5715_v9 = vsel %vm5658_vm1, %v5586_v53, %v11184_v30  ;;  %v6055_v35 = vcombine.low %v5842_v5, %v5843_v60  ;;  %v5152_v52 = vrot.slane %v8376_v27, %v6617_v16  ;;  %v11188_v4 = vrot.slane %v8236_v26, %v6617_v16  ;;  %v11194_v53 = vld [vmem:[#allocation72_spill] sm:$0xff]  ;;  %v11196_v60 = vld [vmem:[#allocation74_spill] sm:$0xff] }
 0x1e7   : > { %v5716_v22 = vsel %vm5658_vm1, %v5587_v39, %v11186_v15  ;;  %v5844_v45 = vsel %vm5787_vm2, %v5715_v9, %v11187_v8  ;;  %v11189_v17 = vrot.slane %v8340_v46, %v6617_v16  ;;  %v11191_v7 = vrot.slane %v8352_v36, %v6617_v16  ;;  %v11201_v15 = vld [vmem:[#allocation67_spill] sm:$0xff] }
 0x1e8   : > { %v5845_v55 = vsel %vm5787_vm2, %v5716_v22, %v11188_v4  ;;  %v11193_v19 = vcombine.high %v8236_v26, %v8236_v26  ;;  %6087 = vxpose.xlu1.b32.cont [12/16] (narrow) %v6055_v35, 8  ;;  %v11195_v5 = vrot.slane %v11194_v53, %v6617_v16  ;;  %v11197_v58 = vrot.slane %v11196_v60, %v6617_v16  ;;  %v11211_v53 = vld [vmem:[#allocation60_spill] sm:$0xff]  ;;  %v11212_v60 = vld [vmem:[#allocation62_spill] sm:$0xff] }
 0x1e9   : > { %v5594_v41 = vsel %vm5529_vm0, %v11190_v3, %v11189_v17  ;;  %v5595_v57 = vsel %vm5529_vm0, %v11192_v54, %v11191_v7  ;;  %v6056_v42 = vcombine.low %v5844_v45, %v5845_v55  ;;  %v11198_v39 = vcombine.high %v11180_v40, %v11180_v40  ;;  %v11202_v40 = vld [vmem:[#allocation71_spill] sm:$0xff] }
 0x1ea   : > { %v5128_v34 = vrot.slane %v11193_v19, %v6617_v16  ;;  %v5723_v46 = vsel %vm5658_vm1, %v5594_v41, %v11195_v5  ;;  %v5724_v36 = vsel %vm5658_vm1, %v5595_v57, %v11197_v58  ;;  %v11199_v26 = vrot.slane %v8347_v61, %v6617_v16  ;;  %v11206_v41 = vld [vmem:[#allocation76_spill] sm:$0xff]  ;;  %v11207_v57 = vld [vmem:[#allocation78_spill] sm:$0xff] }
 0x1eb   : > { %v5588_v51 = vsel %vm5529_vm0, %v11198_v39, %v8231_v12  ;;  %v5853_v9 = vsel %vm5787_vm2, %v5724_v36, %v5152_v52  ;;  %v11200_v35 = vcombine.high %v11182_v14, %v11182_v14  ;;  %v11203_v45 = vcombine.high %v8376_v27, %v8376_v27  ;;  %v11214_v36 = vld [vmem:[#allocation65_spill] sm:$0xff] }
 0x1ec   : > { %v5852_v30 = vsel %vm5787_vm2, %v5723_v46, %v11199_v26  ;;  %v5717_v22 = vsel %vm5658_vm1, %v5588_v51, %v11201_v15  ;;  %v11205_v55 = vcombine.high %v11192_v54, %v11192_v54  ;;  %6088 = vxpose.xlu1.b32.cont [13/16] (narrow) %v6056_v42, 8  ;;  %v11209_v54 = vld [vmem:[#allocation58_spill] sm:$0xff]  ;;  %v11210_v42 = vrot.slane %v8222_v48, %v6617_v16  ;;  %v11216_v26 = vld [vmem:[#allocation205_spill] sm:$0xff] }
 0x1ed   : > { %v5589_v49 = vsel %vm5529_vm0, %v11200_v35, %v8244_v33  ;;  %v6140_v8 = vcombine.low %v5852_v30, %v5853_v9  ;;  %v5846_v61 = vsel %vm5787_vm2, %v5717_v22, %v8269_v31  ;;  %v5160_v52 = vrot.slane %v11203_v45, %v6617_v16 }
 0x1ee   : > { %v5718_v12 = vsel %vm5658_vm1, %v5589_v49, %v11202_v40  ;;  %v11204_v33 = vcombine.high %v11190_v3, %v11190_v3  ;;  %v5597_v17 = vsel %vm5529_vm0, %v11205_v55, %v8389_v13  ;;  %v5136_v31 = vrot.slane %v8239_v59, %v6617_v16  ;;  %v11219_v49 = vld [vmem:[#allocation66_spill] sm:$0xff] }
 0x1ef   : > { %v5847_v4 = vsel %vm5787_vm2, %v5718_v12, %v5128_v34  ;;  %6172 = vxpose.xlu0.b32.start [1/16] (narrow) %v6140_v8, 8  ;;  %v5726_v3 = vsel %vm5658_vm1, %v5597_v17, %v11207_v57  ;;  %v11208_v13 = vrot.slane %v8206_v43, %v6617_v16  ;;  %v5591_v5 = vsel %vm5529_vm0, %v11211_v53, %v11210_v42  ;;  %v11221_v8 = vld [vmem:[#allocation70_spill] sm:$0xff] }
 0x1f0   : > { %v5596_v14 = vsel %vm5529_vm0, %v11204_v33, %v8373_v38  ;;  %v6057_v27 = vcombine.low %v5846_v61, %v5847_v4  ;;  %v5855_v19 = vsel %vm5787_vm2, %v5726_v3, %v5160_v52  ;;  %v11213_v58 = vrot.slane %v11212_v60, %v6617_v16  ;;  %v11222_v61 = vld [vmem:[#allocation73_spill] sm:$0xff]  ;;  %v11224_v4 = vld [vmem:[#allocation75_spill] sm:$0xff] }
 0x1f1   : > { %v5725_v7 = vsel %vm5658_vm1, %v5596_v14, %v11206_v41  ;;  %v5590_v34 = vsel %vm5529_vm0, %v11209_v54, %v11208_v13  ;;  %v11215_v39 = vrot.slane %v11214_v36, %v6617_v16  ;;  %v5168_v51 = vrot.slane %v8386_v0, %v6617_v16 }
 0x1f2   : > { %v5854_v38 = vsel %vm5787_vm2, %v5725_v7, %v8407_v50  ;;  %v5719_v50 = vsel %vm5658_vm1, %v5590_v34, %v11213_v58  ;;  %v11217_v48 = vrot.slane %v11216_v26, %v6617_v16  ;;  %v11218_v35 = vrot.slane %v8344_v32, %v6617_v16  ;;  %6089 = vxpose.xlu1.b32.cont [14/16] (narrow) %v6057_v27, 8  ;;  %v11232_v34 = vld [vmem:[#allocation207_spill] sm:$0xff] }
 0x1f3   : > { %v6141_v46 = vcombine.low %v5854_v38, %v5855_v19  ;;  %v5720_v43 = vsel %vm5658_vm1, %v5591_v5, %v11215_v39  ;;  %v11220_v22 = vrot.slane %v8359_v47, %v6617_v16  ;;  %v11223_v45 = vrot.slane %v11222_v61, %v6617_v16  ;;  %v11230_v38 = vld [vmem:[#allocation206_spill] sm:$0xff]  ;;  %v11245_v61 = vld [vmem:[#allocation77_spill] sm:$0xff] }
 0x1f4   : > { %v5848_v30 = vsel %vm5787_vm2, %v5719_v50, %v11217_v48  ;;  %v5849_v9 = vsel %vm5787_vm2, %v5720_v43, %v5136_v31  ;;  %v5598_v15 = vsel %vm5529_vm0, %v11219_v49, %v11218_v35  ;;  %v11225_v32 = vrot.slane %v11224_v4, %v6617_v16  ;;  %v11238_v48 = vld [vmem:[#allocation208_spill] sm:$0xff] }
 0x1f5   : > { %v5599_v40 = vsel %vm5529_vm0, %v11221_v8, %v11220_v22  ;;  %6173 = vxpose.xlu0.b32.cont [2/16] (narrow) %v6141_v46, 8  ;;  %v6058_v12 = vcombine.low %v5848_v30, %v5849_v9  ;;  %v5727_v52 = vsel %vm5658_vm1, %v5598_v15, %v11223_v45  ;;  %v11226_v14 = vrot.slane %v8366_v23, %v6617_v16  ;;  %v11234_v46 = vld [vmem:[#allocation68_spill] sm:$0xff]  ;;  %v11242_v22 = vld [vmem:[#allocation210_spill] sm:$0xff] }
 0x1f6   : > { %v5728_v33 = vsel %vm5658_vm1, %v5599_v40, %v11225_v32  ;;  %v11227_v17 = vcombine.high %v11214_v36, %v11214_v36  ;;  %v11228_v27 = vcombine.high %v11216_v26, %v11216_v26  ;;  %v11229_v57 = vcombine.high %v8239_v59, %v8239_v59  ;;  %v11248_v32 = vld [vmem:[#allocation81_spill] sm:$0xff] }
 0x1f7   : > { %v5856_v47 = vsel %vm5787_vm2, %v5727_v52, %v11226_v14  ;;  %v5857_v55 = vsel %vm5787_vm2, %v5728_v33, %v5168_v51  ;;  %v11231_v19 = vcombine.high %v11209_v54, %v11209_v54  ;;  %v11233_v42 = vcombine.high %v11211_v53, %v11211_v53  ;;  %6090 = vxpose.xlu1.b32.cont [15/16] (narrow) %v6058_v12, 8  ;;  %v11244_v12 = vld [vmem:[#allocation79_spill] sm:$0xff] }
 0x1f8   : > { %v4504_v31 = vrot.slane %v11227_v17, %v6617_v16  ;;  %v5140_v41 = vrot.slane %v11228_v27, %v6617_v16  ;;  %v6142_v7 = vcombine.low %v5856_v47, %v5857_v55  ;;  %v5144_v3 = vrot.slane %v11229_v57, %v6617_v16 }
 0x1f9   : > { %v5592_v13 = vsel %vm5529_vm0, %v11231_v19, %v11230_v38  ;;  %v5593_v5 = vsel %vm5529_vm0, %v11233_v42, %v11232_v34  ;;  %v11235_v59 = vcombine.high %v11224_v4, %v11224_v4  ;;  %v11236_v54 = vcombine.high %v8366_v23, %v8366_v23  ;;  %v11240_v23 = vld [vmem:[#allocation209_spill] sm:$0xff]  ;;  %v11255_v19 = vld [vmem:[#allocation218_spill] sm:$0xff] }
 0x1fa   : > { %v5721_v60 = vsel %vm5658_vm1, %v5592_v13, %v11234_v46  ;;  %v5722_v58 = vsel %vm5658_vm1, %v5593_v5, %v4504_v31  ;;  %6174 = vxpose.xlu0.b32.cont [3/16] (narrow) %v6142_v7, 8  ;;  %v11237_v43 = vcombine.high %v8386_v0, %v8386_v0  ;;  %v11239_v30 = vcombine.high %v11219_v49, %v11219_v49  ;;  %v11246_v49 = vld [vmem:[#allocation160_spill] sm:$0xff]  ;;  %v11251_v31 = vld [vmem:[#allocation86_spill] sm:$0xff] }
 0x1fb   : > { %v4536_v50 = vrot.slane %v11235_v59, %v6617_v16  ;;  %v5172_v36 = vrot.slane %v11236_v54, %v6617_v16  ;;  %v5850_v53 = vsel %vm5787_vm2, %v5721_v60, %v5140_v41  ;;  %v5851_v39 = vsel %vm5787_vm2, %v5722_v58, %v5144_v3  ;;  %v11253_v7 = vld [vmem:[#allocation214_spill] sm:$0xff]  ;;  %v11258_v46 = vld [vmem:[#allocation108_spill] sm:$0xff] }
 0x1fc   : > { %v5176_v51 = vrot.slane %v11237_v43, %v6617_v16  ;;  %v6059_v26 = vcombine.low %v5850_v53, %v5851_v39  ;;  %v5600_v9 = vsel %vm5529_vm0, %v11239_v30, %v11238_v48  ;;  %v11241_v35 = vcombine.high %v11221_v8, %v11221_v8  ;;  %v11249_v8 = vld [vmem:[#allocation83_spill] sm:$0xff] }
 0x1fd   : > { %v11243_v40 = vrot.slane %v11242_v22, %v6617_v16  ;;  %v5729_v45 = vsel %vm5658_vm1, %v5600_v9, %v11245_v61  ;;  %v11247_v4 = vrot.slane %v11246_v49, %v6617_v16  ;;  %v11250_v14 = vrot.slane %v11249_v8, %v6617_v16  ;;  %v11267_v9 = vld [vmem:[#allocation213_spill] sm:$0xff] }
 0x1fe   : > { %v5601_v15 = vsel %vm5529_vm0, %v11241_v35, %v11240_v23  ;;  %v5858_v55 = vsel %vm5787_vm2, %v5729_v45, %v5172_v36  ;;  %v11252_v27 = vrot.slane %v11251_v31, %v6617_v16  ;;  %v11254_v57 = vrot.slane %v11253_v7, %v6617_v16  ;;  %6091 = vxpose.xlu1.b32.end [16/16] (narrow) %v6059_v26, 8  ;;  %v11261_v36 = vld [vmem:[#allocation116_spill] sm:$0xff]  ;;  %v11271_v61 = vld [vmem:[#allocation89_spill] sm:$0xff] }
 0x1ff   : > { %v5602_v0 = vsel %vm5529_vm0, %v11244_v12, %v11243_v40  ;;  %v5730_v52 = vsel %vm5658_vm1, %v5601_v15, %v4536_v50  ;;  %v5603_v33 = vsel %vm5529_vm0, %v11248_v32, %v11247_v4  ;;  %v11256_v13 = vrot.slane %v11255_v19, %v6617_v16  ;;  %v11260_v50 = vld [vmem:[#allocation112_spill] sm:$0xff]  ;;  %v11269_v15 = vld [vmem:[#allocation217_spill] sm:$0xff] }
 0x200   : > { %v5731_v47 = vsel %vm5658_vm1, %v5602_v0, %v11250_v14  ;;  %v5859_v17 = vsel %vm5787_vm2, %v5730_v52, %v5176_v51  ;;  %v5732_v41 = vsel %vm5658_vm1, %v5603_v33, %v11252_v27  ;;  %v5280_v42 = vrot.slane %v8862_v11, %v6617_v16  ;;  %v11264_v51 = vld [vmem:[#allocation118_spill] sm:$0xff]  ;;  %v11274_v33 = vld [vmem:[#allocation221_spill] sm:$0xff] }
 0x201   : > { %v5860_v3 = vsel %vm5787_vm2, %v5731_v47, %v11254_v57  ;;  %v6143_v38 = vcombine.low %v5858_v55, %v5859_v17  ;;  %v5861_v34 = vsel %vm5787_vm2, %v5732_v41, %v11256_v13  ;;  %v11257_v5 = vrot.slane %v8813_v56, %v6617_v16  ;;  %v11277_v31 = vld [vmem:[#allocation121_spill] sm:$0xff]  ;;  %v11278_v41 = vld [vmem:[#allocation219_spill] sm:$0xff]  ;;  %v11282_v13 = vld [vmem:[#allocation80_spill] sm:$0xff] }
 0x202   : > { %v6144_v58 = vcombine.low %v5860_v3, %v5861_v34  ;;  %v11259_v59 = vrot.slane %v8825_v62, %v6617_v16  ;;  %v11262_v53 = vrot.slane %v11261_v36, %v6617_v16  ;;  %v11263_v43 = vcombine.high %v11255_v19, %v11255_v19  ;;  %v11279_v57 = vld [vmem:[#allocation123_spill] sm:$0xff] }
 0x203   : > { %v5626_v60 = vsel %vm5529_vm0, %v11258_v46, %v11257_v5  ;;  %6175 = vxpose.xlu0.b32.cont [4/16] (narrow) %v6143_v38, 8  ;;  %v11265_v26 = vrot.slane %v11264_v51, %v6617_v16  ;;  %v11266_v62 = vrot.slane %v8846_v24, %v6617_v16  ;;  %v11268_v23 = vcombine.high %v11244_v12, %v11244_v12  ;;  %v11272_v24 = vld [vmem:[#allocation93_spill] sm:$0xff]  ;;  %v11280_v38 = vld [vmem:[#allocation211_spill] sm:$0xff] }
 0x204   : > { %v5627_v54 = vsel %vm5529_vm0, %v11260_v50, %v11259_v59  ;;  %v5755_v39 = vsel %vm5658_vm1, %v5626_v60, %v11262_v53  ;;  %v5192_v56 = vrot.slane %v11263_v43, %v6617_v16  ;;  %v11270_v22 = vcombine.high %v11248_v32, %v11248_v32  ;;  %v11289_v53 = vld [vmem:[#allocation87_spill] sm:$0xff] }
 0x205   : > { %v5756_v48 = vsel %vm5658_vm1, %v5627_v54, %v11265_v26  ;;  %v5884_v30 = vsel %vm5787_vm2, %v5755_v39, %v11266_v62  ;;  %v5604_v35 = vsel %vm5529_vm0, %v11268_v23, %v11267_v9  ;;  %v11273_v12 = vcombine.high %v8862_v11, %v8862_v11 }
 0x206   : > { %v5605_v40 = vsel %vm5529_vm0, %v11270_v22, %v11269_v15  ;;  %v5885_v0 = vsel %vm5787_vm2, %v5756_v48, %v5280_v42  ;;  %v5733_v45 = vsel %vm5658_vm1, %v5604_v35, %v11271_v61  ;;  %v11275_v14 = vcombine.high %v11258_v46, %v11258_v46  ;;  %v11283_v42 = vld [vmem:[#allocation212_spill] sm:$0xff]  ;;  %v11285_v46 = vld [vmem:[#allocation82_spill] sm:$0xff]  ;;  %v11298_v22 = vld [vmem:[#allocation115_spill] sm:$0xff] }
 0x207   : > { %v5734_v52 = vsel %vm5658_vm1, %v5605_v40, %v11272_v24  ;;  %v5288_v49 = vrot.slane %v11273_v12, %v6617_v16  ;;  %v6236_v4 = vcombine.low %v5884_v30, %v5885_v0  ;;  %v5862_v8 = vsel %vm5787_vm2, %v5733_v45, %v11274_v33  ;;  %6176 = vxpose.xlu0.b32.cont [5/16] (narrow) %v6144_v58, 8  ;;  %v11286_v58 = vld [vmem:[#allocation84_spill] sm:$0xff]  ;;  %v11293_v48 = vld [vmem:[#allocation14_spill] sm:$0xff]  ;;  %v11295_v30 = vld [vmem:[#allocation111_spill] sm:$0xff] }
 0x208   : > { %v5863_v32 = vsel %vm5787_vm2, %v5734_v52, %v5192_v56  ;;  %v5628_v47 = vsel %vm5529_vm0, %v11275_v14, %v8843_v25  ;;  %v11276_v17 = vcombine.high %v11260_v50, %v11260_v50  ;;  %v5200_v7 = vrot.slane %v11278_v41, %v6617_v16  ;;  %v11291_v56 = vld [vmem:[#allocation216_spill] sm:$0xff]  ;;  %v11296_v35 = vld [vmem:[#allocation170_spill] sm:$0xff]  ;;  %v11299_v0 = vld [vmem:[#allocation117_spill] sm:$0xff] }
 0x209   : > { %v6145_v55 = vcombine.low %v5862_v8, %v5863_v32  ;;  %v5757_v27 = vsel %vm5658_vm1, %v5628_v47, %v11277_v31  ;;  %6268 = vxpose.xlu1.b32.start [1/16] (narrow) %v6236_v4, 8  ;;  %v11281_v19 = vrot.slane %v11280_v38, %v6617_v16  ;;  %v11284_v5 = vrot.slane %v11283_v42, %v6617_v16  ;;  %v11304_v8 = vld [vmem:[#allocation35_spill] sm:$0xff] }
 0x20a   : > { %v5629_v11 = vsel %vm5529_vm0, %v11276_v17, %v8859_v21  ;;  %v5886_v25 = vsel %vm5787_vm2, %v5757_v27, %v8883_v2  ;;  %v11287_v59 = vrot.slane %v11286_v58, %v6617_v16  ;;  %v11288_v2 = vld [vmem:[#allocation188_spill] sm:$0xff]  ;;  %v11290_v39 = vrot.slane %v11289_v53, %v6617_v16  ;;  %v11308_v27 = vld [vmem:[#allocation215_spill] sm:$0xff] }
 0x20b   : > { %v5758_v3 = vsel %vm5658_vm1, %v5629_v11, %v11279_v57  ;;  %v5606_v21 = vsel %vm5529_vm0, %v11282_v13, %v11281_v19  ;;  %v5607_v60 = vsel %vm5529_vm0, %v11285_v46, %v11284_v5  ;;  %v5296_v54 = vrot.slane %v11288_v2, %v6617_v16  ;;  %6177 = vxpose.xlu0.b32.cont [6/16] (narrow) %v6145_v55, 8 }
 0x20c   : > { %v5887_v34 = vsel %vm5787_vm2, %v5758_v3, %v5288_v49  ;;  %v5735_v50 = vsel %vm5658_vm1, %v5606_v21, %v11287_v59  ;;  %v5736_v43 = vsel %vm5658_vm1, %v5607_v60, %v11290_v39  ;;  %v11292_v51 = vrot.slane %v11291_v56, %v6617_v16  ;;  %v11302_v49 = vld [vmem:[#allocation120_spill] sm:$0xff]  ;;  %v11312_v21 = vld [vmem:[#allocation90_spill] sm:$0xff] }
 0x20d   : > { %v6237_v36 = vcombine.low %v5886_v25, %v5887_v34  ;;  %v11294_v62 = vrot.slane %v11293_v48, %v6617_v16  ;;  %v5865_v23 = vsel %vm5787_vm2, %v5736_v43, %v5200_v7  ;;  %v11297_v15 = vrot.slane %v11296_v35, %v6617_v16  ;;  %v11310_v25 = vld [vmem:[#allocation220_spill] sm:$0xff]  ;;  %v11318_v39 = vld [vmem:[#allocation38_spill] sm:$0xff] }
 0x20e   : > { %v5864_v26 = vsel %vm5787_vm2, %v5735_v50, %v11292_v51  ;;  %v11300_v61 = vrot.slane %v11299_v0, %v6617_v16  ;;  %v11301_v24 = vcombine.high %v11289_v53, %v11289_v53  ;;  %v11303_v4 = vrot.slane %v11302_v49, %v6617_v16  ;;  %v11326_v0 = vld [vmem:[#allocation91_spill] sm:$0xff] }
 0x20f   : > { %v5630_v9 = vsel %vm5529_vm0, %v11295_v30, %v11294_v62  ;;  %v5631_v40 = vsel %vm5529_vm0, %v11298_v22, %v11297_v15  ;;  %6269 = vxpose.xlu1.b32.cont [2/16] (narrow) %v6237_v36, 8  ;;  %v6146_v12 = vcombine.low %v5864_v26, %v5865_v23  ;;  %v11305_v32 = vrot.slane %v11304_v8, %v6617_v16  ;;  %v11320_v26 = vld [vmem:[#allocation124_spill] sm:$0xff]  ;;  %v11323_v23 = vld [vmem:[#allocation85_spill] sm:$0xff] }
 0x210   : > { %v5759_v45 = vsel %vm5658_vm1, %v5630_v9, %v11300_v61  ;;  %v4568_v52 = vrot.slane %v11301_v24, %v6617_v16  ;;  %v5760_v33 = vsel %vm5658_vm1, %v5631_v40, %v11303_v4  ;;  %v11306_v17 = vcombine.high %v11291_v56, %v11291_v56  ;;  %v11321_v62 = vld [vmem:[#allocation156_spill] sm:$0xff] }
 0x211   : > { %v5888_v14 = vsel %vm5787_vm2, %v5759_v45, %v11305_v32  ;;  %v5889_v47 = vsel %vm5787_vm2, %v5760_v33, %v5296_v54  ;;  %v11307_v55 = vcombine.high %v11278_v41, %v11278_v41  ;;  %v11309_v7 = vcombine.high %v11282_v13, %v11282_v13  ;;  %6178 = vxpose.xlu0.b32.cont [7/16] (narrow) %v6146_v12, 8  ;;  %v11316_v54 = vld [vmem:[#allocation186_spill] sm:$0xff]  ;;  %v11324_v40 = vld [vmem:[#allocation4_spill] sm:$0xff] }
 0x212   : > { %v5204_v11 = vrot.slane %v11306_v17, %v6617_v16  ;;  %v6238_v3 = vcombine.low %v5888_v14, %v5889_v47  ;;  %v11311_v38 = vcombine.high %v11285_v46, %v11285_v46  ;;  %v11313_v41 = vcombine.high %v11302_v49, %v11302_v49  ;;  %v11327_v45 = vld [vmem:[#allocation94_spill] sm:$0xff]  ;;  %v11329_v49 = vld [vmem:[#allocation97_spill] sm:$0xff] }
 0x213   : > { %v5208_v31 = vrot.slane %v11307_v55, %v6617_v16  ;;  %v5608_v57 = vsel %vm5529_vm0, %v11309_v7, %v11308_v27  ;;  %v11314_v60 = vcombine.high %v11304_v8, %v11304_v8  ;;  %v11315_v46 = vcombine.high %v11288_v2, %v11288_v2  ;;  %v11331_v8 = vld [vmem:[#allocation3_spill] sm:$0xff]  ;;  %v11333_v47 = vld [vmem:[#allocation37_spill] sm:$0xff] }
 0x214   : > { %v5609_v19 = vsel %vm5529_vm0, %v11311_v38, %v11310_v25  ;;  %v5737_v34 = vsel %vm5658_vm1, %v5608_v57, %v11312_v21  ;;  %v4664_v42 = vrot.slane %v11313_v41, %v6617_v16  ;;  %6270 = vxpose.xlu1.b32.cont [3/16] (narrow) %v6238_v3, 8  ;;  %v11317_v36 = vcombine.high %v11295_v30, %v11295_v30  ;;  %v11338_v57 = vld [vmem:[#allocation167_spill] sm:$0xff]  ;;  %v11340_v25 = vld [vmem:[#allocation125_spill] sm:$0xff] }
 0x215   : > { %v5738_v5 = vsel %vm5658_vm1, %v5609_v19, %v4568_v52  ;;  %v5866_v13 = vsel %vm5787_vm2, %v5737_v34, %v5204_v11  ;;  %v5300_v58 = vrot.slane %v11314_v60, %v6617_v16  ;;  %v5304_v59 = vrot.slane %v11315_v46, %v6617_v16  ;;  %v11335_v11 = vld [vmem:[#allocation119_spill] sm:$0xff]  ;;  %v11346_v46 = vld [vmem:[#allocation165_spill] sm:$0xff] }
 0x216   : > { %v5867_v50 = vsel %vm5787_vm2, %v5738_v5, %v5208_v31  ;;  %v5632_v53 = vsel %vm5529_vm0, %v11317_v36, %v11316_v54  ;;  %v11319_v43 = vcombine.high %v11298_v22, %v11298_v22  ;;  %v11322_v9 = vrot.slane %v11321_v62, %v6617_v16  ;;  %v11336_v31 = vld [vmem:[#allocation5_spill] sm:$0xff]  ;;  %v11341_v19 = vld [vmem:[#allocation127_spill] sm:$0xff] }
 0x217   : > { %v6147_v51 = vcombine.low %v5866_v13, %v5867_v50  ;;  %v5761_v2 = vsel %vm5658_vm1, %v5632_v53, %v11320_v26  ;;  %v11325_v22 = vrot.slane %v11324_v40, %v6617_v16  ;;  %v11328_v24 = vrot.slane %v11327_v45, %v6617_v16  ;;  %v11344_v13 = vld [vmem:[#allocation129_spill] sm:$0xff]  ;;  %v11357_v40 = vld [vmem:[#allocation223_spill] sm:$0xff] }
 0x218   : > { %v5633_v56 = vsel %vm5529_vm0, %v11319_v43, %v11318_v39  ;;  %v5610_v30 = vsel %vm5529_vm0, %v11323_v23, %v11322_v9  ;;  %v5890_v35 = vsel %vm5787_vm2, %v5761_v2, %v5300_v58  ;;  %v11330_v4 = vrot.slane %v11329_v49, %v6617_v16  ;;  %v11348_v54 = vld [vmem:[#allocation29_spill] sm:$0xff]  ;;  %v11350_v39 = vld [vmem:[#allocation172_spill] sm:$0xff] }
 0x219   : > { %v5762_v48 = vsel %vm5658_vm1, %v5633_v56, %v4664_v42  ;;  %v5611_v61 = vsel %vm5529_vm0, %v11326_v0, %v11325_v22  ;;  %v5739_v52 = vsel %vm5658_vm1, %v5610_v30, %v11328_v24  ;;  %v11332_v32 = vrot.slane %v11331_v8, %v6617_v16  ;;  %6179 = vxpose.xlu0.b32.cont [8/16] (narrow) %v6147_v51, 8  ;;  %v11352_v51 = vld [vmem:[#allocation158_spill] sm:$0xff]  ;;  %v11363_v8 = vld [vmem:[#allocation32_spill] sm:$0xff] }
 0x21a   : > { %v5891_v15 = vsel %vm5787_vm2, %v5762_v48, %v5304_v59  ;;  %v5740_v33 = vsel %vm5658_vm1, %v5611_v61, %v11330_v4  ;;  %v11334_v17 = vrot.slane %v11333_v47, %v6617_v16  ;;  %v11337_v27 = vrot.slane %v11336_v31, %v6617_v16  ;;  %v11354_v48 = vld [vmem:[#allocation100_spill] sm:$0xff]  ;;  %v11358_v61 = vld [vmem:[#allocation19_spill] sm:$0xff]  ;;  %v11364_v47 = vld [vmem:[#allocation134_spill] sm:$0xff] }
 0x21b   : > { %v6239_v12 = vcombine.low %v5890_v35, %v5891_v15  ;;  %v5868_v14 = vsel %vm5787_vm2, %v5739_v52, %v11332_v32  ;;  %v11339_v3 = vrot.slane %v11338_v57, %v6617_v16  ;;  %v11342_v21 = vrot.slane %v11341_v19, %v6617_v16  ;;  %v11356_v35 = vld [vmem:[#allocation104_spill] sm:$0xff]  ;;  %v11360_v52 = vld [vmem:[#allocation45_spill] sm:$0xff] }
 0x21c   : > { %v5634_v55 = vsel %vm5529_vm0, %v11335_v11, %v11334_v17  ;;  %v5869_v7 = vsel %vm5787_vm2, %v5740_v33, %v11337_v27  ;;  %v11343_v41 = vcombine.high %v11336_v31, %v11336_v31  ;;  %v11345_v60 = vrot.slane %v11344_v13, %v6617_v16  ;;  %v11362_v4 = vld [vmem:[#allocation132_spill] sm:$0xff]  ;;  %v11366_v31 = vld [vmem:[#allocation157_spill] sm:$0xff] }
 0x21d   : > { %v5635_v38 = vsel %vm5529_vm0, %v11340_v25, %v11339_v3  ;;  %v5763_v34 = vsel %vm5658_vm1, %v5634_v55, %v11342_v21  ;;  %6271 = vxpose.xlu1.b32.cont [4/16] (narrow) %v6239_v12, 8  ;;  %v6148_v5 = vcombine.low %v5868_v14, %v5869_v7  ;;  %v11347_v59 = vrot.slane %v11346_v46, %v6617_v16  ;;  %v11368_v7 = vld [vmem:[#allocation88_spill] sm:$0xff] }
 0x21e   : > { %v5224_v42 = vrot.slane %v11343_v41, %v6617_v16  ;;  %v5764_v58 = vsel %vm5658_vm1, %v5635_v38, %v11345_v60  ;;  %v11349_v36 = vcombine.high %v11323_v23, %v11323_v23  ;;  %v11351_v43 = vrot.slane %v11350_v39, %v6617_v16  ;;  %v11371_v19 = vld [vmem:[#allocation92_spill] sm:$0xff] }
 0x21f   : > { %v5892_v50 = vsel %vm5787_vm2, %v5763_v34, %v11347_v59  ;;  %v11353_v26 = vcombine.high %v11326_v0, %v11326_v0  ;;  %v11355_v9 = vcombine.high %v11350_v39, %v11350_v39  ;;  %v11359_v0 = vcombine.high %v11335_v11, %v11335_v11  ;;  %6180 = vxpose.xlu0.b32.cont [9/16] (narrow) %v6148_v5, 8  ;;  %v11365_v11 = vld [vmem:[#allocation171_spill] sm:$0xff] }
 0x220   : > { %v5612_v53 = vsel %vm5529_vm0, %v11349_v36, %v11348_v54  ;;  %v5893_v56 = vsel %vm5787_vm2, %v5764_v58, %v11351_v43  ;;  %v11361_v12 = vcombine.high %v11340_v25, %v11340_v25  ;;  %v5232_v32 = vrot.slane %v11363_v8, %v6617_v16  ;;  %v11369_v25 = vld [vmem:[#allocation6_spill] sm:$0xff]  ;;  %v11372_v34 = vld [vmem:[#allocation95_spill] sm:$0xff] }
 0x221   : > { %v5613_v2 = vsel %vm5529_vm0, %v11353_v26, %v11352_v51  ;;  %v5741_v62 = vsel %vm5658_vm1, %v5612_v53, %v11354_v48  ;;  %v5320_v23 = vrot.slane %v11355_v9, %v6617_v16  ;;  %v6240_v30 = vcombine.low %v5892_v50, %v5893_v56  ;;  %v11374_v5 = vld [vmem:[#allocation43_spill] sm:$0xff]  ;;  %v11375_v58 = vld [vmem:[#allocation98_spill] sm:$0xff]  ;;  %v11379_v53 = vld [vmem:[#allocation41_spill] sm:$0xff] }
 0x222   : > { %v5742_v15 = vsel %vm5658_vm1, %v5613_v2, %v11356_v35  ;;  %v5870_v22 = vsel %vm5787_vm2, %v5741_v62, %v11357_v40  ;;  %v5636_v45 = vsel %vm5529_vm0, %v11359_v0, %v11358_v61  ;;  %v5637_v49 = vsel %vm5529_vm0, %v11361_v12, %v11360_v52  ;;  %v11377_v50 = vld [vmem:[#allocation26_spill] sm:$0xff]  ;;  %v11382_v26 = vld [vmem:[#allocation17_spill] sm:$0xff]  ;;  %v11385_v9 = vld [vmem:[#allocation128_spill] sm:$0xff] }
 0x223   : > { %v5871_v24 = vsel %vm5787_vm2, %v5742_v15, %v5224_v42  ;;  %v5765_v33 = vsel %vm5658_vm1, %v5636_v45, %v11362_v4  ;;  %6272 = vxpose.xlu1.b32.cont [5/16] (narrow) %v6240_v30, 8  ;;  %v5766_v17 = vsel %vm5658_vm1, %v5637_v49, %v11364_v47  ;;  %v11367_v27 = vrot.slane %v11366_v31, %v6617_v16  ;;  %v11381_v43 = vld [vmem:[#allocation122_spill] sm:$0xff]  ;;  %v11390_v45 = vld [vmem:[#allocation191_spill] sm:$0xff] }
 0x224   : > { %v6149_v14 = vcombine.low %v5870_v22, %v5871_v24  ;;  %v5894_v55 = vsel %vm5787_vm2, %v5765_v33, %v11365_v11  ;;  %v5895_v3 = vsel %vm5787_vm2, %v5766_v17, %v5320_v23  ;;  %v11370_v38 = vrot.slane %v11369_v25, %v6617_v16  ;;  %v11384_v48 = vld [vmem:[#allocation126_spill] sm:$0xff]  ;;  %v11388_v22 = vld [vmem:[#allocation131_spill] sm:$0xff] }
 0x225   : > { %v5614_v57 = vsel %vm5529_vm0, %v11368_v7, %v11367_v27  ;;  %v11373_v41 = vrot.slane %v11372_v34, %v6617_v16  ;;  %v5328_v13 = vrot.slane %v11374_v5, %v6617_v16  ;;  %v6241_v60 = vcombine.low %v5894_v55, %v5895_v3  ;;  %v11396_v11 = vld [vmem:[#allocation222_spill] sm:$0xff] }
 0x226   : > { %v5615_v21 = vsel %vm5529_vm0, %v11371_v19, %v11370_v38  ;;  %v11376_v46 = vrot.slane %v11375_v58, %v6617_v16  ;;  %v11378_v54 = vrot.slane %v11377_v50, %v6617_v16  ;;  %v11380_v39 = vrot.slane %v11379_v53, %v6617_v16  ;;  %6181 = vxpose.xlu0.b32.cont [10/16] (narrow) %v6149_v14, 8  ;;  %v11394_v14 = vld [vmem:[#allocation33_spill] sm:$0xff] }
 0x227   : > { %v5743_v42 = vsel %vm5658_vm1, %v5614_v57, %v11373_v41  ;;  %v11383_v2 = vrot.slane %v11382_v26, %v6617_v16  ;;  %v11386_v23 = vrot.slane %v11385_v9, %v6617_v16  ;;  %v11387_v35 = vcombine.high %v11375_v58, %v11375_v58  ;;  %6273 = vxpose.xlu1.b32.cont [6/16] (narrow) %v6241_v60, 8  ;;  %v11398_v57 = vld [vmem:[#allocation102_spill] sm:$0xff] }
 0x228   : > { %v5744_v59 = vsel %vm5658_vm1, %v5615_v21, %v11376_v46  ;;  %v5872_v36 = vsel %vm5787_vm2, %v5743_v42, %v11378_v54  ;;  %v5638_v56 = vsel %vm5529_vm0, %v11381_v43, %v11380_v39  ;;  %v11389_v61 = vrot.slane %v11388_v22, %v6617_v16  ;;  %v11402_v60 = vld [vmem:[#allocation194_spill] sm:$0xff]  ;;  %v11408_v39 = vld [vmem:[#allocation96_spill] sm:$0xff] }
 0x229   : > { %v5873_v51 = vsel %vm5787_vm2, %v5744_v59, %v5232_v32  ;;  %v5639_v62 = vsel %vm5529_vm0, %v11384_v48, %v11383_v2  ;;  %v5767_v30 = vsel %vm5658_vm1, %v5638_v56, %v11386_v23  ;;  %v4600_v15 = vrot.slane %v11387_v35, %v6617_v16  ;;  %v11404_v59 = vld [vmem:[#allocation196_spill] sm:$0xff]  ;;  %v11409_v56 = vld [vmem:[#allocation135_spill] sm:$0xff] }
 0x22a   : > { %v6150_v40 = vcombine.low %v5872_v36, %v5873_v51  ;;  %v5768_v0 = vsel %vm5658_vm1, %v5639_v62, %v11389_v61  ;;  %v11391_v24 = vrot.slane %v11390_v45, %v6617_v16  ;;  %v11392_v12 = vcombine.high %v11377_v50, %v11377_v50  ;;  %v11406_v36 = vld [vmem:[#allocation159_spill] sm:$0xff]  ;;  %v11412_v62 = vld [vmem:[#allocation101_spill] sm:$0xff] }
 0x22b   : > { %v5897_v4 = vsel %vm5787_vm2, %v5768_v0, %v5328_v13  ;;  %v11393_v33 = vcombine.high %v11363_v8, %v11363_v8  ;;  %v11395_v47 = vcombine.high %v11368_v7, %v11368_v7  ;;  %v11397_v55 = vcombine.high %v11371_v19, %v11371_v19  ;;  %v11417_v0 = vld [vmem:[#allocation8_spill] sm:$0xff] }
 0x22c   : > { %v5896_v52 = vsel %vm5787_vm2, %v5767_v30, %v11391_v24  ;;  %v5236_v49 = vrot.slane %v11392_v12, %v6617_v16  ;;  %v11399_v8 = vcombine.high %v11388_v22, %v11388_v22  ;;  %6182 = vxpose.xlu0.b32.cont [11/16] (narrow) %v6150_v40, 8  ;;  %v11400_v19 = vcombine.high %v11390_v45, %v11390_v45  ;;  %v11415_v40 = vld [vmem:[#allocation107_spill] sm:$0xff]  ;;  %v11419_v12 = vld [vmem:[#allocation12_spill] sm:$0xff] }
 0x22d   : > { %v5240_v32 = vrot.slane %v11393_v33, %v6617_v16  ;;  %v5616_v17 = vsel %vm5529_vm0, %v11395_v47, %v11394_v14  ;;  %v5617_v31 = vsel %vm5529_vm0, %v11397_v55, %v11396_v11  ;;  %v6242_v27 = vcombine.low %v5896_v52, %v5897_v4 }
 0x22e   : > { %v5745_v3 = vsel %vm5658_vm1, %v5616_v17, %v11398_v57  ;;  %v5746_v25 = vsel %vm5658_vm1, %v5617_v31, %v4600_v15  ;;  %v4696_v38 = vrot.slane %v11399_v8, %v6617_v16  ;;  %v5332_v34 = vrot.slane %v11400_v19, %v6617_v16  ;;  %v11424_v17 = vld [vmem:[#allocation136_spill] sm:$0xff]  ;;  %v11425_v31 = vld [vmem:[#allocation138_spill] sm:$0xff] }
 0x22f   : > { %v5874_v7 = vsel %vm5787_vm2, %v5745_v3, %v5236_v49  ;;  %v5875_v21 = vsel %vm5787_vm2, %v5746_v25, %v5240_v32  ;;  %v11401_v41 = vcombine.high %v11374_v5, %v11374_v5  ;;  %6274 = vxpose.xlu1.b32.cont [7/16] (narrow) %v6242_v27, 8  ;;  %v11403_v58 = vcombine.high %v11381_v43, %v11381_v43  ;;  %v11410_v43 = vld [vmem:[#allocation34_spill] sm:$0xff]  ;;  %v11427_v3 = vld [vmem:[#allocation141_spill] sm:$0xff] }
 0x230   : > { %v6151_v13 = vcombine.low %v5874_v7, %v5875_v21  ;;  %v11405_v50 = vcombine.high %v11384_v48, %v11384_v48  ;;  %v11407_v53 = vrot.slane %v11406_v36, %v6617_v16  ;;  %v11411_v2 = vrot.slane %v11410_v43, %v6617_v16  ;;  %v11413_v48 = vld [vmem:[#allocation105_spill] sm:$0xff]  ;;  %v11422_v32 = vld [vmem:[#allocation130_spill] sm:$0xff] }
 0x231   : > { %v5336_v42 = vrot.slane %v11401_v41, %v6617_v16  ;;  %v5640_v46 = vsel %vm5529_vm0, %v11403_v58, %v11402_v60  ;;  %v11414_v23 = vrot.slane %v11413_v48, %v6617_v16  ;;  %v11416_v22 = vrot.slane %v11415_v40, %v6617_v16  ;;  %v11443_v48 = vld [vmem:[#allocation148_spill] sm:$0xff]  ;;  %v11445_v40 = vld [vmem:[#allocation161_spill] sm:$0xff] }
 0x232   : > { %v5641_v54 = vsel %vm5529_vm0, %v11405_v50, %v11404_v59  ;;  %v5618_v5 = vsel %vm5529_vm0, %v11408_v39, %v11407_v53  ;;  %v5769_v51 = vsel %vm5658_vm1, %v5640_v46, %v11409_v56  ;;  %v5619_v9 = vsel %vm5529_vm0, %v11412_v62, %v11411_v2  ;;  %6183 = vxpose.xlu0.b32.cont [12/16] (narrow) %v6151_v13, 8  ;;  %v11434_v13 = vld [vmem:[#allocation226_spill] sm:$0xff]  ;;  %v11437_v50 = vld [vmem:[#allocation113_spill] sm:$0xff] }
 0x233   : > { %v5770_v26 = vsel %vm5658_vm1, %v5641_v54, %v4696_v38  ;;  %v5747_v30 = vsel %vm5658_vm1, %v5618_v5, %v11414_v23  ;;  %v5898_v35 = vsel %vm5787_vm2, %v5769_v51, %v5332_v34  ;;  %v5748_v61 = vsel %vm5658_vm1, %v5619_v9, %v11416_v22  ;;  %v11432_v34 = vld [vmem:[#allocation10_spill] sm:$0xff] }
 0x234   : > { %v5899_v15 = vsel %vm5787_vm2, %v5770_v26, %v5336_v42  ;;  %v11418_v45 = vrot.slane %v11417_v0, %v6617_v16  ;;  %v11420_v49 = vrot.slane %v11419_v12, %v6617_v16  ;;  %v11421_v33 = vrot.slane %v9050_v63, %v6617_v16  ;;  %v11436_v46 = vld [vmem:[#allocation110_spill] sm:$0xff] }
 0x235   : > { %v6243_v52 = vcombine.low %v5898_v35, %v5899_v15  ;;  %v11423_v47 = vrot.slane %v9061_v29, %v6617_v16  ;;  %v11426_v27 = vrot.slane %v11425_v31, %v6617_v16  ;;  %v11428_v25 = vrot.slane %v11427_v3, %v6617_v16  ;;  %v11448_v0 = vld [vmem:[#allocation162_spill] sm:$0xff] }
 0x236   : > { %v5876_v24 = vsel %vm5787_vm2, %v5747_v30, %v11418_v45  ;;  %v5877_v4 = vsel %vm5787_vm2, %v5748_v61, %v11420_v49  ;;  %v5642_v14 = vsel %vm5529_vm0, %v11422_v32, %v11421_v33  ;;  %v11429_v8 = vcombine.high %v11419_v12, %v11419_v12  ;;  %v11444_v30 = vld [vmem:[#allocation225_spill] sm:$0xff]  ;;  %v11451_v49 = vld [vmem:[#allocation106_spill] sm:$0xff] }
 0x237   : > { %v5643_v11 = vsel %vm5529_vm0, %v11424_v17, %v11423_v47  ;;  %v6152_v55 = vcombine.low %v5876_v24, %v5877_v4  ;;  %v5771_v57 = vsel %vm5658_vm1, %v5642_v14, %v11426_v27  ;;  %6275 = vxpose.xlu1.b32.cont [8/16] (narrow) %v6243_v52, 8  ;;  %v11430_v29 = vrot.slane %v9068_v44, %v6617_v16  ;;  %v11450_v24 = vld [vmem:[#allocation103_spill] sm:$0xff]  ;;  %v11453_v33 = vld [vmem:[#allocation109_spill] sm:$0xff] }
 0x238   : > { %v5772_v63 = vsel %vm5658_vm1, %v5643_v11, %v11428_v25  ;;  %v5256_v38 = vrot.slane %v11429_v8, %v6617_v16  ;;  %v11431_v21 = vrot.slane %v9095_v37, %v6617_v16  ;;  %v11433_v41 = vcombine.high %v11408_v39, %v11408_v39  ;;  %v11439_v39 = vld [vmem:[#allocation228_spill] sm:$0xff]  ;;  %v11455_v47 = vld [vmem:[#allocation13_spill] sm:$0xff]  ;;  %v11456_v11 = vld [vmem:[#allocation7_spill] sm:$0xff] }
 0x239   : > { %v5900_v7 = vsel %vm5787_vm2, %v5771_v57, %v11430_v29  ;;  %v11435_v60 = vcombine.high %v11412_v62, %v11412_v62  ;;  %v11438_v36 = vcombine.high %v9095_v37, %v9095_v37  ;;  %6184 = vxpose.xlu0.b32.cont [13/16] (narrow) %v6152_v55, 8  ;;  %v11440_v51 = vcombine.high %v11422_v32, %v11422_v32  ;;  %v11442_v62 = vld [vmem:[#allocation144_spill] sm:$0xff]  ;;  %v11458_v57 = vld [vmem:[#allocation163_spill] sm:$0xff]  ;;  %v11460_v25 = vld [vmem:[#allocation133_spill] sm:$0xff] }
 0x23a   : > { %v5901_v19 = vsel %vm5787_vm2, %v5772_v63, %v11431_v21  ;;  %v5620_v42 = vsel %vm5529_vm0, %v11433_v41, %v11432_v34  ;;  %v11441_v43 = vcombine.high %v11424_v17, %v11424_v17  ;;  %v5264_v35 = vrot.slane %v11444_v30, %v6617_v16  ;;  %v11461_v8 = vld [vmem:[#allocation9_spill] sm:$0xff] }
 0x23b   : > { %v5621_v58 = vsel %vm5529_vm0, %v11435_v60, %v11434_v13  ;;  %v6244_v44 = vcombine.low %v5900_v7, %v5901_v19  ;;  %v5749_v59 = vsel %vm5658_vm1, %v5620_v42, %v11436_v46  ;;  %v5352_v53 = vrot.slane %v11438_v36, %v6617_v16  ;;  %v11463_v29 = vld [vmem:[#allocation137_spill] sm:$0xff]  ;;  %v11464_v19 = vld [vmem:[#allocation139_spill] sm:$0xff]  ;;  %v11466_v42 = vld [vmem:[#allocation142_spill] sm:$0xff] }
 0x23c   : > { %v5750_v54 = vsel %vm5658_vm1, %v5621_v58, %v11437_v50  ;;  %v5878_v5 = vsel %vm5787_vm2, %v5749_v59, %v11439_v39  ;;  %v5644_v26 = vsel %vm5529_vm0, %v11440_v51, %v9082_v28  ;;  %v5645_v2 = vsel %vm5529_vm0, %v11441_v43, %v9098_v10  ;;  %v11447_v10 = vld [vmem:[#allocation99_spill] sm:$0xff]  ;;  %v11469_v46 = vld [vmem:[#allocation164_spill] sm:$0xff] }
 0x23d   : > { %v5879_v56 = vsel %vm5787_vm2, %v5750_v54, %v5256_v38  ;;  %v5773_v9 = vsel %vm5658_vm1, %v5644_v26, %v11442_v62  ;;  %v5774_v23 = vsel %vm5658_vm1, %v5645_v2, %v11443_v48  ;;  %6276 = vxpose.xlu1.b32.cont [9/16] (narrow) %v6244_v44, 8  ;;  %v11446_v22 = vrot.slane %v11445_v40, %v6617_v16  ;;  %v11473_v51 = vld [vmem:[#allocation224_spill] sm:$0xff]  ;;  %v11475_v2 = vld [vmem:[#allocation227_spill] sm:$0xff] }
 0x23e   : > { %v6153_v37 = vcombine.low %v5878_v5, %v5879_v56  ;;  %v5902_v28 = vsel %vm5787_vm2, %v5773_v9, %v9119_v1  ;;  %v5903_v15 = vsel %vm5787_vm2, %v5774_v23, %v5352_v53  ;;  %v11449_v45 = vrot.slane %v11448_v0, %v6617_v16  ;;  %v11478_v23 = vld [vmem:[#allocation114_spill] sm:$0xff]  ;;  %v11481_v0 = vld [vmem:[#allocation11_spill] sm:$0xff] }
 0x23f   : > { %v5622_v61 = vsel %vm5529_vm0, %v11447_v10, %v11446_v22  ;;  %v6245_v12 = vcombine.low %v5902_v28, %v5903_v15  ;;  %v11452_v4 = vrot.slane %v11451_v49, %v6617_v16  ;;  %v11454_v32 = vrot.slane %v11453_v33, %v6617_v16 }
 0x240   : > { %v5623_v52 = vsel %vm5529_vm0, %v11450_v24, %v11449_v45  ;;  %v5360_v17 = vrot.slane %v11455_v47, %v6617_v16  ;;  %6185 = vxpose.xlu0.b32.cont [14/16] (narrow) %v6153_v37, 8  ;;  %v11457_v55 = vrot.slane %v11456_v11, %v6617_v16  ;;  %v11459_v3 = vrot.slane %v11458_v57, %v6617_v16 }
 0x241   : > { %v5751_v1 = vsel %vm5658_vm1, %v5622_v61, %v11452_v4  ;;  %v5752_v14 = vsel %vm5658_vm1, %v5623_v52, %v11454_v32  ;;  %v11462_v38 = vrot.slane %v11461_v8, %v6617_v16  ;;  %v11465_v34 = vrot.slane %v11464_v19, %v6617_v16  ;;  %6277 = vxpose.xlu1.b32.cont [10/16] (narrow) %v6245_v12, 8  ;;  %v11483_v52 = vld [vmem:[#allocation16_spill] sm:$0xff]  ;;  %v11492_v8 = vld [vmem:[#allocation151_spill] sm:$0xff] }
 0x242   : > { %v5880_v31 = vsel %vm5787_vm2, %v5751_v1, %v11457_v55  ;;  %v5881_v27 = vsel %vm5787_vm2, %v5752_v14, %v5264_v35  ;;  %v5646_v63 = vsel %vm5529_vm0, %v11460_v25, %v11459_v3  ;;  %v11467_v13 = vrot.slane %v11466_v42, %v6617_v16  ;;  %v11485_v1 = vld [vmem:[#allocation145_spill] sm:$0xff] }
 0x243   : > { %v5647_v7 = vsel %vm5529_vm0, %v11463_v29, %v11462_v38  ;;  %v6154_v21 = vcombine.low %v5880_v31, %v5881_v27  ;;  %v5775_v41 = vsel %vm5658_vm1, %v5646_v63, %v11465_v34  ;;  %v11468_v58 = vcombine.high %v11453_v33, %v11453_v33  ;;  %v11489_v27 = vld [vmem:[#allocation146_spill] sm:$0xff]  ;;  %v11490_v3 = vld [vmem:[#allocation149_spill] sm:$0xff] }
 0x244   : > { %v5776_v60 = vsel %vm5658_vm1, %v5647_v7, %v11467_v13  ;;  %v11470_v59 = vrot.slane %v11469_v46, %v6617_v16  ;;  %v11471_v36 = vcombine.high %v11456_v11, %v11456_v11  ;;  %v11472_v39 = vcombine.high %v11444_v30, %v11444_v30  ;;  %v11498_v13 = vld [vmem:[#allocation36_spill] sm:$0xff] }
 0x245   : > { %v4632_v44 = vrot.slane %v11468_v58, %v6617_v16  ;;  %v5905_v54 = vsel %vm5787_vm2, %v5776_v60, %v5360_v17  ;;  %v11474_v26 = vcombine.high %v11447_v10, %v11447_v10  ;;  %v11476_v37 = vcombine.high %v11450_v24, %v11450_v24  ;;  %6186 = vxpose.xlu0.b32.cont [15/16] (narrow) %v6154_v21, 8  ;;  %v11495_v21 = vld [vmem:[#allocation189_spill] sm:$0xff] }
 0x246   : > { %v5904_v50 = vsel %vm5787_vm2, %v5775_v41, %v11470_v59  ;;  %v5268_v53 = vrot.slane %v11471_v36, %v6617_v16  ;;  %v5272_v5 = vrot.slane %v11472_v39, %v6617_v16  ;;  %v11477_v9 = vcombine.high %v11466_v42, %v11466_v42  ;;  %v11502_v59 = vld [vmem:[#allocation39_spill] sm:$0xff]  ;;  %v11503_v36 = vld [vmem:[#allocation153_spill] sm:$0xff]  ;;  %v11504_v39 = vld [vmem:[#allocation154_spill] sm:$0xff] }
 0x247   : > { %v6246_v56 = vcombine.low %v5904_v50, %v5905_v54  ;;  %v5624_v43 = vsel %vm5529_vm0, %v11474_v26, %v11473_v51  ;;  %v5625_v62 = vsel %vm5529_vm0, %v11476_v37, %v11475_v2  ;;  %v11479_v28 = vcombine.high %v11469_v46, %v11469_v46  ;;  %v11507_v26 = vld [vmem:[#allocation143_spill] sm:$0xff]  ;;  %v11508_v2 = vld [vmem:[#allocation166_spill] sm:$0xff] }
 0x248   : > { %v4728_v48 = vrot.slane %v11477_v9, %v6617_v16  ;;  %v5753_v30 = vsel %vm5658_vm1, %v5624_v43, %v11478_v23  ;;  %v5754_v35 = vsel %vm5658_vm1, %v5625_v62, %v4632_v44  ;;  %v11480_v40 = vcombine.high %v11455_v47, %v11455_v47  ;;  %v11487_v47 = vld [vmem:[#allocation140_spill] sm:$0xff]  ;;  %v11500_v44 = vld [vmem:[#allocation42_spill] sm:$0xff]  ;;  %v11509_v9 = vld [vmem:[#allocation193_spill] sm:$0xff] }
 0x249   : > { %v5364_v15 = vrot.slane %v11479_v28, %v6617_v16  ;;  %v5882_v10 = vsel %vm5787_vm2, %v5753_v30, %v5268_v53  ;;  %v5883_v61 = vsel %vm5787_vm2, %v5754_v35, %v5272_v5  ;;  %v11482_v45 = vcombine.high %v11460_v25, %v11460_v25  ;;  %6278 = vxpose.xlu1.b32.cont [11/16] (narrow) %v6246_v56, 8  ;;  %v11505_v56 = vld [vmem:[#allocation169_spill] sm:$0xff]  ;;  %v11511_v23 = vld [vmem:[#allocation147_spill] sm:$0xff]  ;;  %v11512_v35 = vld [vmem:[#allocation150_spill] sm:$0xff] }
 0x24a   : > { %v5368_v22 = vrot.slane %v11480_v40, %v6617_v16  ;;  %v11484_v12 = vcombine.high %v11463_v29, %v11463_v29  ;;  %v6155_v4 = vcombine.low %v5882_v10, %v5883_v61  ;;  %v11486_v14 = vrot.slane %v9182_v20, %v6617_v16 }
 0x24b   : > { %v5648_v24 = vsel %vm5529_vm0, %v11482_v45, %v11481_v0  ;;  %v11488_v31 = vrot.slane %v9197_v18, %v6617_v16  ;;  %v11491_v25 = vrot.slane %v11490_v3, %v6617_v16  ;;  %v11493_v38 = vrot.slane %v11492_v8, %v6617_v16  ;;  %v11516_v0 = vld [vmem:[#allocation187_spill] sm:$0xff] }
 0x24c   : > { %v5649_v49 = vsel %vm5529_vm0, %v11484_v12, %v11483_v52  ;;  %v5777_v33 = vsel %vm5658_vm1, %v5648_v24, %v11485_v1  ;;  %v5650_v17 = vsel %vm5529_vm0, %v11487_v47, %v11486_v14  ;;  %6187 = vxpose.xlu0.b32.end [16/16] (narrow) %v6155_v4, 8  ;;  %v11494_v7 = vrot.slane %v9194_v6, %v6617_v16  ;;  %v11521_v14 = vld [vmem:[#allocation40_spill] sm:$0xff] }
 0x24d   : > { %v5778_v32 = vsel %vm5658_vm1, %v5649_v49, %v4728_v48  ;;  %v5906_v11 = vsel %vm5787_vm2, %v5777_v33, %v5364_v15  ;;  %v5651_v57 = vsel %vm5529_vm0, %v11489_v27, %v11488_v31  ;;  %v5779_v63 = vsel %vm5658_vm1, %v5650_v17, %v11491_v25 }
 0x24e   : > { %v5907_v55 = vsel %vm5787_vm2, %v5778_v32, %v5368_v22  ;;  %v5780_v29 = vsel %vm5658_vm1, %v5651_v57, %v11493_v38  ;;  %v5908_v18 = vsel %vm5787_vm2, %v5779_v63, %v11494_v7  ;;  %v11496_v19 = vcombine.high %v11495_v21, %v11495_v21  ;;  %v11514_v22 = vld [vmem:[#allocation152_spill] sm:$0xff]  ;;  %v11525_v57 = vld [vmem:[#allocation155_spill] sm:$0xff]  ;;  %v5996_v38 = vpop.trf.xlu0  ;;  %v11526_v7 = vld [vmem:[#allocation2_spill] sm:$0xff] }
 0x24f   : > { %v6247_v20 = vcombine.low %v5906_v11, %v5907_v55  ;;  %v11497_v41 = vrot.slane %v11495_v21, %v6617_v16  ;;  %v11499_v60 = vcombine.high %v11487_v47, %v11487_v47  ;;  %v11501_v6 = vcombine.high %v11489_v27, %v11489_v27  ;;  %v11523_v55 = vld [vmem:[#allocation190_spill] sm:$0xff] }
 0x250   : > { %v5384_v34 = vrot.slane %v11496_v19, %v6617_v16  ;;  %v5392_v50 = vrot.slane %v11502_v59, %v6617_v16  ;;  %v11506_v51 = vrot.slane %v11505_v56, %v6617_v16  ;;  %v11510_v48 = vrot.slane %v11509_v9, %v6617_v16 }
 0x251   : > { %v5909_v42 = vsel %vm5787_vm2, %v5780_v29, %v11497_v41  ;;  %v5652_v58 = vsel %vm5529_vm0, %v11499_v60, %v11498_v13  ;;  %v5653_v46 = vsel %vm5529_vm0, %v11501_v6, %v11500_v44  ;;  %6279 = vxpose.xlu1.b32.cont [12/16] (narrow) %v6247_v20, 8  ;;  %v11513_v28 = vrot.slane %v11512_v35, %v6617_v16  ;;  %v6092_v29 = vpop.trf.xlu1 }
 0x252   : > { %v6248_v54 = vcombine.low %v5908_v18, %v5909_v42  ;;  %v5781_v53 = vsel %vm5658_vm1, %v5652_v58, %v11503_v36  ;;  %v5782_v5 = vsel %vm5658_vm1, %v5653_v46, %v11504_v39  ;;  %v5654_v43 = vsel %vm5529_vm0, %v11507_v26, %v11506_v51 }
 0x253   : > { %v5910_v37 = vsel %vm5787_vm2, %v5781_v53, %v11508_v2  ;;  %v5911_v62 = vsel %vm5787_vm2, %v5782_v5, %v5384_v34  ;;  %v5655_v30 = vsel %vm5529_vm0, %v11511_v23, %v11510_v48  ;;  %v5783_v15 = vsel %vm5658_vm1, %v5654_v43, %v11513_v28 }
 0x254   : > { %v6249_v40 = vcombine.low %v5910_v37, %v5911_v62  ;;  %v11515_v10 = vrot.slane %v11514_v22, %v6617_v16  ;;  %v11517_v45 = vrot.slane %v11516_v0, %v6617_v16  ;;  %v11518_v52 = vcombine.high %v11514_v22, %v11514_v22 }
 0x255   : > { %v11519_v4 = vcombine.high %v11516_v0, %v11516_v0  ;;  %v11520_v33 = vcombine.high %v11502_v59, %v11502_v59  ;;  %v11522_v47 = vcombine.high %v11507_v26, %v11507_v26  ;;  %6280 = vxpose.xlu1.b32.cont [13/16] (narrow) %v6248_v54, 8  ;;  %v11524_v31 = vcombine.high %v11511_v23, %v11511_v23 }
 0x256   : > { %v5784_v61 = vsel %vm5658_vm1, %v5655_v30, %v11515_v10  ;;  %v5912_v24 = vsel %vm5787_vm2, %v5783_v15, %v11517_v45  ;;  %v4760_v12 = vrot.slane %v11518_v52, %v6617_v16  ;;  %v6332_v18 = vrot.slane %v6092_v29, %v11526_v7 }
 0x257   : > { %v5913_v49 = vsel %vm5787_vm2, %v5784_v61, %v5392_v50  ;;  %v5396_v1 = vrot.slane %v11519_v4, %v6617_v16  ;;  %v5400_v32 = vrot.slane %v11520_v33, %v6617_v16  ;;  %v5656_v17 = vsel %vm5529_vm0, %v11522_v47, %v11521_v14 }
 0x258   : > { %v6250_v11 = vcombine.low %v5912_v24, %v5913_v49  ;;  %v5657_v27 = vsel %vm5529_vm0, %v11524_v31, %v11523_v55  ;;  %v5785_v3 = vsel %vm5658_vm1, %v5656_v17, %v11525_v57  ;;  %v6307_v34 = vrot.slane %v5996_v38, %v11526_v7 }
 0x259   : > { %v5786_v25 = vsel %vm5658_vm1, %v5657_v27, %v4760_v12  ;;  %v5914_v63 = vsel %vm5787_vm2, %v5785_v3, %v5396_v1  ;;  %6281 = vxpose.xlu1.b32.cont [14/16] (narrow) %v6249_v40, 8  ;;  %v6333_v41 = vcombine.high %v6332_v18, %v6332_v18  ;;  %v6340_v60 = vrot.slane %v6332_v18, %v11526_v7 }
 0x25a   : > { %v5915_v20 = vsel %vm5787_vm2, %v5786_v25, %v5400_v32  ;;  %v6308_v13 = vcombine.high %v6307_v34, %v6307_v34  ;;  %v6315_v44 = vrot.slane %v6307_v34, %v11526_v7 }
 0x25b   : > { %v6251_v8 = vcombine.low %v5914_v63, %v5915_v20  ;;  %v6347_v58 = vrot.slane %v6333_v41, %v11526_v7  ;;  %v6397_v54 = vrot.slane %v6340_v60, %v6617_v16 }
 0x25c   : > { %v6322_v50 = vrot.slane %v6308_v13, %v11526_v7 }
 0x25d   : > { %6282 = vxpose.xlu1.b32.cont [15/16] (narrow) %v6250_v11, 8  ;;  %v6401_v36 = vrot.slane %v6347_v58, %v6617_v16  ;;  %v6424_v26 = vsel %vm5529_vm0, %v6315_v44, %v6397_v54 }
 0x25f   : > { %v6425_v43 = vsel %vm5529_vm0, %v6322_v50, %v6401_v36 }
 0x261   : > { %6283 = vxpose.xlu1.b32.end [16/16] (narrow) %v6251_v8, 8 }
 0x290   : > { %v6188_v21 = vpop.trf.xlu0 }
 0x291   : > { %v6355_v19 = vrot.slane %v6188_v21, %v11526_v7 }
 0x293   : > { %v6356_v42 = vcombine.high %v6355_v19, %v6355_v19  ;;  %v6363_v6 = vrot.slane %v6355_v19, %v11526_v7 }
 0x295   : > { %v6370_v46 = vrot.slane %v6356_v42, %v11526_v7  ;;  %v6407_v56 = vrot.slane %v6363_v6, %v6617_v16 }
 0x297   : > { %v6411_v51 = vrot.slane %v6370_v46, %v6617_v16  ;;  %v6426_v9 = vsel %vm5658_vm1, %v6424_v26, %v6407_v56 }
 0x299   : > { %v6427_v48 = vsel %vm5658_vm1, %v6425_v43, %v6411_v51 }
 0x2a5   : > { %v6284_v59 = vpop.trf.xlu1 }
 0x2a6   : > { %v6378_v53 = vrot.slane %v6284_v59, %v11526_v7 }
 0x2a8   : > { %v6379_v39 = vcombine.high %v6378_v53, %v6378_v53  ;;  %v6386_v5 = vrot.slane %v6378_v53, %v11526_v7 }
 0x2aa   : > { %v6393_v2 = vrot.slane %v6379_v39, %v11526_v7  ;;  %v6417_v37 = vrot.slane %v6386_v5, %v6617_v16 }
 0x2ac   : > { %v6421_v62 = vrot.slane %v6393_v2, %v6617_v16  ;;  %v6428_v23 = vsel %vm5787_vm2, %v6426_v9, %v6417_v37 }
 0x2ae   : > { %v6429_v30 = vsel %vm5787_vm2, %v6427_v48, %v6421_v62 }
 0x2af   : > { %v6432_v35 = vcombine.low %v6428_v23, %v6429_v30 }
 0x2b1   : > { %6434 = vst [vmem:[%s145_s16] sm:$0xff] %v6432_v35 }
 0x2b2 PF: > { %s11_s8 = sadd.s32 1, %s6574_s8   ;;  %s11527_s6 = smov %s6570_s7 }
 0x2b3   : > { %p8_p5 = scmp.ge.s32.totalorder %s11_s8, 4   ;;  %s11528_s7 = smov %s11530_s9 }
 0x2b5   :  { %10 = sbr.rel (!%p8_p5) target bundleno = 2 (0x2), region = 57 }

</bundles_post_ra>
